<compile_context>
chip_gen: v6e
topology: v6e:2x2x1
jax: 0.10.0
libtpu: 0.0.40
codegen_flags: <defaults>
</compile_context>

<pallas_src>
import functools

import jax
import jax.numpy as jnp
from jax import lax
from jax.experimental import pallas as pl
from jax.experimental.pallas import tpu as pltpu


def _round_up(x, m):
    return (x + m - 1) // m * m


# Above this sequence length the recurrence uses lax.fori_loop (bounded live
# ranges / vreg pressure); at or below it we fully unroll (best LLO visibility).
_UNROLL_MAX_T = 16


def make_lstm_fc_kernel(*, num_layers, seq_len, b_pad, hidden_pad):
    """Pallas kernel: `num_layers` stacked LSTM layers + Linear head."""
    T, Bp, Hp = seq_len, b_pad, hidden_pad
    multi_layer = num_layers > 1
    unrolled = T <= _UNROLL_MAX_T

    def kernel(*refs):
        # ref order:
        #   x_ref (T*Bp, Dp) bf16
        #   per layer l: w_ih_l (Din_pad, 4Hp) bf16, w_hh_l (Hp, 4Hp) bf16,
        #                b_l (1, 4Hp) f32      (i/f/o columns pre-scaled by 0.5)
        #   w_fc (Hp, Cp) bf16, b_fc (1, Cp) f32
        #   out_ref (Bp, Cp) f32
        #   scratch: gin_buf (T*Bp, 4Hp) f32   -- hoisted input projection
        #            [seq_buf (T*Bp, Hp) f32]  -- only when num_layers > 1
        x_ref = refs[0]
        layer_refs = refs[1:1 + 3 * num_layers]
        idx = 1 + 3 * num_layers
        w_fc_ref = refs[idx]
        b_fc_ref = refs[idx + 1]
        out_ref = refs[idx + 2]
        gin_buf = refs[idx + 3]
        seq_buf = refs[idx + 4] if multi_layer else None

        h_last = None
        for l in range(num_layers):
            w_ih = layer_refs[3 * l + 0][...]   # (Din_pad, 4Hp) bf16
            w_hh = layer_refs[3 * l + 1][...]   # (Hp, 4Hp) bf16
            b = layer_refs[3 * l + 2][...]      # (1, 4Hp) f32 (i/f/o pre-scaled)

            # Hoisted non-recurrent projection: one big bf16 MXU matmul over all
            # timesteps (M = T*Bp), computed before the serial recurrence.
            src = x_ref[...] if l == 0 else seq_buf[...].astype(jnp.bfloat16)
            gin_buf[...] = (
                jnp.dot(src, w_ih, preferred_element_type=jnp.float32) + b
            )

            write_seq = l < num_layers - 1

            def step(r0, h, c, *, _w_hh=w_hh, _write_seq=write_seq):
                # Single fused EUP tanh over (Bp, 4Hp); sigmoid for i/f/o comes
                # from the exact identity sigmoid(x) = 0.5*tanh(0.5x) + 0.5 with
                # the 0.5 pre-scale folded into the weights (wrapper side) and
                # the post-tanh *0.5 + 0.5 applied with scalar immediates on
                # lane-group-aligned slices (no mask arrays).
                gates = gin_buf[pl.ds(r0, Bp), :] + jnp.dot(
                    h.astype(jnp.bfloat16), _w_hh,
                    preferred_element_type=jnp.float32)            # (Bp, 4Hp)
                act = jnp.tanh(gates)
                i_g = act[:, 0 * Hp:1 * Hp] * 0.5 + 0.5
                f_g = act[:, 1 * Hp:2 * Hp] * 0.5 + 0.5
                g_g = act[:, 2 * Hp:3 * Hp]
                o_g = act[:, 3 * Hp:4 * Hp] * 0.5 + 0.5
                c = f_g * c + i_g * g_g
                h = o_g * jnp.tanh(c)
                # Only intermediate layers feed a next layer; the last layer's
                # per-step outputs are never read, so skip the stores there.
                if _write_seq:
                    seq_buf[pl.ds(r0, Bp), :] = h
                return h, c

            # PyTorch default: h0 = c0 = 0. Carried as values (vregs).
            h0 = jnp.zeros((Bp, Hp), jnp.float32)
            c0 = jnp.zeros((Bp, Hp), jnp.float32)

            if unrolled:
                h, c = h0, c0
                for t in range(T):                      # short static T: unroll
                    h, c = step(t * Bp, h, c)
            else:
                def body(t, carry):
                    h, c = carry
                    r0 = pl.multiple_of(t * Bp, Bp)      # sublane-aligned start
                    return step(r0, h, c)
                h, c = lax.fori_loop(0, T, body, (h0, c0), unroll=2)

            h_last = h

        # h_last == out[:, -1, :] of the last layer. FC head (lane-dense store).
        out_ref[...] = (
            jnp.dot(h_last.astype(jnp.bfloat16), w_fc_ref[...],
                    preferred_element_type=jnp.float32)
            + b_fc_ref[...]
        )

    return kernel


def match_predictor_forward(x, params, *, hidden_size, num_layers, num_classes):
    """Wrapper: transpose/pad/flatten (XLA glue) + one pallas_call hot path.

    x: (B, T, D) float32, batch_first like the PyTorch module.
    """
    B, T, D = x.shape
    H = hidden_size
    C = num_classes
    Bp = _round_up(max(B, 8), 8)     # sublane alignment
    Dp = _round_up(D, 128)           # lane alignment
    Hp = _round_up(H, 128)           # each gate block -> whole lane groups
    Cp = _round_up(C, 128)           # lane-dense FC output store

    # Time-major, zero-padded, flattened to (T*Bp, Dp); bf16 MXU operand.
    x_tm = jnp.transpose(x.astype(jnp.float32), (1, 0, 2))        # (T, B, D)
    x_tm = jnp.pad(x_tm, ((0, 0), (0, Bp - B), (0, Dp - D)))
    x_flat = x_tm.reshape(T * Bp, Dp).astype(jnp.bfloat16)

    def pad_gates(w2d, in_pad, dtype):
        # (in_dim, 4H) -> (in_pad, 4*Hp): each gate block (i, f, g, o) is padded
        # separately so gate k lives in lanes [k*Hp, (k+1)*Hp).  The i/f/o
        # blocks are pre-scaled by 0.5 (sigmoid(x) = 0.5*tanh(0.5x) + 0.5), so
        # the kernel applies one tanh and scalar *0.5 + 0.5, no mask arrays.
        in_dim = w2d.shape[0]
        parts = []
        for k in range(4):
            blk = w2d[:, k * H:(k + 1) * H]
            if k != 2:                       # i, f, o gates
                blk = blk * 0.5
            parts.append(jnp.pad(blk, ((0, in_pad - in_dim), (0, Hp - H))))
        return jnp.concatenate(parts, axis=-1).astype(dtype)

    inputs = [x_flat]
    for l in range(num_layers):
        d_in_pad = Dp if l == 0 else Hp
        w_ih = params[f"weight_ih_l{l}"].astype(jnp.float32).T    # (D_in, 4H)
        w_hh = params[f"weight_hh_l{l}"].astype(jnp.float32).T    # (H, 4H)
        b = (params[f"bias_ih_l{l}"]
             + params[f"bias_hh_l{l}"]).astype(jnp.float32)[None, :]  # (1, 4H)
        inputs += [pad_gates(w_ih, d_in_pad, jnp.bfloat16),
                   pad_gates(w_hh, Hp, jnp.bfloat16),
                   pad_gates(b, 1, jnp.float32)]

    w_fc = jnp.pad(params["fc_weight"].astype(jnp.float32).T,
                   ((0, Hp - H), (0, Cp - C))).astype(jnp.bfloat16)   # (Hp, Cp)
    b_fc = jnp.pad(params["fc_bias"].astype(jnp.float32)[None, :],
                   ((0, 0), (0, Cp - C)))                             # (1, Cp)
    inputs += [w_fc, b_fc]

    scratch_shapes = [pltpu.VMEM((T * Bp, 4 * Hp), jnp.float32)]      # gin_buf
    if num_layers > 1:
        scratch_shapes.append(pltpu.VMEM((T * Bp, Hp), jnp.float32))  # seq_buf

    # VMEM budget from the actual footprint (default scoped limit is only
    # 16 MiB on v5e / 32 MiB on v6e & v7x); 2x headroom, capped below physical.
    in_bytes = sum(int(a.size) * a.dtype.itemsize for a in inputs)
    out_bytes = Bp * Cp * 4
    scratch_bytes = T * Bp * 4 * Hp * 4 + (T * Bp * Hp * 4 if num_layers > 1 else 0)
    footprint = in_bytes + out_bytes + scratch_bytes
    vmem_limit = int(min(max(2 * footprint + (4 << 20), 16 << 20), 96 << 20))

    # Advisory cost hint for XLA scheduling around the custom call.
    flops = 0
    for l in range(num_layers):
        din = Dp if l == 0 else Hp
        flops += 2 * T * Bp * din * 4 * Hp     # hoisted input projection
        flops += 2 * T * Bp * Hp * 4 * Hp      # recurrent h @ w_hh
    flops += 2 * Bp * Hp * Cp                  # FC head
    transcendentals = num_layers * T * Bp * 5 * Hp   # tanh(gates) + tanh(c)
    cost = pl.CostEstimate(flops=flops, transcendentals=transcendentals,
                           bytes_accessed=in_bytes + out_bytes)

    vmem = pl.BlockSpec(memory_space=pltpu.MemorySpace.VMEM)
    kernel = make_lstm_fc_kernel(num_layers=num_layers, seq_len=T,
                                 b_pad=Bp, hidden_pad=Hp)

    out_pad = pl.pallas_call(
        kernel,
        out_shape=jax.ShapeDtypeStruct((Bp, Cp), jnp.float32),
        in_specs=[vmem] * len(inputs),
        out_specs=vmem,
        scratch_shapes=scratch_shapes,
        compiler_params=pltpu.CompilerParams(vmem_limit_bytes=vmem_limit),
        cost_estimate=cost,
    )(*inputs)

    return out_pad[:B, :C]


def match_predictor_reference(x, params, *, hidden_size, num_layers, num_classes):
    """Pure-JAX reference implementing PyTorch nn.LSTM + nn.Linear semantics."""
    B, T, D = x.shape
    H = hidden_size
    seq = x.astype(jnp.float32)
    for l in range(num_layers):
        w_ih = params[f"weight_ih_l{l}"]
        w_hh = params[f"weight_hh_l{l}"]
        b = params[f"bias_ih_l{l}"] + params[f"bias_hh_l{l}"]
        h = jnp.zeros((B, H), jnp.float32)
        c = jnp.zeros((B, H), jnp.float32)
        outs = []
        for t in range(T):
            gates = seq[:, t, :] @ w_ih.T + h @ w_hh.T + b
            i_g = jax.nn.sigmoid(gates[:, 0 * H:1 * H])
            f_g = jax.nn.sigmoid(gates[:, 1 * H:2 * H])
            g_g = jnp.tanh(gates[:, 2 * H:3 * H])
            o_g = jax.nn.sigmoid(gates[:, 3 * H:4 * H])
            c = f_g * c + i_g * g_g
            h = o_g * jnp.tanh(c)
            outs.append(h)
        seq = jnp.stack(outs, axis=1)  # (B, T, H)
    last = seq[:, -1, :]
    return last @ params["fc_weight"].T + params["fc_bias"]


def init_params(key, input_size, hidden_size, num_layers, num_classes):
    """Deterministic synthetic init (PyTorch-style uniform(-1/sqrt(H), 1/sqrt(H)))."""
    params = {}
    k = 1.0 / jnp.sqrt(hidden_size)
    keys = jax.random.split(key, 4 * num_layers + 2)
    idx = 0
    for l in range(num_layers):
        d_in = input_size if l == 0 else hidden_size
        params[f"weight_ih_l{l}"] = jax.random.uniform(
            keys[idx], (4 * hidden_size, d_in), jnp.float32, -k, k); idx += 1
        params[f"weight_hh_l{l}"] = jax.random.uniform(
            keys[idx], (4 * hidden_size, hidden_size), jnp.float32, -k, k); idx += 1
        params[f"bias_ih_l{l}"] = jax.random.uniform(
            keys[idx], (4 * hidden_size,), jnp.float32, -k, k); idx += 1
        params[f"bias_hh_l{l}"] = jax.random.uniform(
            keys[idx], (4 * hidden_size,), jnp.float32, -k, k); idx += 1
    params["fc_weight"] = jax.random.uniform(
        keys[idx], (num_classes, hidden_size), jnp.float32, -k, k); idx += 1
    params["fc_bias"] = jax.random.uniform(
        keys[idx], (num_classes,), jnp.float32, -k, k)
    return params


if __name__ == "__main__":
    def run_case(name, *, batch, seq, input_size, hidden, layers, classes, tol):
        root = jax.random.PRNGKey(0)
        k_x, k_p = jax.random.split(root)
        x = jax.random.normal(k_x, (batch, seq, input_size), jnp.float32)
        params = init_params(k_p, input_size, hidden, layers, classes)
        fwd = functools.partial(match_predictor_forward, hidden_size=hidden,
                                num_layers=layers, num_classes=classes)
        out = jax.block_until_ready(jax.jit(fwd)(x, params))
        ref = match_predictor_reference(x, params, hidden_size=hidden,
                                        num_layers=layers, num_classes=classes)
        assert out.shape == (batch, classes), (name, out.shape)
        # bf16 MXU operands vs f32 reference -> ~1e-2 relative after the
        # recurrence; the sigmoid identity itself is exact.
        assert jnp.allclose(out, ref, atol=tol, rtol=tol), (name, out, ref)

    # Primary config (module at small shapes): fully-unrolled recurrence path.
    run_case("2-layer,T=8", batch=2, seq=8, input_size=16, hidden=32,
             layers=2, classes=4, tol=2e-2)
    # Single-layer config: exercises the seq_buf-free scratch layout.
    run_case("1-layer,T=8", batch=2, seq=8, input_size=16, hidden=32,
             layers=1, classes=4, tol=2e-2)
    # Longer sequence: exercises the bounded lax.fori_loop recurrence path.
    run_case("2-layer,T=32", batch=4, seq=32, input_size=16, hidden=32,
             layers=2, classes=4, tol=5e-2)

    print("KERNEL_OK")
</pallas_src>

<mosaic_0001>
module attributes {stable_mosaic.version = 11 : i64} {
  func.func @kernel(%arg0: memref<64x128xbf16, #tpu.memory_space<vmem>>, %arg1: memref<128x512xbf16, #tpu.memory_space<vmem>>, %arg2: memref<128x512xbf16, #tpu.memory_space<vmem>>, %arg3: memref<1x512xf32, #tpu.memory_space<vmem>>, %arg4: memref<128x512xbf16, #tpu.memory_space<vmem>>, %arg5: memref<128x512xbf16, #tpu.memory_space<vmem>>, %arg6: memref<1x512xf32, #tpu.memory_space<vmem>>, %arg7: memref<128x128xbf16, #tpu.memory_space<vmem>>, %arg8: memref<1x128xf32, #tpu.memory_space<vmem>>, %arg9: memref<8x128xf32, #tpu.memory_space<vmem>>, %arg10: memref<64x512xf32, #tpu.memory_space<vmem>>, %arg11: memref<64x128xf32, #tpu.memory_space<vmem>>) attributes {dimension_semantics = [], scalar_prefetch = 0 : i64, scratch_operands = 2 : i64, tpu.core_type = #tpu.core_type<tc>} {
    %c0 = arith.constant 0 : index
    %c0_0 = arith.constant 0 : index
    %0 = vector.load %arg1[%c0, %c0_0] : memref<128x512xbf16, #tpu.memory_space<vmem>>, vector<128x512xbf16>
    %c0_1 = arith.constant 0 : index
    %c0_2 = arith.constant 0 : index
    %1 = vector.load %arg2[%c0_1, %c0_2] : memref<128x512xbf16, #tpu.memory_space<vmem>>, vector<128x512xbf16>
    %c0_3 = arith.constant 0 : index
    %c0_4 = arith.constant 0 : index
    %2 = vector.load %arg3[%c0_3, %c0_4] : memref<1x512xf32, #tpu.memory_space<vmem>>, vector<1x512xf32>
    %c0_5 = arith.constant 0 : index
    %c0_6 = arith.constant 0 : index
    %3 = vector.load %arg0[%c0_5, %c0_6] : memref<64x128xbf16, #tpu.memory_space<vmem>>, vector<64x128xbf16>
    %cst = arith.constant dense<0.000000e+00> : vector<64x512xf32>
    %4 = tpu.matmul %3, %0, %cst {dimension_numbers = #tpu.dot_dimension_numbers<[1], [0], [0], [1], [0, 0, 1, 1], [], []>} : vector<64x128xbf16>, vector<128x512xbf16>, vector<64x512xf32> -> vector<64x512xf32>
    %5 = vector.broadcast %2 : vector<1x512xf32> to vector<64x512xf32>
    %6 = arith.addf %4, %5 : vector<64x512xf32>
    %c0_7 = arith.constant 0 : index
    %c0_8 = arith.constant 0 : index
    %7 = vector.load %arg10[%c0_7, %c0_8] : memref<64x512xf32, #tpu.memory_space<vmem>>, vector<64x512xf32>
    tpu.vector_store %arg10[%c0_7, %c0_8], %6 {strides = array<i32>} : memref<64x512xf32, #tpu.memory_space<vmem>>, vector<64x512xf32>,
    %cst_9 = arith.constant 0.000000e+00 : f32
    %8 = vector.broadcast %cst_9 : f32 to vector<8x128xf32>
    %cst_10 = arith.constant 0.000000e+00 : f32
    %9 = vector.broadcast %cst_10 : f32 to vector<8x128xf32>
    %c0_11 = arith.constant 0 : index
    %c0_12 = arith.constant 0 : index
    %10 = vector.load %arg10[%c0_11, %c0_12] : memref<64x512xf32, #tpu.memory_space<vmem>>, vector<8x512xf32>
    %11 = arith.truncf %8 : vector<8x128xf32> to vector<8x128xbf16>
    %cst_13 = arith.constant dense<0.000000e+00> : vector<8x512xf32>
    %12 = tpu.matmul %11, %1, %cst_13 {dimension_numbers = #tpu.dot_dimension_numbers<[1], [0], [0], [1], [0, 0, 1, 1], [], []>} : vector<8x128xbf16>, vector<128x512xbf16>, vector<8x512xf32> -> vector<8x512xf32>
    %13 = arith.addf %10, %12 : vector<8x512xf32>
    %14 = math.tanh %13 : vector<8x512xf32>
    %15 = vector.extract_strided_slice %14 {offsets = [0, 0], sizes = [8, 128], strides = [1, 1]} : vector<8x512xf32> to vector<8x128xf32>
    %cst_14 = arith.constant 5.000000e-01 : f32
    %16 = vector.broadcast %cst_14 : f32 to vector<8x128xf32>
    %17 = arith.mulf %15, %16 : vector<8x128xf32>
    %cst_15 = arith.constant 5.000000e-01 : f32
    %18 = vector.broadcast %cst_15 : f32 to vector<8x128xf32>
    %19 = arith.addf %17, %18 : vector<8x128xf32>
    %20 = vector.extract_strided_slice %14 {offsets = [0, 128], sizes = [8, 128], strides = [1, 1]} : vector<8x512xf32> to vector<8x128xf32>
    %cst_16 = arith.constant 5.000000e-01 : f32
    %21 = vector.broadcast %cst_16 : f32 to vector<8x128xf32>
    %22 = arith.mulf %20, %21 : vector<8x128xf32>
    %cst_17 = arith.constant 5.000000e-01 : f32
    %23 = vector.broadcast %cst_17 : f32 to vector<8x128xf32>
    %24 = arith.addf %22, %23 : vector<8x128xf32>
    %25 = vector.extract_strided_slice %14 {offsets = [0, 256], sizes = [8, 128], strides = [1, 1]} : vector<8x512xf32> to vector<8x128xf32>
    %26 = vector.extract_strided_slice %14 {offsets = [0, 384], sizes = [8, 128], strides = [1, 1]} : vector<8x512xf32> to vector<8x128xf32>
    %cst_18 = arith.constant 5.000000e-01 : f32
    %27 = vector.broadcast %cst_18 : f32 to vector<8x128xf32>
    %28 = arith.mulf %26, %27 : vector<8x128xf32>
    %cst_19 = arith.constant 5.000000e-01 : f32
    %29 = vector.broadcast %cst_19 : f32 to vector<8x128xf32>
    %30 = arith.addf %28, %29 : vector<8x128xf32>
    %31 = arith.mulf %24, %9 : vector<8x128xf32>
    %32 = arith.mulf %19, %25 : vector<8x128xf32>
    %33 = arith.addf %31, %32 : vector<8x128xf32>
    %34 = math.tanh %33 : vector<8x128xf32>
    %35 = arith.mulf %30, %34 : vector<8x128xf32>
    %c0_20 = arith.constant 0 : index
    %c0_21 = arith.constant 0 : index
    %36 = vector.load %arg11[%c0_20, %c0_21] : memref<64x128xf32, #tpu.memory_space<vmem>>, vector<8x128xf32>
    tpu.vector_store %arg11[%c0_20, %c0_21], %35 {strides = array<i32>} : memref<64x128xf32, #tpu.memory_space<vmem>>, vector<8x128xf32>,
    %c8 = arith.constant 8 : index
    %c0_22 = arith.constant 0 : index
    %37 = vector.load %arg10[%c8, %c0_22] : memref<64x512xf32, #tpu.memory_space<vmem>>, vector<8x512xf32>
    %38 = arith.truncf %35 : vector<8x128xf32> to vector<8x128xbf16>
    %cst_23 = arith.constant dense<0.000000e+00> : vector<8x512xf32>
    %39 = tpu.matmul %38, %1, %cst_23 {dimension_numbers = #tpu.dot_dimension_numbers<[1], [0], [0], [1], [0, 0, 1, 1], [], []>} : vector<8x128xbf16>, vector<128x512xbf16>, vector<8x512xf32> -> vector<8x512xf32>
    %40 = arith.addf %37, %39 : vector<8x512xf32>
    %41 = math.tanh %40 : vector<8x512xf32>
    %42 = vector.extract_strided_slice %41 {offsets = [0, 0], sizes = [8, 128], strides = [1, 1]} : vector<8x512xf32> to vector<8x128xf32>
    %cst_24 = arith.constant 5.000000e-01 : f32
    %43 = vector.broadcast %cst_24 : f32 to vector<8x128xf32>
    %44 = arith.mulf %42, %43 : vector<8x128xf32>
    %cst_25 = arith.constant 5.000000e-01 : f32
    %45 = vector.broadcast %cst_25 : f32 to vector<8x128xf32>
    %46 = arith.addf %44, %45 : vector<8x128xf32>
    %47 = vector.extract_strided_slice %41 {offsets = [0, 128], sizes = [8, 128], strides = [1, 1]} : vector<8x512xf32> to vector<8x128xf32>
    %cst_26 = arith.constant 5.000000e-01 : f32
    %48 = vector.broadcast %cst_26 : f32 to vector<8x128xf32>
    %49 = arith.mulf %47, %48 : vector<8x128xf32>
    %cst_27 = arith.constant 5.000000e-01 : f32
    %50 = vector.broadcast %cst_27 : f32 to vector<8x128xf32>
    %51 = arith.addf %49, %50 : vector<8x128xf32>
    %52 = vector.extract_strided_slice %41 {offsets = [0, 256], sizes = [8, 128], strides = [1, 1]} : vector<8x512xf32> to vector<8x128xf32>
    %53 = vector.extract_strided_slice %41 {offsets = [0, 384], sizes = [8, 128], strides = [1, 1]} : vector<8x512xf32> to vector<8x128xf32>
    %cst_28 = arith.constant 5.000000e-01 : f32
    %54 = vector.broadcast %cst_28 : f32 to vector<8x128xf32>
    %55 = arith.mulf %53, %54 : vector<8x128xf32>
    %cst_29 = arith.constant 5.000000e-01 : f32
    %56 = vector.broadcast %cst_29 : f32 to vector<8x128xf32>
    %57 = arith.addf %55, %56 : vector<8x128xf32>
    %58 = arith.mulf %51, %33 : vector<8x128xf32>
    %59 = arith.mulf %46, %52 : vector<8x128xf32>
    %60 = arith.addf %58, %59 : vector<8x128xf32>
    %61 = math.tanh %60 : vector<8x128xf32>
    %62 = arith.mulf %57, %61 : vector<8x128xf32>
    %c8_30 = arith.constant 8 : index
    %c0_31 = arith.constant 0 : index
    %63 = vector.load %arg11[%c8_30, %c0_31] : memref<64x128xf32, #tpu.memory_space<vmem>>, vector<8x128xf32>
    tpu.vector_store %arg11[%c8_30, %c0_31], %62 {strides = array<i32>} : memref<64x128xf32, #tpu.memory_space<vmem>>, vector<8x128xf32>,
    %c16 = arith.constant 16 : index
    %c0_32 = arith.constant 0 : index
    %64 = vector.load %arg10[%c16, %c0_32] : memref<64x512xf32, #tpu.memory_space<vmem>>, vector<8x512xf32>
    %65 = arith.truncf %62 : vector<8x128xf32> to vector<8x128xbf16>
    %cst_33 = arith.constant dense<0.000000e+00> : vector<8x512xf32>
    %66 = tpu.matmul %65, %1, %cst_33 {dimension_numbers = #tpu.dot_dimension_numbers<[1], [0], [0], [1], [0, 0, 1, 1], [], []>} : vector<8x128xbf16>, vector<128x512xbf16>, vector<8x512xf32> -> vector<8x512xf32>
    %67 = arith.addf %64, %66 : vector<8x512xf32>
    %68 = math.tanh %67 : vector<8x512xf32>
    %69 = vector.extract_strided_slice %68 {offsets = [0, 0], sizes = [8, 128], strides = [1, 1]} : vector<8x512xf32> to vector<8x128xf32>
    %cst_34 = arith.constant 5.000000e-01 : f32
    %70 = vector.broadcast %cst_34 : f32 to vector<8x128xf32>
    %71 = arith.mulf %69, %70 : vector<8x128xf32>
    %cst_35 = arith.constant 5.000000e-01 : f32
    %72 = vector.broadcast %cst_35 : f32 to vector<8x128xf32>
    %73 = arith.addf %71, %72 : vector<8x128xf32>
    %74 = vector.extract_strided_slice %68 {offsets = [0, 128], sizes = [8, 128], strides = [1, 1]} : vector<8x512xf32> to vector<8x128xf32>
    %cst_36 = arith.constant 5.000000e-01 : f32
    %75 = vector.broadcast %cst_36 : f32 to vector<8x128xf32>
    %76 = arith.mulf %74, %75 : vector<8x128xf32>
    %cst_37 = arith.constant 5.000000e-01 : f32
    %77 = vector.broadcast %cst_37 : f32 to vector<8x128xf32>
    %78 = arith.addf %76, %77 : vector<8x128xf32>
    %79 = vector.extract_strided_slice %68 {offsets = [0, 256], sizes = [8, 128], strides = [1, 1]} : vector<8x512xf32> to vector<8x128xf32>
    %80 = vector.extract_strided_slice %68 {offsets = [0, 384], sizes = [8, 128], strides = [1, 1]} : vector<8x512xf32> to vector<8x128xf32>
    %cst_38 = arith.constant 5.000000e-01 : f32
    %81 = vector.broadcast %cst_38 : f32 to vector<8x128xf32>
    %82 = arith.mulf %80, %81 : vector<8x128xf32>
    %cst_39 = arith.constant 5.000000e-01 : f32
    %83 = vector.broadcast %cst_39 : f32 to vector<8x128xf32>
    %84 = arith.addf %82, %83 : vector<8x128xf32>
    %85 = arith.mulf %78, %60 : vector<8x128xf32>
    %86 = arith.mulf %73, %79 : vector<8x128xf32>
    %87 = arith.addf %85, %86 : vector<8x128xf32>
    %88 = math.tanh %87 : vector<8x128xf32>
    %89 = arith.mulf %84, %88 : vector<8x128xf32>
    %c16_40 = arith.constant 16 : index
    %c0_41 = arith.constant 0 : index
    %90 = vector.load %arg11[%c16_40, %c0_41] : memref<64x128xf32, #tpu.memory_space<vmem>>, vector<8x128xf32>
    tpu.vector_store %arg11[%c16_40, %c0_41], %89 {strides = array<i32>} : memref<64x128xf32, #tpu.memory_space<vmem>>, vector<8x128xf32>,
    %c24 = arith.constant 24 : index
    %c0_42 = arith.constant 0 : index
    %91 = vector.load %arg10[%c24, %c0_42] : memref<64x512xf32, #tpu.memory_space<vmem>>, vector<8x512xf32>
    %92 = arith.truncf %89 : vector<8x128xf32> to vector<8x128xbf16>
    %cst_43 = arith.constant dense<0.000000e+00> : vector<8x512xf32>
    %93 = tpu.matmul %92, %1, %cst_43 {dimension_numbers = #tpu.dot_dimension_numbers<[1], [0], [0], [1], [0, 0, 1, 1], [], []>} : vector<8x128xbf16>, vector<128x512xbf16>, vector<8x512xf32> -> vector<8x512xf32>
    %94 = arith.addf %91, %93 : vector<8x512xf32>
    %95 = math.tanh %94 : vector<8x512xf32>
    %96 = vector.extract_strided_slice %95 {offsets = [0, 0], sizes = [8, 128], strides = [1, 1]} : vector<8x512xf32> to vector<8x128xf32>
    %cst_44 = arith.constant 5.000000e-01 : f32
    %97 = vector.broadcast %cst_44 : f32 to vector<8x128xf32>
    %98 = arith.mulf %96, %97 : vector<8x128xf32>
    %cst_45 = arith.constant 5.000000e-01 : f32
    %99 = vector.broadcast %cst_45 : f32 to vector<8x128xf32>
    %100 = arith.addf %98, %99 : vector<8x128xf32>
    %101 = vector.extract_strided_slice %95 {offsets = [0, 128], sizes = [8, 128], strides = [1, 1]} : vector<8x512xf32> to vector<8x128xf32>
    %cst_46 = arith.constant 5.000000e-01 : f32
    %102 = vector.broadcast %cst_46 : f32 to vector<8x128xf32>
    %103 = arith.mulf %101, %102 : vector<8x128xf32>
    %cst_47 = arith.constant 5.000000e-01 : f32
    %104 = vector.broadcast %cst_47 : f32 to vector<8x128xf32>
    %105 = arith.addf %103, %104 : vector<8x128xf32>
    %106 = vector.extract_strided_slice %95 {offsets = [0, 256], sizes = [8, 128], strides = [1, 1]} : vector<8x512xf32> to vector<8x128xf32>
    %107 = vector.extract_strided_slice %95 {offsets = [0, 384], sizes = [8, 128], strides = [1, 1]} : vector<8x512xf32> to vector<8x128xf32>
    %cst_48 = arith.constant 5.000000e-01 : f32
    %108 = vector.broadcast %cst_48 : f32 to vector<8x128xf32>
    %109 = arith.mulf %107, %108 : vector<8x128xf32>
    %cst_49 = arith.constant 5.000000e-01 : f32
    %110 = vector.broadcast %cst_49 : f32 to vector<8x128xf32>
    %111 = arith.addf %109, %110 : vector<8x128xf32>
    %112 = arith.mulf %105, %87 : vector<8x128xf32>
    %113 = arith.mulf %100, %106 : vector<8x128xf32>
    %114 = arith.addf %112, %113 : vector<8x128xf32>
    %115 = math.tanh %114 : vector<8x128xf32>
    %116 = arith.mulf %111, %115 : vector<8x128xf32>
    %c24_50 = arith.constant 24 : index
    %c0_51 = arith.constant 0 : index
    %117 = vector.load %arg11[%c24_50, %c0_51] : memref<64x128xf32, #tpu.memory_space<vmem>>, vector<8x128xf32>
    tpu.vector_store %arg11[%c24_50, %c0_51], %116 {strides = array<i32>} : memref<64x128xf32, #tpu.memory_space<vmem>>, vector<8x128xf32>,
    %c32 = arith.constant 32 : index
    %c0_52 = arith.constant 0 : index
    %118 = vector.load %arg10[%c32, %c0_52] : memref<64x512xf32, #tpu.memory_space<vmem>>, vector<8x512xf32>
    %119 = arith.truncf %116 : vector<8x128xf32> to vector<8x128xbf16>
    %cst_53 = arith.constant dense<0.000000e+00> : vector<8x512xf32>
    %120 = tpu.matmul %119, %1, %cst_53 {dimension_numbers = #tpu.dot_dimension_numbers<[1], [0], [0], [1], [0, 0, 1, 1], [], []>} : vector<8x128xbf16>, vector<128x512xbf16>, vector<8x512xf32> -> vector<8x512xf32>
    %121 = arith.addf %118, %120 : vector<8x512xf32>
    %122 = math.tanh %121 : vector<8x512xf32>
    %123 = vector.extract_strided_slice %122 {offsets = [0, 0], sizes = [8, 128], strides = [1, 1]} : vector<8x512xf32> to vector<8x128xf32>
    %cst_54 = arith.constant 5.000000e-01 : f32
    %124 = vector.broadcast %cst_54 : f32 to vector<8x128xf32>
    %125 = arith.mulf %123, %124 : vector<8x128xf32>
    %cst_55 = arith.constant 5.000000e-01 : f32
    %126 = vector.broadcast %cst_55 : f32 to vector<8x128xf32>
    %127 = arith.addf %125, %126 : vector<8x128xf32>
    %128 = vector.extract_strided_slice %122 {offsets = [0, 128], sizes = [8, 128], strides = [1, 1]} : vector<8x512xf32> to vector<8x128xf32>
    %cst_56 = arith.constant 5.000000e-01 : f32
    %129 = vector.broadcast %cst_56 : f32 to vector<8x128xf32>
    %130 = arith.mulf %128, %129 : vector<8x128xf32>
    %cst_57 = arith.constant 5.000000e-01 : f32
    %131 = vector.broadcast %cst_57 : f32 to vector<8x128xf32>
    %132 = arith.addf %130, %131 : vector<8x128xf32>
    %133 = vector.extract_strided_slice %122 {offsets = [0, 256], sizes = [8, 128], strides = [1, 1]} : vector<8x512xf32> to vector<8x128xf32>
    %134 = vector.extract_strided_slice %122 {offsets = [0, 384], sizes = [8, 128], strides = [1, 1]} : vector<8x512xf32> to vector<8x128xf32>
    %cst_58 = arith.constant 5.000000e-01 : f32
    %135 = vector.broadcast %cst_58 : f32 to vector<8x128xf32>
    %136 = arith.mulf %134, %135 : vector<8x128xf32>
    %cst_59 = arith.constant 5.000000e-01 : f32
    %137 = vector.broadcast %cst_59 : f32 to vector<8x128xf32>
    %138 = arith.addf %136, %137 : vector<8x128xf32>
    %139 = arith.mulf %132, %114 : vector<8x128xf32>
    %140 = arith.mulf %127, %133 : vector<8x128xf32>
    %141 = arith.addf %139, %140 : vector<8x128xf32>
    %142 = math.tanh %141 : vector<8x128xf32>
    %143 = arith.mulf %138, %142 : vector<8x128xf32>
    %c32_60 = arith.constant 32 : index
    %c0_61 = arith.constant 0 : index
    %144 = vector.load %arg11[%c32_60, %c0_61] : memref<64x128xf32, #tpu.memory_space<vmem>>, vector<8x128xf32>
    tpu.vector_store %arg11[%c32_60, %c0_61], %143 {strides = array<i32>} : memref<64x128xf32, #tpu.memory_space<vmem>>, vector<8x128xf32>,
    %c40 = arith.constant 40 : index
    %c0_62 = arith.constant 0 : index
    %145 = vector.load %arg10[%c40, %c0_62] : memref<64x512xf32, #tpu.memory_space<vmem>>, vector<8x512xf32>
    %146 = arith.truncf %143 : vector<8x128xf32> to vector<8x128xbf16>
    %cst_63 = arith.constant dense<0.000000e+00> : vector<8x512xf32>
    %147 = tpu.matmul %146, %1, %cst_63 {dimension_numbers = #tpu.dot_dimension_numbers<[1], [0], [0], [1], [0, 0, 1, 1], [], []>} : vector<8x128xbf16>, vector<128x512xbf16>, vector<8x512xf32> -> vector<8x512xf32>
    %148 = arith.addf %145, %147 : vector<8x512xf32>
    %149 = math.tanh %148 : vector<8x512xf32>
    %150 = vector.extract_strided_slice %149 {offsets = [0, 0], sizes = [8, 128], strides = [1, 1]} : vector<8x512xf32> to vector<8x128xf32>
    %cst_64 = arith.constant 5.000000e-01 : f32
    %151 = vector.broadcast %cst_64 : f32 to vector<8x128xf32>
    %152 = arith.mulf %150, %151 : vector<8x128xf32>
    %cst_65 = arith.constant 5.000000e-01 : f32
    %153 = vector.broadcast %cst_65 : f32 to vector<8x128xf32>
    %154 = arith.addf %152, %153 : vector<8x128xf32>
    %155 = vector.extract_strided_slice %149 {offsets = [0, 128], sizes = [8, 128], strides = [1, 1]} : vector<8x512xf32> to vector<8x128xf32>
    %cst_66 = arith.constant 5.000000e-01 : f32
    %156 = vector.broadcast %cst_66 : f32 to vector<8x128xf32>
    %157 = arith.mulf %155, %156 : vector<8x128xf32>
    %cst_67 = arith.constant 5.000000e-01 : f32
    %158 = vector.broadcast %cst_67 : f32 to vector<8x128xf32>
    %159 = arith.addf %157, %158 : vector<8x128xf32>
    %160 = vector.extract_strided_slice %149 {offsets = [0, 256], sizes = [8, 128], strides = [1, 1]} : vector<8x512xf32> to vector<8x128xf32>
    %161 = vector.extract_strided_slice %149 {offsets = [0, 384], sizes = [8, 128], strides = [1, 1]} : vector<8x512xf32> to vector<8x128xf32>
    %cst_68 = arith.constant 5.000000e-01 : f32
    %162 = vector.broadcast %cst_68 : f32 to vector<8x128xf32>
    %163 = arith.mulf %161, %162 : vector<8x128xf32>
    %cst_69 = arith.constant 5.000000e-01 : f32
    %164 = vector.broadcast %cst_69 : f32 to vector<8x128xf32>
    %165 = arith.addf %163, %164 : vector<8x128xf32>
    %166 = arith.mulf %159, %141 : vector<8x128xf32>
    %167 = arith.mulf %154, %160 : vector<8x128xf32>
    %168 = arith.addf %166, %167 : vector<8x128xf32>
    %169 = math.tanh %168 : vector<8x128xf32>
    %170 = arith.mulf %165, %169 : vector<8x128xf32>
    %c40_70 = arith.constant 40 : index
    %c0_71 = arith.constant 0 : index
    %171 = vector.load %arg11[%c40_70, %c0_71] : memref<64x128xf32, #tpu.memory_space<vmem>>, vector<8x128xf32>
    tpu.vector_store %arg11[%c40_70, %c0_71], %170 {strides = array<i32>} : memref<64x128xf32, #tpu.memory_space<vmem>>, vector<8x128xf32>,
    %c48 = arith.constant 48 : index
    %c0_72 = arith.constant 0 : index
    %172 = vector.load %arg10[%c48, %c0_72] : memref<64x512xf32, #tpu.memory_space<vmem>>, vector<8x512xf32>
    %173 = arith.truncf %170 : vector<8x128xf32> to vector<8x128xbf16>
    %cst_73 = arith.constant dense<0.000000e+00> : vector<8x512xf32>
    %174 = tpu.matmul %173, %1, %cst_73 {dimension_numbers = #tpu.dot_dimension_numbers<[1], [0], [0], [1], [0, 0, 1, 1], [], []>} : vector<8x128xbf16>, vector<128x512xbf16>, vector<8x512xf32> -> vector<8x512xf32>
    %175 = arith.addf %172, %174 : vector<8x512xf32>
    %176 = math.tanh %175 : vector<8x512xf32>
    %177 = vector.extract_strided_slice %176 {offsets = [0, 0], sizes = [8, 128], strides = [1, 1]} : vector<8x512xf32> to vector<8x128xf32>
    %cst_74 = arith.constant 5.000000e-01 : f32
    %178 = vector.broadcast %cst_74 : f32 to vector<8x128xf32>
    %179 = arith.mulf %177, %178 : vector<8x128xf32>
    %cst_75 = arith.constant 5.000000e-01 : f32
    %180 = vector.broadcast %cst_75 : f32 to vector<8x128xf32>
    %181 = arith.addf %179, %180 : vector<8x128xf32>
    %182 = vector.extract_strided_slice %176 {offsets = [0, 128], sizes = [8, 128], strides = [1, 1]} : vector<8x512xf32> to vector<8x128xf32>
    %cst_76 = arith.constant 5.000000e-01 : f32
    %183 = vector.broadcast %cst_76 : f32 to vector<8x128xf32>
    %184 = arith.mulf %182, %183 : vector<8x128xf32>
    %cst_77 = arith.constant 5.000000e-01 : f32
    %185 = vector.broadcast %cst_77 : f32 to vector<8x128xf32>
    %186 = arith.addf %184, %185 : vector<8x128xf32>
    %187 = vector.extract_strided_slice %176 {offsets = [0, 256], sizes = [8, 128], strides = [1, 1]} : vector<8x512xf32> to vector<8x128xf32>
    %188 = vector.extract_strided_slice %176 {offsets = [0, 384], sizes = [8, 128], strides = [1, 1]} : vector<8x512xf32> to vector<8x128xf32>
    %cst_78 = arith.constant 5.000000e-01 : f32
    %189 = vector.broadcast %cst_78 : f32 to vector<8x128xf32>
    %190 = arith.mulf %188, %189 : vector<8x128xf32>
    %cst_79 = arith.constant 5.000000e-01 : f32
    %191 = vector.broadcast %cst_79 : f32 to vector<8x128xf32>
    %192 = arith.addf %190, %191 : vector<8x128xf32>
    %193 = arith.mulf %186, %168 : vector<8x128xf32>
    %194 = arith.mulf %181, %187 : vector<8x128xf32>
    %195 = arith.addf %193, %194 : vector<8x128xf32>
    %196 = math.tanh %195 : vector<8x128xf32>
    %197 = arith.mulf %192, %196 : vector<8x128xf32>
    %c48_80 = arith.constant 48 : index
    %c0_81 = arith.constant 0 : index
    %198 = vector.load %arg11[%c48_80, %c0_81] : memref<64x128xf32, #tpu.memory_space<vmem>>, vector<8x128xf32>
    tpu.vector_store %arg11[%c48_80, %c0_81], %197 {strides = array<i32>} : memref<64x128xf32, #tpu.memory_space<vmem>>, vector<8x128xf32>,
    %c56 = arith.constant 56 : index
    %c0_82 = arith.constant 0 : index
    %199 = vector.load %arg10[%c56, %c0_82] : memref<64x512xf32, #tpu.memory_space<vmem>>, vector<8x512xf32>
    %200 = arith.truncf %197 : vector<8x128xf32> to vector<8x128xbf16>
    %cst_83 = arith.constant dense<0.000000e+00> : vector<8x512xf32>
    %201 = tpu.matmul %200, %1, %cst_83 {dimension_numbers = #tpu.dot_dimension_numbers<[1], [0], [0], [1], [0, 0, 1, 1], [], []>} : vector<8x128xbf16>, vector<128x512xbf16>, vector<8x512xf32> -> vector<8x512xf32>
    %202 = arith.addf %199, %201 : vector<8x512xf32>
    %203 = math.tanh %202 : vector<8x512xf32>
    %204 = vector.extract_strided_slice %203 {offsets = [0, 0], sizes = [8, 128], strides = [1, 1]} : vector<8x512xf32> to vector<8x128xf32>
    %cst_84 = arith.constant 5.000000e-01 : f32
    %205 = vector.broadcast %cst_84 : f32 to vector<8x128xf32>
    %206 = arith.mulf %204, %205 : vector<8x128xf32>
    %cst_85 = arith.constant 5.000000e-01 : f32
    %207 = vector.broadcast %cst_85 : f32 to vector<8x128xf32>
    %208 = arith.addf %206, %207 : vector<8x128xf32>
    %209 = vector.extract_strided_slice %203 {offsets = [0, 128], sizes = [8, 128], strides = [1, 1]} : vector<8x512xf32> to vector<8x128xf32>
    %cst_86 = arith.constant 5.000000e-01 : f32
    %210 = vector.broadcast %cst_86 : f32 to vector<8x128xf32>
    %211 = arith.mulf %209, %210 : vector<8x128xf32>
    %cst_87 = arith.constant 5.000000e-01 : f32
    %212 = vector.broadcast %cst_87 : f32 to vector<8x128xf32>
    %213 = arith.addf %211, %212 : vector<8x128xf32>
    %214 = vector.extract_strided_slice %203 {offsets = [0, 256], sizes = [8, 128], strides = [1, 1]} : vector<8x512xf32> to vector<8x128xf32>
    %215 = vector.extract_strided_slice %203 {offsets = [0, 384], sizes = [8, 128], strides = [1, 1]} : vector<8x512xf32> to vector<8x128xf32>
    %cst_88 = arith.constant 5.000000e-01 : f32
    %216 = vector.broadcast %cst_88 : f32 to vector<8x128xf32>
    %217 = arith.mulf %215, %216 : vector<8x128xf32>
    %cst_89 = arith.constant 5.000000e-01 : f32
    %218 = vector.broadcast %cst_89 : f32 to vector<8x128xf32>
    %219 = arith.addf %217, %218 : vector<8x128xf32>
    %220 = arith.mulf %213, %195 : vector<8x128xf32>
    %221 = arith.mulf %208, %214 : vector<8x128xf32>
    %222 = arith.addf %220, %221 : vector<8x128xf32>
    %223 = math.tanh %222 : vector<8x128xf32>
    %224 = arith.mulf %219, %223 : vector<8x128xf32>
    %c56_90 = arith.constant 56 : index
    %c0_91 = arith.constant 0 : index
    %225 = vector.load %arg11[%c56_90, %c0_91] : memref<64x128xf32, #tpu.memory_space<vmem>>, vector<8x128xf32>
    tpu.vector_store %arg11[%c56_90, %c0_91], %224 {strides = array<i32>} : memref<64x128xf32, #tpu.memory_space<vmem>>, vector<8x128xf32>,
    %c0_92 = arith.constant 0 : index
    %c0_93 = arith.constant 0 : index
    %226 = vector.load %arg4[%c0_92, %c0_93] : memref<128x512xbf16, #tpu.memory_space<vmem>>, vector<128x512xbf16>
    %c0_94 = arith.constant 0 : index
    %c0_95 = arith.constant 0 : index
    %227 = vector.load %arg5[%c0_94, %c0_95] : memref<128x512xbf16, #tpu.memory_space<vmem>>, vector<128x512xbf16>
    %c0_96 = arith.constant 0 : index
    %c0_97 = arith.constant 0 : index
    %228 = vector.load %arg6[%c0_96, %c0_97] : memref<1x512xf32, #tpu.memory_space<vmem>>, vector<1x512xf32>
    %c0_98 = arith.constant 0 : index
    %c0_99 = arith.constant 0 : index
    %229 = vector.load %arg11[%c0_98, %c0_99] : memref<64x128xf32, #tpu.memory_space<vmem>>, vector<64x128xf32>
    %230 = arith.truncf %229 : vector<64x128xf32> to vector<64x128xbf16>
    %cst_100 = arith.constant dense<0.000000e+00> : vector<64x512xf32>
    %231 = tpu.matmul %230, %226, %cst_100 {dimension_numbers = #tpu.dot_dimension_numbers<[1], [0], [0], [1], [0, 0, 1, 1], [], []>} : vector<64x128xbf16>, vector<128x512xbf16>, vector<64x512xf32> -> vector<64x512xf32>
    %232 = vector.broadcast %228 : vector<1x512xf32> to vector<64x512xf32>
    %233 = arith.addf %231, %232 : vector<64x512xf32>
    %c0_101 = arith.constant 0 : index
    %c0_102 = arith.constant 0 : index
    %234 = vector.load %arg10[%c0_101, %c0_102] : memref<64x512xf32, #tpu.memory_space<vmem>>, vector<64x512xf32>
    tpu.vector_store %arg10[%c0_101, %c0_102], %233 {strides = array<i32>} : memref<64x512xf32, #tpu.memory_space<vmem>>, vector<64x512xf32>,
    %cst_103 = arith.constant 0.000000e+00 : f32
    %235 = vector.broadcast %cst_103 : f32 to vector<8x128xf32>
    %cst_104 = arith.constant 0.000000e+00 : f32
    %236 = vector.broadcast %cst_104 : f32 to vector<8x128xf32>
    %c0_105 = arith.constant 0 : index
    %c0_106 = arith.constant 0 : index
    %237 = vector.load %arg10[%c0_105, %c0_106] : memref<64x512xf32, #tpu.memory_space<vmem>>, vector<8x512xf32>
    %238 = arith.truncf %235 : vector<8x128xf32> to vector<8x128xbf16>
    %cst_107 = arith.constant dense<0.000000e+00> : vector<8x512xf32>
    %239 = tpu.matmul %238, %227, %cst_107 {dimension_numbers = #tpu.dot_dimension_numbers<[1], [0], [0], [1], [0, 0, 1, 1], [], []>} : vector<8x128xbf16>, vector<128x512xbf16>, vector<8x512xf32> -> vector<8x512xf32>
    %240 = arith.addf %237, %239 : vector<8x512xf32>
    %241 = math.tanh %240 : vector<8x512xf32>
    %242 = vector.extract_strided_slice %241 {offsets = [0, 0], sizes = [8, 128], strides = [1, 1]} : vector<8x512xf32> to vector<8x128xf32>
    %cst_108 = arith.constant 5.000000e-01 : f32
    %243 = vector.broadcast %cst_108 : f32 to vector<8x128xf32>
    %244 = arith.mulf %242, %243 : vector<8x128xf32>
    %cst_109 = arith.constant 5.000000e-01 : f32
    %245 = vector.broadcast %cst_109 : f32 to vector<8x128xf32>
    %246 = arith.addf %244, %245 : vector<8x128xf32>
    %247 = vector.extract_strided_slice %241 {offsets = [0, 128], sizes = [8, 128], strides = [1, 1]} : vector<8x512xf32> to vector<8x128xf32>
    %cst_110 = arith.constant 5.000000e-01 : f32
    %248 = vector.broadcast %cst_110 : f32 to vector<8x128xf32>
    %249 = arith.mulf %247, %248 : vector<8x128xf32>
    %cst_111 = arith.constant 5.000000e-01 : f32
    %250 = vector.broadcast %cst_111 : f32 to vector<8x128xf32>
    %251 = arith.addf %249, %250 : vector<8x128xf32>
    %252 = vector.extract_strided_slice %241 {offsets = [0, 256], sizes = [8, 128], strides = [1, 1]} : vector<8x512xf32> to vector<8x128xf32>
    %253 = vector.extract_strided_slice %241 {offsets = [0, 384], sizes = [8, 128], strides = [1, 1]} : vector<8x512xf32> to vector<8x128xf32>
    %cst_112 = arith.constant 5.000000e-01 : f32
    %254 = vector.broadcast %cst_112 : f32 to vector<8x128xf32>
    %255 = arith.mulf %253, %254 : vector<8x128xf32>
    %cst_113 = arith.constant 5.000000e-01 : f32
    %256 = vector.broadcast %cst_113 : f32 to vector<8x128xf32>
    %257 = arith.addf %255, %256 : vector<8x128xf32>
    %258 = arith.mulf %251, %236 : vector<8x128xf32>
    %259 = arith.mulf %246, %252 : vector<8x128xf32>
    %260 = arith.addf %258, %259 : vector<8x128xf32>
    %261 = math.tanh %260 : vector<8x128xf32>
    %262 = arith.mulf %257, %261 : vector<8x128xf32>
    %c8_114 = arith.constant 8 : index
    %c0_115 = arith.constant 0 : index
    %263 = vector.load %arg10[%c8_114, %c0_115] : memref<64x512xf32, #tpu.memory_space<vmem>>, vector<8x512xf32>
    %264 = arith.truncf %262 : vector<8x128xf32> to vector<8x128xbf16>
    %cst_116 = arith.constant dense<0.000000e+00> : vector<8x512xf32>
    %265 = tpu.matmul %264, %227, %cst_116 {dimension_numbers = #tpu.dot_dimension_numbers<[1], [0], [0], [1], [0, 0, 1, 1], [], []>} : vector<8x128xbf16>, vector<128x512xbf16>, vector<8x512xf32> -> vector<8x512xf32>
    %266 = arith.addf %263, %265 : vector<8x512xf32>
    %267 = math.tanh %266 : vector<8x512xf32>
    %268 = vector.extract_strided_slice %267 {offsets = [0, 0], sizes = [8, 128], strides = [1, 1]} : vector<8x512xf32> to vector<8x128xf32>
    %cst_117 = arith.constant 5.000000e-01 : f32
    %269 = vector.broadcast %cst_117 : f32 to vector<8x128xf32>
    %270 = arith.mulf %268, %269 : vector<8x128xf32>
    %cst_118 = arith.constant 5.000000e-01 : f32
    %271 = vector.broadcast %cst_118 : f32 to vector<8x128xf32>
    %272 = arith.addf %270, %271 : vector<8x128xf32>
    %273 = vector.extract_strided_slice %267 {offsets = [0, 128], sizes = [8, 128], strides = [1, 1]} : vector<8x512xf32> to vector<8x128xf32>
    %cst_119 = arith.constant 5.000000e-01 : f32
    %274 = vector.broadcast %cst_119 : f32 to vector<8x128xf32>
    %275 = arith.mulf %273, %274 : vector<8x128xf32>
    %cst_120 = arith.constant 5.000000e-01 : f32
    %276 = vector.broadcast %cst_120 : f32 to vector<8x128xf32>
    %277 = arith.addf %275, %276 : vector<8x128xf32>
    %278 = vector.extract_strided_slice %267 {offsets = [0, 256], sizes = [8, 128], strides = [1, 1]} : vector<8x512xf32> to vector<8x128xf32>
    %279 = vector.extract_strided_slice %267 {offsets = [0, 384], sizes = [8, 128], strides = [1, 1]} : vector<8x512xf32> to vector<8x128xf32>
    %cst_121 = arith.constant 5.000000e-01 : f32
    %280 = vector.broadcast %cst_121 : f32 to vector<8x128xf32>
    %281 = arith.mulf %279, %280 : vector<8x128xf32>
    %cst_122 = arith.constant 5.000000e-01 : f32
    %282 = vector.broadcast %cst_122 : f32 to vector<8x128xf32>
    %283 = arith.addf %281, %282 : vector<8x128xf32>
    %284 = arith.mulf %277, %260 : vector<8x128xf32>
    %285 = arith.mulf %272, %278 : vector<8x128xf32>
    %286 = arith.addf %284, %285 : vector<8x128xf32>
    %287 = math.tanh %286 : vector<8x128xf32>
    %288 = arith.mulf %283, %287 : vector<8x128xf32>
    %c16_123 = arith.constant 16 : index
    %c0_124 = arith.constant 0 : index
    %289 = vector.load %arg10[%c16_123, %c0_124] : memref<64x512xf32, #tpu.memory_space<vmem>>, vector<8x512xf32>
    %290 = arith.truncf %288 : vector<8x128xf32> to vector<8x128xbf16>
    %cst_125 = arith.constant dense<0.000000e+00> : vector<8x512xf32>
    %291 = tpu.matmul %290, %227, %cst_125 {dimension_numbers = #tpu.dot_dimension_numbers<[1], [0], [0], [1], [0, 0, 1, 1], [], []>} : vector<8x128xbf16>, vector<128x512xbf16>, vector<8x512xf32> -> vector<8x512xf32>
    %292 = arith.addf %289, %291 : vector<8x512xf32>
    %293 = math.tanh %292 : vector<8x512xf32>
    %294 = vector.extract_strided_slice %293 {offsets = [0, 0], sizes = [8, 128], strides = [1, 1]} : vector<8x512xf32> to vector<8x128xf32>
    %cst_126 = arith.constant 5.000000e-01 : f32
    %295 = vector.broadcast %cst_126 : f32 to vector<8x128xf32>
    %296 = arith.mulf %294, %295 : vector<8x128xf32>
    %cst_127 = arith.constant 5.000000e-01 : f32
    %297 = vector.broadcast %cst_127 : f32 to vector<8x128xf32>
    %298 = arith.addf %296, %297 : vector<8x128xf32>
    %299 = vector.extract_strided_slice %293 {offsets = [0, 128], sizes = [8, 128], strides = [1, 1]} : vector<8x512xf32> to vector<8x128xf32>
    %cst_128 = arith.constant 5.000000e-01 : f32
    %300 = vector.broadcast %cst_128 : f32 to vector<8x128xf32>
    %301 = arith.mulf %299, %300 : vector<8x128xf32>
    %cst_129 = arith.constant 5.000000e-01 : f32
    %302 = vector.broadcast %cst_129 : f32 to vector<8x128xf32>
    %303 = arith.addf %301, %302 : vector<8x128xf32>
    %304 = vector.extract_strided_slice %293 {offsets = [0, 256], sizes = [8, 128], strides = [1, 1]} : vector<8x512xf32> to vector<8x128xf32>
    %305 = vector.extract_strided_slice %293 {offsets = [0, 384], sizes = [8, 128], strides = [1, 1]} : vector<8x512xf32> to vector<8x128xf32>
    %cst_130 = arith.constant 5.000000e-01 : f32
    %306 = vector.broadcast %cst_130 : f32 to vector<8x128xf32>
    %307 = arith.mulf %305, %306 : vector<8x128xf32>
    %cst_131 = arith.constant 5.000000e-01 : f32
    %308 = vector.broadcast %cst_131 : f32 to vector<8x128xf32>
    %309 = arith.addf %307, %308 : vector<8x128xf32>
    %310 = arith.mulf %303, %286 : vector<8x128xf32>
    %311 = arith.mulf %298, %304 : vector<8x128xf32>
    %312 = arith.addf %310, %311 : vector<8x128xf32>
    %313 = math.tanh %312 : vector<8x128xf32>
    %314 = arith.mulf %309, %313 : vector<8x128xf32>
    %c24_132 = arith.constant 24 : index
    %c0_133 = arith.constant 0 : index
    %315 = vector.load %arg10[%c24_132, %c0_133] : memref<64x512xf32, #tpu.memory_space<vmem>>, vector<8x512xf32>
    %316 = arith.truncf %314 : vector<8x128xf32> to vector<8x128xbf16>
    %cst_134 = arith.constant dense<0.000000e+00> : vector<8x512xf32>
    %317 = tpu.matmul %316, %227, %cst_134 {dimension_numbers = #tpu.dot_dimension_numbers<[1], [0], [0], [1], [0, 0, 1, 1], [], []>} : vector<8x128xbf16>, vector<128x512xbf16>, vector<8x512xf32> -> vector<8x512xf32>
    %318 = arith.addf %315, %317 : vector<8x512xf32>
    %319 = math.tanh %318 : vector<8x512xf32>
    %320 = vector.extract_strided_slice %319 {offsets = [0, 0], sizes = [8, 128], strides = [1, 1]} : vector<8x512xf32> to vector<8x128xf32>
    %cst_135 = arith.constant 5.000000e-01 : f32
    %321 = vector.broadcast %cst_135 : f32 to vector<8x128xf32>
    %322 = arith.mulf %320, %321 : vector<8x128xf32>
    %cst_136 = arith.constant 5.000000e-01 : f32
    %323 = vector.broadcast %cst_136 : f32 to vector<8x128xf32>
    %324 = arith.addf %322, %323 : vector<8x128xf32>
    %325 = vector.extract_strided_slice %319 {offsets = [0, 128], sizes = [8, 128], strides = [1, 1]} : vector<8x512xf32> to vector<8x128xf32>
    %cst_137 = arith.constant 5.000000e-01 : f32
    %326 = vector.broadcast %cst_137 : f32 to vector<8x128xf32>
    %327 = arith.mulf %325, %326 : vector<8x128xf32>
    %cst_138 = arith.constant 5.000000e-01 : f32
    %328 = vector.broadcast %cst_138 : f32 to vector<8x128xf32>
    %329 = arith.addf %327, %328 : vector<8x128xf32>
    %330 = vector.extract_strided_slice %319 {offsets = [0, 256], sizes = [8, 128], strides = [1, 1]} : vector<8x512xf32> to vector<8x128xf32>
    %331 = vector.extract_strided_slice %319 {offsets = [0, 384], sizes = [8, 128], strides = [1, 1]} : vector<8x512xf32> to vector<8x128xf32>
    %cst_139 = arith.constant 5.000000e-01 : f32
    %332 = vector.broadcast %cst_139 : f32 to vector<8x128xf32>
    %333 = arith.mulf %331, %332 : vector<8x128xf32>
    %cst_140 = arith.constant 5.000000e-01 : f32
    %334 = vector.broadcast %cst_140 : f32 to vector<8x128xf32>
    %335 = arith.addf %333, %334 : vector<8x128xf32>
    %336 = arith.mulf %329, %312 : vector<8x128xf32>
    %337 = arith.mulf %324, %330 : vector<8x128xf32>
    %338 = arith.addf %336, %337 : vector<8x128xf32>
    %339 = math.tanh %338 : vector<8x128xf32>
    %340 = arith.mulf %335, %339 : vector<8x128xf32>
    %c32_141 = arith.constant 32 : index
    %c0_142 = arith.constant 0 : index
    %341 = vector.load %arg10[%c32_141, %c0_142] : memref<64x512xf32, #tpu.memory_space<vmem>>, vector<8x512xf32>
    %342 = arith.truncf %340 : vector<8x128xf32> to vector<8x128xbf16>
    %cst_143 = arith.constant dense<0.000000e+00> : vector<8x512xf32>
    %343 = tpu.matmul %342, %227, %cst_143 {dimension_numbers = #tpu.dot_dimension_numbers<[1], [0], [0], [1], [0, 0, 1, 1], [], []>} : vector<8x128xbf16>, vector<128x512xbf16>, vector<8x512xf32> -> vector<8x512xf32>
    %344 = arith.addf %341, %343 : vector<8x512xf32>
    %345 = math.tanh %344 : vector<8x512xf32>
    %346 = vector.extract_strided_slice %345 {offsets = [0, 0], sizes = [8, 128], strides = [1, 1]} : vector<8x512xf32> to vector<8x128xf32>
    %cst_144 = arith.constant 5.000000e-01 : f32
    %347 = vector.broadcast %cst_144 : f32 to vector<8x128xf32>
    %348 = arith.mulf %346, %347 : vector<8x128xf32>
    %cst_145 = arith.constant 5.000000e-01 : f32
    %349 = vector.broadcast %cst_145 : f32 to vector<8x128xf32>
    %350 = arith.addf %348, %349 : vector<8x128xf32>
    %351 = vector.extract_strided_slice %345 {offsets = [0, 128], sizes = [8, 128], strides = [1, 1]} : vector<8x512xf32> to vector<8x128xf32>
    %cst_146 = arith.constant 5.000000e-01 : f32
    %352 = vector.broadcast %cst_146 : f32 to vector<8x128xf32>
    %353 = arith.mulf %351, %352 : vector<8x128xf32>
    %cst_147 = arith.constant 5.000000e-01 : f32
    %354 = vector.broadcast %cst_147 : f32 to vector<8x128xf32>
    %355 = arith.addf %353, %354 : vector<8x128xf32>
    %356 = vector.extract_strided_slice %345 {offsets = [0, 256], sizes = [8, 128], strides = [1, 1]} : vector<8x512xf32> to vector<8x128xf32>
    %357 = vector.extract_strided_slice %345 {offsets = [0, 384], sizes = [8, 128], strides = [1, 1]} : vector<8x512xf32> to vector<8x128xf32>
    %cst_148 = arith.constant 5.000000e-01 : f32
    %358 = vector.broadcast %cst_148 : f32 to vector<8x128xf32>
    %359 = arith.mulf %357, %358 : vector<8x128xf32>
    %cst_149 = arith.constant 5.000000e-01 : f32
    %360 = vector.broadcast %cst_149 : f32 to vector<8x128xf32>
    %361 = arith.addf %359, %360 : vector<8x128xf32>
    %362 = arith.mulf %355, %338 : vector<8x128xf32>
    %363 = arith.mulf %350, %356 : vector<8x128xf32>
    %364 = arith.addf %362, %363 : vector<8x128xf32>
    %365 = math.tanh %364 : vector<8x128xf32>
    %366 = arith.mulf %361, %365 : vector<8x128xf32>
    %c40_150 = arith.constant 40 : index
    %c0_151 = arith.constant 0 : index
    %367 = vector.load %arg10[%c40_150, %c0_151] : memref<64x512xf32, #tpu.memory_space<vmem>>, vector<8x512xf32>
    %368 = arith.truncf %366 : vector<8x128xf32> to vector<8x128xbf16>
    %cst_152 = arith.constant dense<0.000000e+00> : vector<8x512xf32>
    %369 = tpu.matmul %368, %227, %cst_152 {dimension_numbers = #tpu.dot_dimension_numbers<[1], [0], [0], [1], [0, 0, 1, 1], [], []>} : vector<8x128xbf16>, vector<128x512xbf16>, vector<8x512xf32> -> vector<8x512xf32>
    %370 = arith.addf %367, %369 : vector<8x512xf32>
    %371 = math.tanh %370 : vector<8x512xf32>
    %372 = vector.extract_strided_slice %371 {offsets = [0, 0], sizes = [8, 128], strides = [1, 1]} : vector<8x512xf32> to vector<8x128xf32>
    %cst_153 = arith.constant 5.000000e-01 : f32
    %373 = vector.broadcast %cst_153 : f32 to vector<8x128xf32>
    %374 = arith.mulf %372, %373 : vector<8x128xf32>
    %cst_154 = arith.constant 5.000000e-01 : f32
    %375 = vector.broadcast %cst_154 : f32 to vector<8x128xf32>
    %376 = arith.addf %374, %375 : vector<8x128xf32>
    %377 = vector.extract_strided_slice %371 {offsets = [0, 128], sizes = [8, 128], strides = [1, 1]} : vector<8x512xf32> to vector<8x128xf32>
    %cst_155 = arith.constant 5.000000e-01 : f32
    %378 = vector.broadcast %cst_155 : f32 to vector<8x128xf32>
    %379 = arith.mulf %377, %378 : vector<8x128xf32>
    %cst_156 = arith.constant 5.000000e-01 : f32
    %380 = vector.broadcast %cst_156 : f32 to vector<8x128xf32>
    %381 = arith.addf %379, %380 : vector<8x128xf32>
    %382 = vector.extract_strided_slice %371 {offsets = [0, 256], sizes = [8, 128], strides = [1, 1]} : vector<8x512xf32> to vector<8x128xf32>
    %383 = vector.extract_strided_slice %371 {offsets = [0, 384], sizes = [8, 128], strides = [1, 1]} : vector<8x512xf32> to vector<8x128xf32>
    %cst_157 = arith.constant 5.000000e-01 : f32
    %384 = vector.broadcast %cst_157 : f32 to vector<8x128xf32>
    %385 = arith.mulf %383, %384 : vector<8x128xf32>
    %cst_158 = arith.constant 5.000000e-01 : f32
    %386 = vector.broadcast %cst_158 : f32 to vector<8x128xf32>
    %387 = arith.addf %385, %386 : vector<8x128xf32>
    %388 = arith.mulf %381, %364 : vector<8x128xf32>
    %389 = arith.mulf %376, %382 : vector<8x128xf32>
    %390 = arith.addf %388, %389 : vector<8x128xf32>
    %391 = math.tanh %390 : vector<8x128xf32>
    %392 = arith.mulf %387, %391 : vector<8x128xf32>
    %c48_159 = arith.constant 48 : index
    %c0_160 = arith.constant 0 : index
    %393 = vector.load %arg10[%c48_159, %c0_160] : memref<64x512xf32, #tpu.memory_space<vmem>>, vector<8x512xf32>
    %394 = arith.truncf %392 : vector<8x128xf32> to vector<8x128xbf16>
    %cst_161 = arith.constant dense<0.000000e+00> : vector<8x512xf32>
    %395 = tpu.matmul %394, %227, %cst_161 {dimension_numbers = #tpu.dot_dimension_numbers<[1], [0], [0], [1], [0, 0, 1, 1], [], []>} : vector<8x128xbf16>, vector<128x512xbf16>, vector<8x512xf32> -> vector<8x512xf32>
    %396 = arith.addf %393, %395 : vector<8x512xf32>
    %397 = math.tanh %396 : vector<8x512xf32>
    %398 = vector.extract_strided_slice %397 {offsets = [0, 0], sizes = [8, 128], strides = [1, 1]} : vector<8x512xf32> to vector<8x128xf32>
    %cst_162 = arith.constant 5.000000e-01 : f32
    %399 = vector.broadcast %cst_162 : f32 to vector<8x128xf32>
    %400 = arith.mulf %398, %399 : vector<8x128xf32>
    %cst_163 = arith.constant 5.000000e-01 : f32
    %401 = vector.broadcast %cst_163 : f32 to vector<8x128xf32>
    %402 = arith.addf %400, %401 : vector<8x128xf32>
    %403 = vector.extract_strided_slice %397 {offsets = [0, 128], sizes = [8, 128], strides = [1, 1]} : vector<8x512xf32> to vector<8x128xf32>
    %cst_164 = arith.constant 5.000000e-01 : f32
    %404 = vector.broadcast %cst_164 : f32 to vector<8x128xf32>
    %405 = arith.mulf %403, %404 : vector<8x128xf32>
    %cst_165 = arith.constant 5.000000e-01 : f32
    %406 = vector.broadcast %cst_165 : f32 to vector<8x128xf32>
    %407 = arith.addf %405, %406 : vector<8x128xf32>
    %408 = vector.extract_strided_slice %397 {offsets = [0, 256], sizes = [8, 128], strides = [1, 1]} : vector<8x512xf32> to vector<8x128xf32>
    %409 = vector.extract_strided_slice %397 {offsets = [0, 384], sizes = [8, 128], strides = [1, 1]} : vector<8x512xf32> to vector<8x128xf32>
    %cst_166 = arith.constant 5.000000e-01 : f32
    %410 = vector.broadcast %cst_166 : f32 to vector<8x128xf32>
    %411 = arith.mulf %409, %410 : vector<8x128xf32>
    %cst_167 = arith.constant 5.000000e-01 : f32
    %412 = vector.broadcast %cst_167 : f32 to vector<8x128xf32>
    %413 = arith.addf %411, %412 : vector<8x128xf32>
    %414 = arith.mulf %407, %390 : vector<8x128xf32>
    %415 = arith.mulf %402, %408 : vector<8x128xf32>
    %416 = arith.addf %414, %415 : vector<8x128xf32>
    %417 = math.tanh %416 : vector<8x128xf32>
    %418 = arith.mulf %413, %417 : vector<8x128xf32>
    %c56_168 = arith.constant 56 : index
    %c0_169 = arith.constant 0 : index
    %419 = vector.load %arg10[%c56_168, %c0_169] : memref<64x512xf32, #tpu.memory_space<vmem>>, vector<8x512xf32>
    %420 = arith.truncf %418 : vector<8x128xf32> to vector<8x128xbf16>
    %cst_170 = arith.constant dense<0.000000e+00> : vector<8x512xf32>
    %421 = tpu.matmul %420, %227, %cst_170 {dimension_numbers = #tpu.dot_dimension_numbers<[1], [0], [0], [1], [0, 0, 1, 1], [], []>} : vector<8x128xbf16>, vector<128x512xbf16>, vector<8x512xf32> -> vector<8x512xf32>
    %422 = arith.addf %419, %421 : vector<8x512xf32>
    %423 = math.tanh %422 : vector<8x512xf32>
    %424 = vector.extract_strided_slice %423 {offsets = [0, 0], sizes = [8, 128], strides = [1, 1]} : vector<8x512xf32> to vector<8x128xf32>
    %cst_171 = arith.constant 5.000000e-01 : f32
    %425 = vector.broadcast %cst_171 : f32 to vector<8x128xf32>
    %426 = arith.mulf %424, %425 : vector<8x128xf32>
    %cst_172 = arith.constant 5.000000e-01 : f32
    %427 = vector.broadcast %cst_172 : f32 to vector<8x128xf32>
    %428 = arith.addf %426, %427 : vector<8x128xf32>
    %429 = vector.extract_strided_slice %423 {offsets = [0, 128], sizes = [8, 128], strides = [1, 1]} : vector<8x512xf32> to vector<8x128xf32>
    %cst_173 = arith.constant 5.000000e-01 : f32
    %430 = vector.broadcast %cst_173 : f32 to vector<8x128xf32>
    %431 = arith.mulf %429, %430 : vector<8x128xf32>
    %cst_174 = arith.constant 5.000000e-01 : f32
    %432 = vector.broadcast %cst_174 : f32 to vector<8x128xf32>
    %433 = arith.addf %431, %432 : vector<8x128xf32>
    %434 = vector.extract_strided_slice %423 {offsets = [0, 256], sizes = [8, 128], strides = [1, 1]} : vector<8x512xf32> to vector<8x128xf32>
    %435 = vector.extract_strided_slice %423 {offsets = [0, 384], sizes = [8, 128], strides = [1, 1]} : vector<8x512xf32> to vector<8x128xf32>
    %cst_175 = arith.constant 5.000000e-01 : f32
    %436 = vector.broadcast %cst_175 : f32 to vector<8x128xf32>
    %437 = arith.mulf %435, %436 : vector<8x128xf32>
    %cst_176 = arith.constant 5.000000e-01 : f32
    %438 = vector.broadcast %cst_176 : f32 to vector<8x128xf32>
    %439 = arith.addf %437, %438 : vector<8x128xf32>
    %440 = arith.mulf %433, %416 : vector<8x128xf32>
    %441 = arith.mulf %428, %434 : vector<8x128xf32>
    %442 = arith.addf %440, %441 : vector<8x128xf32>
    %443 = math.tanh %442 : vector<8x128xf32>
    %444 = arith.mulf %439, %443 : vector<8x128xf32>
    %445 = arith.truncf %444 : vector<8x128xf32> to vector<8x128xbf16>
    %c0_177 = arith.constant 0 : index
    %c0_178 = arith.constant 0 : index
    %446 = vector.load %arg7[%c0_177, %c0_178] : memref<128x128xbf16, #tpu.memory_space<vmem>>, vector<128x128xbf16>
    %cst_179 = arith.constant dense<0.000000e+00> : vector<8x128xf32>
    %447 = tpu.matmul %445, %446, %cst_179 {dimension_numbers = #tpu.dot_dimension_numbers<[1], [0], [0], [1], [0, 0, 1, 1], [], []>} : vector<8x128xbf16>, vector<128x128xbf16>, vector<8x128xf32> -> vector<8x128xf32>
    %c0_180 = arith.constant 0 : index
    %c0_181 = arith.constant 0 : index
    %448 = vector.load %arg8[%c0_180, %c0_181] : memref<1x128xf32, #tpu.memory_space<vmem>>, vector<1x128xf32>
    %449 = vector.broadcast %448 : vector<1x128xf32> to vector<8x128xf32>
    %450 = arith.addf %447, %449 : vector<8x128xf32>
    %c0_182 = arith.constant 0 : index
    %c0_183 = arith.constant 0 : index
    %451 = vector.load %arg9[%c0_182, %c0_183] : memref<8x128xf32, #tpu.memory_space<vmem>>, vector<8x128xf32>
    tpu.vector_store %arg9[%c0_182, %c0_183], %450 {strides = array<i32>} : memref<8x128xf32, #tpu.memory_space<vmem>>, vector<8x128xf32>,
    return
  }
}

</mosaic_0001>

<bundles_post_ra>
// kernel: match_predictor_forward.1
= control target key start
LH: loop header
LB: loop body
LE: loop exit
PB: predicated region body
PF: predicated region fallthrough
CT: control target
= control target key end

     0   :  { %v5391_v1 = vmov 0   ;;  %vm3667_vm0 = vmmov 0   ;;  %s5377_s1 = inlined_call_operand.vmem [shape: bf16[128,512], index: 1, kind: input, shape index: {}]   ;;  %s5378_s0 = inlined_call_operand.vmem [shape: bf16[64,128], index: 0, kind: input, shape index: {}]   ;;  %s5379_s2 = inlined_call_operand.vmem [shape: bf16[128,512], index: 2, kind: input, shape index: {}]   ;;  %s5380_s3 = inlined_call_operand.vmem [shape: f32[1,512], index: 3, kind: input, shape index: {}]   ;;  %s5381_s4 = inlined_call_operand.vmem [shape: bf16[128,512], index: 4, kind: input, shape index: {}]   ;;  %s5382_s5 = inlined_call_operand.vmem [shape: bf16[128,512], index: 5, kind: input, shape index: {}]   ;;  %s5383_s6 = inlined_call_operand.vmem [shape: f32[1,512], index: 6, kind: input, shape index: {}]   ;;  %s5384_s7 = inlined_call_operand.vmem [shape: bf16[128,128], index: 7, kind: input, shape index: {}]   ;;  %s5385_s8 = inlined_call_operand.vmem [shape: f32[1,128], index: 8, kind: input, shape index: {}]   ;;  %s5386_s9 = inlined_call_operand.vmem [shape: f32[8,128], index: 9, kind: output, shape index: {}]  }
   0x1   :  { %v3237_v0 = vld [vmem:[%s5377_s1 + $0xe4] ss:$16 sps:$4 sm:$0xff]   ;;  %343 = vmatprep.mubr.bf16.mxu0 %v5391_v1  ;;  %416 = vmatprep.mubr.bf16.mxu1 %v5391_v1  ;;  %v3239_v2 = vld [vmem:[%s5377_s1 + $0xec] ss:$16 sps:$4 sm:$0xff]   ;;  %v3241_v3 = vld [vmem:[%s5377_s1 + $0xe0] ss:$16 sps:$4 sm:$0xff]  }
   0x2   :  { %311 = vmatprep.subr.bf16.mxu0 %v3237_v0  ;;  %v3242_v4 = vld [vmem:[%s5377_s1 + $0xe8] ss:$16 sps:$4 sm:$0xff]   ;;  %384 = vmatprep.subr.bf16.mxu1 %v3239_v2  ;;  %v3243_v5 = vld [vmem:[%s5377_s1 + $0xc4] ss:$16 sps:$4 sm:$0xff]   ;;  %v3245_v6 = vld [vmem:[%s5377_s1 + $0xcc] ss:$16 sps:$4 sm:$0xff]  }
   0x3   :  { %312 = vmatpush1.bf16.msra.mxu0 %v3241_v3  ;;  %385 = vmatpush1.bf16.msra.mxu1 %v3242_v4  ;;  %v3247_v7 = vld [vmem:[%s5377_s1 + $0xc0] ss:$16 sps:$4 sm:$0xff]   ;;  %v3248_v8 = vld [vmem:[%s5377_s1 + $0xc8] ss:$16 sps:$4 sm:$0xff]   ;;  %v3249_v9 = vld [vmem:[%s5377_s1 + $0xa4] ss:$16 sps:$4 sm:$0xff]  }
   0x4   :  { %313 = vmatprep.subr.bf16.mxu0 %v3243_v5  ;;  %386 = vmatprep.subr.bf16.mxu1 %v3245_v6  ;;  %v3251_v10 = vld [vmem:[%s5377_s1 + $0xac] ss:$16 sps:$4 sm:$0xff]   ;;  %v3253_v11 = vld [vmem:[%s5377_s1 + $0xa0] ss:$16 sps:$4 sm:$0xff]   ;;  %v3254_v12 = vld [vmem:[%s5377_s1 + $0xa8] ss:$16 sps:$4 sm:$0xff]   ;;  %v107_v6 = vlaneseq }
   0x5   :  { %v3255_v13 = vld [vmem:[%s5377_s1 + $0x84] ss:$16 sps:$4 sm:$0xff]   ;;  %v3257_v14 = vld [vmem:[%s5377_s1 + $0x8c] ss:$16 sps:$4 sm:$0xff]   ;;  %v3259_v15 = vld [vmem:[%s5377_s1 + $0x80] ss:$16 sps:$4 sm:$0xff]  }
   0x6   :  { %v3260_v16 = vld [vmem:[%s5377_s1 + $0x88] ss:$16 sps:$4 sm:$0xff]   ;;  %v3261_v17 = vld [vmem:[%s5377_s1 + $0x64] ss:$16 sps:$4 sm:$0xff]   ;;  %v3263_v18 = vld [vmem:[%s5377_s1 + $0x6c] ss:$16 sps:$4 sm:$0xff]  }
   0x7   :  { %314 = vmatpush1.bf16.msra.mxu0 %v3247_v7  ;;  %387 = vmatpush1.bf16.msra.mxu1 %v3248_v8  ;;  %v3265_v19 = vld [vmem:[%s5377_s1 + $0x60] ss:$16 sps:$4 sm:$0xff]   ;;  %v3266_v20 = vld [vmem:[%s5377_s1 + $0x68] ss:$16 sps:$4 sm:$0xff]   ;;  %v3267_v21 = vld [vmem:[%s5377_s1 + $0x44] ss:$16 sps:$4 sm:$0xff]  }
   0x8   :  { %315 = vmatprep.subr.bf16.mxu0 %v3249_v9  ;;  %388 = vmatprep.subr.bf16.mxu1 %v3251_v10  ;;  %v3269_v22 = vld [vmem:[%s5377_s1 + $0x4c] ss:$16 sps:$4 sm:$0xff]   ;;  %v3271_v23 = vld [vmem:[%s5377_s1 + $0x40] ss:$16 sps:$4 sm:$0xff]   ;;  %v3272_v24 = vld [vmem:[%s5377_s1 + $0x48] ss:$16 sps:$4 sm:$0xff]  }
   0x9   :  { %v3273_v25 = vld [vmem:[%s5377_s1 + $0x24] ss:$16 sps:$4 sm:$0xff]   ;;  %v3275_v26 = vld [vmem:[%s5377_s1 + $0x2c] ss:$16 sps:$4 sm:$0xff]   ;;  %v3277_v27 = vld [vmem:[%s5377_s1 + $0x20] ss:$16 sps:$4 sm:$0xff]  }
   0xa   :  { %v3278_v28 = vld [vmem:[%s5377_s1 + $0x28] ss:$16 sps:$4 sm:$0xff]   ;;  %v3279_v29 = vld [vmem:[%s5377_s1 + $0x4] ss:$16 sps:$4 sm:$0xff]   ;;  %v3281_v30 = vld [vmem:[%s5377_s1 + $0xc] ss:$16 sps:$4 sm:$0xff]  }
   0xb   :  { %316 = vmatpush1.bf16.msra.mxu0 %v3253_v11  ;;  %389 = vmatpush1.bf16.msra.mxu1 %v3254_v12  ;;  %v3283_v31 = vld [vmem:[%s5377_s1] ss:$16 sps:$4 sm:$0xff]   ;;  %v3284_v32 = vld [vmem:[%s5377_s1 + $0x8] ss:$16 sps:$4 sm:$0xff]   ;;  %v3819_v33 = vld [vmem:[%s5379_s2 + $0xe4] ss:$16 sps:$4 sm:$0xff]  }
   0xc   :  { %317 = vmatprep.subr.bf16.mxu0 %v3255_v13  ;;  %390 = vmatprep.subr.bf16.mxu1 %v3257_v14  ;;  %v3824_v34 = vld [vmem:[%s5379_s2 + $0xec] ss:$16 sps:$4 sm:$0xff]   ;;  %v3285_v35 = vld [vmem:[%s5378_s0] sm:$0xff]   ;;  %v3837_v37 = vld [vmem:[%s5379_s2 + $0xe8] ss:$16 sps:$4 sm:$0xff]   ;;  %v4066_v7 = vshrl.u32 %v107_v6, 7 }
   0xd   :  { %v3832_v36 = vld [vmem:[%s5379_s2 + $0xe0] ss:$16 sps:$4 sm:$0xff]   ;;  %v3844_v38 = vld [vmem:[%s5379_s2 + $0xc4] ss:$16 sps:$4 sm:$0xff]   ;;  %v3849_v39 = vld [vmem:[%s5379_s2 + $0xcc] ss:$16 sps:$4 sm:$0xff]  }
   0xe   :  { %v3854_v40 = vld [vmem:[%s5379_s2 + $0xc0] ss:$16 sps:$4 sm:$0xff]   ;;  %v3861_v41 = vld [vmem:[%s5379_s2 + $0xc8] ss:$16 sps:$4 sm:$0xff]   ;;  %v3868_v42 = vld [vmem:[%s5379_s2 + $0xa4] ss:$16 sps:$4 sm:$0xff]  }
   0xf   :  { %318 = vmatpush1.bf16.msra.mxu0 %v3259_v15  ;;  %391 = vmatpush1.bf16.msra.mxu1 %v3260_v16  ;;  %v3873_v43 = vld [vmem:[%s5379_s2 + $0xac] ss:$16 sps:$4 sm:$0xff]   ;;  %v3883_v45 = vld [vmem:[%s5379_s2 + $0xa0] ss:$16 sps:$4 sm:$0xff]   ;;  %v3888_v46 = vld [vmem:[%s5379_s2 + $0xa8] ss:$16 sps:$4 sm:$0xff]  }
  0x10   :  { %319 = vmatprep.subr.bf16.mxu0 %v3261_v17  ;;  %392 = vmatprep.subr.bf16.mxu1 %v3263_v18  ;;  %v3298_v44 = vld [vmem:[%s5378_s0 + $0x8] sm:$0xff]   ;;  %v3895_v47 = vld [vmem:[%s5379_s2 + $0x84] ss:$16 sps:$4 sm:$0xff]   ;;  %v3907_v49 = vld [vmem:[%s5379_s2 + $0x80] ss:$16 sps:$4 sm:$0xff]   ;;  %5395 = vst [vmem:[#allocation4_spill] sm:$0xff] %v4066_v7 }
  0x11   :  { %v3902_v48 = vld [vmem:[%s5379_s2 + $0x8c] ss:$16 sps:$4 sm:$0xff]   ;;  %v3912_v50 = vld [vmem:[%s5379_s2 + $0x88] ss:$16 sps:$4 sm:$0xff]   ;;  %v3919_v51 = vld [vmem:[%s5379_s2 + $0x64] ss:$16 sps:$4 sm:$0xff]  }
  0x12   :  { %v3926_v52 = vld [vmem:[%s5379_s2 + $0x6c] ss:$16 sps:$4 sm:$0xff]   ;;  %v3311_v53 = vld [vmem:[%s5378_s0 + $0x10] sm:$0xff]   ;;  %v3943_v55 = vld [vmem:[%s5379_s2 + $0x68] ss:$16 sps:$4 sm:$0xff]   ;;  %v5388_v8 = vsub.s32 2, %v4066_v7 }
  0x13   :  { %320 = vmatpush1.bf16.msra.mxu0 %v3265_v19  ;;  %393 = vmatpush1.bf16.msra.mxu1 %v3266_v20  ;;  %v3938_v54 = vld [vmem:[%s5379_s2 + $0x60] ss:$16 sps:$4 sm:$0xff]   ;;  %v3950_v56 = vld [vmem:[%s5379_s2 + $0x44] ss:$16 sps:$4 sm:$0xff]   ;;  %v3955_v57 = vld [vmem:[%s5379_s2 + $0x4c] ss:$16 sps:$4 sm:$0xff]  }
  0x14   :  { %321 = vmatprep.subr.bf16.mxu0 %v3267_v21  ;;  %394 = vmatprep.subr.bf16.mxu1 %v3269_v22  ;;  %v3962_v58 = vld [vmem:[%s5379_s2 + $0x40] ss:$16 sps:$4 sm:$0xff]   ;;  %v3967_v59 = vld [vmem:[%s5379_s2 + $0x48] ss:$16 sps:$4 sm:$0xff]   ;;  %v3974_v60 = vld [vmem:[%s5379_s2 + $0x24] ss:$16 sps:$4 sm:$0xff]  }
  0x15   :  { %v3979_v61 = vld [vmem:[%s5379_s2 + $0x2c] ss:$16 sps:$4 sm:$0xff]   ;;  %v3991_v63 = vld [vmem:[%s5379_s2 + $0x20] ss:$16 sps:$4 sm:$0xff]   ;;  %v3996_v0 = vld [vmem:[%s5379_s2 + $0x28] ss:$16 sps:$4 sm:$0xff]  }
  0x16   :  { %v3324_v62 = vld [vmem:[%s5378_s0 + $0x18] sm:$0xff]   ;;  %v4003_v2 = vld [vmem:[%s5379_s2 + $0x4] ss:$16 sps:$4 sm:$0xff]   ;;  %v4015_v4 = vld [vmem:[%s5379_s2] ss:$16 sps:$4 sm:$0xff]   ;;  %v5390_v9 = vsub.s32 0, %v4066_v7 }
  0x17   :  { %322 = vmatpush1.bf16.msra.mxu0 %v3271_v23  ;;  %395 = vmatpush1.bf16.msra.mxu1 %v3272_v24  ;;  %v4008_v3 = vld [vmem:[%s5379_s2 + $0xc] ss:$16 sps:$4 sm:$0xff]   ;;  %v4020_v5 = vld [vmem:[%s5379_s2 + $0x8] ss:$16 sps:$4 sm:$0xff]   ;;  %v5387_v10 = vsub.s32 3, %v4066_v7  ;;  %v5389_v15 = vsub.s32 1, %v4066_v7 }
  0x18   :  { %323 = vmatprep.subr.bf16.mxu0 %v3273_v25  ;;  %396 = vmatprep.subr.bf16.mxu1 %v3275_v26  ;;  %v97_v11 = vld [vmem:[%s5380_s3] sm:$0xf] }
  0x19   :  { %v4080_v14 = vrot.slane %v97_v11, %v5388_v8  ;;  %v110_v18 = vrot.slane %v97_v11, %v5390_v9  ;;  %v4091_v19 = vrot.slane %v97_v11, %v5387_v10  ;;  %v114_v22 = vrot.slane %v97_v11, %v5389_v15 }
  0x1b   :  { %324 = vmatpush1.bf16.msra.mxu0 %v3277_v27  ;;  %397 = vmatpush1.bf16.msra.mxu1 %v3278_v28 }
  0x1c   :  { %325 = vmatprep.subr.bf16.mxu0 %v3279_v29  ;;  %398 = vmatprep.subr.bf16.mxu1 %v3281_v30 }
  0x1f   :  { %326 = vmatpush1.bf16.msra.mxu0 %v3283_v31  ;;  %399 = vmatpush1.bf16.msra.mxu1 %v3284_v32 }
  0x20   :  { %653 = vmatprep.subr.bf16.mxu0 %v3819_v33  ;;  %694 = vmatprep.subr.bf16.mxu1 %v3824_v34 }
  0x22   :  { %344 = vmatmul.mubr.bf16.vlgmr.msra.gmra.mxu0 %v3285_v35  ;;  %417 = vmatmul.mubr.bf16.vlgmr.msra.gmra.mxu1 %v3285_v35 }
  0x23   :  { %654 = vmatpush1.bf16.msra.mxu0 %v3832_v36  ;;  %695 = vmatpush1.bf16.msra.mxu1 %v3837_v37 }
  0x24   :  { %655 = vmatprep.subr.bf16.mxu0 %v3844_v38  ;;  %696 = vmatprep.subr.bf16.mxu1 %v3849_v39 }
  0x25   :  { %353 = vmatprep.mubr.bf16.mxu0 %v5391_v1  ;;  %426 = vmatprep.mubr.bf16.mxu1 %v5391_v1 }
  0x27   :  { %656 = vmatpush1.bf16.msra.mxu0 %v3854_v40  ;;  %697 = vmatpush1.bf16.msra.mxu1 %v3861_v41 }
  0x28   :  { %657 = vmatprep.subr.bf16.mxu0 %v3868_v42  ;;  %698 = vmatprep.subr.bf16.mxu1 %v3873_v43 }
  0x2a   :  { %354 = vmatmul.mubr.bf16.gmra.mxu0 %v3298_v44  ;;  %427 = vmatmul.mubr.bf16.gmra.mxu1 %v3298_v44 }
  0x2b   :  { %658 = vmatpush1.bf16.msra.mxu0 %v3883_v45  ;;  %699 = vmatpush1.bf16.msra.mxu1 %v3888_v46 }
  0x2c   :  { %659 = vmatprep.subr.bf16.mxu0 %v3895_v47  ;;  %700 = vmatprep.subr.bf16.mxu1 %v3902_v48 }
  0x2d   :  { %363 = vmatprep.mubr.bf16.mxu0 %v5391_v1  ;;  %436 = vmatprep.mubr.bf16.mxu1 %v5391_v1 }
  0x2f   :  { %660 = vmatpush1.bf16.msra.mxu0 %v3907_v49  ;;  %701 = vmatpush1.bf16.msra.mxu1 %v3912_v50 }
  0x30   :  { %661 = vmatprep.subr.bf16.mxu0 %v3919_v51  ;;  %702 = vmatprep.subr.bf16.mxu1 %v3926_v52 }
  0x32   :  { %364 = vmatmul.mubr.bf16.gmra.mxu0 %v3311_v53  ;;  %437 = vmatmul.mubr.bf16.gmra.mxu1 %v3311_v53 }
  0x33   :  { %662 = vmatpush1.bf16.msra.mxu0 %v3938_v54  ;;  %703 = vmatpush1.bf16.msra.mxu1 %v3943_v55 }
  0x34   :  { %663 = vmatprep.subr.bf16.mxu0 %v3950_v56  ;;  %704 = vmatprep.subr.bf16.mxu1 %v3955_v57 }
  0x35   :  { %373 = vmatprep.mubr.bf16.mxu0 %v5391_v1  ;;  %446 = vmatprep.mubr.bf16.mxu1 %v5391_v1 }
  0x37   :  { %664 = vmatpush1.bf16.msra.mxu0 %v3962_v58  ;;  %705 = vmatpush1.bf16.msra.mxu1 %v3967_v59 }
  0x38   :  { %665 = vmatprep.subr.bf16.mxu0 %v3974_v60  ;;  %706 = vmatprep.subr.bf16.mxu1 %v3979_v61 }
  0x3a   :  { %374 = vmatmul.mubr.bf16.gmra.mxu0 %v3324_v62  ;;  %447 = vmatmul.mubr.bf16.gmra.mxu1 %v3324_v62 }
  0x3b   :  { %666 = vmatpush1.bf16.msra.mxu0 %v3991_v63  ;;  %707 = vmatpush1.bf16.msra.mxu1 %v3996_v0 }
  0x3c   :  { %667 = vmatprep.subr.bf16.mxu0 %v4003_v2  ;;  %708 = vmatprep.subr.bf16.mxu1 %v4008_v3 }
  0x3d   :  { %685 = vmatprep.mubr.bf16.mxu0 %v5391_v1  ;;  %726 = vmatprep.mubr.bf16.mxu1 %v5391_v1 }
  0x3f   :  { %668 = vmatpush1.bf16.msra.mxu0 %v4015_v4  ;;  %709 = vmatpush1.bf16.msra.mxu1 %v4020_v5 }
  0x40   :  { %760 = vmatprep.subr.bf16.mxu0 %v3819_v33  ;;  %801 = vmatprep.subr.bf16.mxu1 %v3824_v34 }
  0x42   :  { %686 = vmatmul.mubr.bf16.vlgmr.msra.gmra.mxu0 %v5391_v1  ;;  %727 = vmatmul.mubr.bf16.vlgmr.msra.gmra.mxu1 %v5391_v1 }
  0x43   :  { %761 = vmatpush1.bf16.msra.mxu0 %v3832_v36  ;;  %802 = vmatpush1.bf16.msra.mxu1 %v3837_v37 }
  0x44   :  { %762 = vmatprep.subr.bf16.mxu0 %v3844_v38  ;;  %803 = vmatprep.subr.bf16.mxu1 %v3849_v39 }
  0x45   :  { %792 = vmatprep.mubr.bf16.mxu0 %v5391_v1  ;;  %833 = vmatprep.mubr.bf16.mxu1 %v5391_v1 }
  0x47   :  { %763 = vmatpush1.bf16.msra.mxu0 %v3854_v40  ;;  %804 = vmatpush1.bf16.msra.mxu1 %v3861_v41 }
  0x48   :  { %764 = vmatprep.subr.bf16.mxu0 %v3868_v42  ;;  %805 = vmatprep.subr.bf16.mxu1 %v3873_v43 }
  0x4b   :  { %765 = vmatpush1.bf16.msra.mxu0 %v3883_v45  ;;  %806 = vmatpush1.bf16.msra.mxu1 %v3888_v46 }
  0x4c   :  { %766 = vmatprep.subr.bf16.mxu0 %v3895_v47  ;;  %807 = vmatprep.subr.bf16.mxu1 %v3902_v48 }
  0x4f   :  { %767 = vmatpush1.bf16.msra.mxu0 %v3907_v49  ;;  %808 = vmatpush1.bf16.msra.mxu1 %v3912_v50 }
  0x50   :  { %768 = vmatprep.subr.bf16.mxu0 %v3919_v51  ;;  %809 = vmatprep.subr.bf16.mxu1 %v3926_v52 }
  0x53   :  { %769 = vmatpush1.bf16.msra.mxu0 %v3938_v54  ;;  %810 = vmatpush1.bf16.msra.mxu1 %v3943_v55 }
  0x54   :  { %770 = vmatprep.subr.bf16.mxu0 %v3950_v56  ;;  %811 = vmatprep.subr.bf16.mxu1 %v3955_v57 }
  0x57   :  { %771 = vmatpush1.bf16.msra.mxu0 %v3962_v58  ;;  %812 = vmatpush1.bf16.msra.mxu1 %v3967_v59 }
  0x58   :  { %772 = vmatprep.subr.bf16.mxu0 %v3974_v60  ;;  %813 = vmatprep.subr.bf16.mxu1 %v3979_v61 }
  0x5b   :  { %773 = vmatpush1.bf16.msra.mxu0 %v3991_v63  ;;  %814 = vmatpush1.bf16.msra.mxu1 %v3996_v0 }
  0x5c   :  { %774 = vmatprep.subr.bf16.mxu0 %v4003_v2  ;;  %815 = vmatprep.subr.bf16.mxu1 %v4008_v3 }
  0x5f   :  { %775 = vmatpush1.bf16.msra.mxu0 %v4015_v4  ;;  %816 = vmatpush1.bf16.msra.mxu1 %v4020_v5 }
  0x60   :  { %867 = vmatprep.subr.bf16.mxu0 %v3819_v33  ;;  %908 = vmatprep.subr.bf16.mxu1 %v3824_v34 }
  0xe2   :  { %v4074_v12 = vpop.f32.mrf.mxu0  ;;  %v4076_v13 = vpop.f32.mrf.mxu1 }
  0xe4   :  { %v4083_v16 = vpop.f32.mrf.mxu0  ;;  %v4085_v17 = vpop.f32.mrf.mxu1 }
  0xe6   :  { %v349_v20 = vpop.f32.mrf.mxu0  ;;  %v422_v21 = vpop.f32.mrf.mxu1 }
  0xe7   :  { %v4095_v23 = vadd.f32 %v349_v20, %v110_v18  ;;  %v4098_v24 = vadd.f32 %v422_v21, %v4080_v14 }
  0xe8   :  { %v351_v25 = vpop.f32.mrf.mxu0  ;;  %v424_v26 = vpop.f32.mrf.mxu1 }
  0xe9   :  { %v4100_v27 = vadd.f32 %v351_v25, %v114_v22  ;;  %v4103_v28 = vadd.f32 %v424_v26, %v4091_v19 }
  0xea   :  { %v355_v29 = vpop.f32.mrf.mxu0  ;;  %v428_v30 = vpop.f32.mrf.mxu1 }
  0xeb   :  { %v4105_v31 = vadd.f32 %v355_v29, %v110_v18  ;;  %v4108_v32 = vadd.f32 %v428_v30, %v4080_v14 }
  0xec   :  { %v357_v35 = vpop.f32.mrf.mxu0  ;;  %v430_v44 = vpop.f32.mrf.mxu1 }
  0xed   :  { %v4110_v53 = vadd.f32 %v357_v35, %v114_v22  ;;  %v4113_v62 = vadd.f32 %v430_v44, %v4091_v19 }
  0xee   :  { %v359_v6 = vpop.f32.mrf.mxu0  ;;  %v432_v11 = vpop.f32.mrf.mxu1 }
  0xef   :  { %v4115_v20 = vadd.f32 %v359_v6, %v110_v18  ;;  %v4118_v21 = vadd.f32 %v432_v11, %v4080_v14 }
  0xf0   :  { %v361_v25 = vpop.f32.mrf.mxu0  ;;  %v434_v26 = vpop.f32.mrf.mxu1 }
  0xf1   :  { %5396 = vst [vmem:[#allocation5_spill] sm:$0xff] %v4118_v21  ;;  %v4120_v29 = vadd.f32 %v361_v25, %v114_v22  ;;  %v4123_v30 = vadd.f32 %v434_v26, %v4091_v19 }
  0xf2   :  { %v365_v10 = vpop.f32.mrf.mxu0  ;;  %v438_v35 = vpop.f32.mrf.mxu1 }
  0xf3   :  { %5397 = vst [vmem:[#allocation6_spill] sm:$0xff] %v4120_v29  ;;  %5398 = vst [vmem:[#allocation7_spill] sm:$0xff] %v4123_v30  ;;  %v4125_v8 = vadd.f32 %v365_v10, %v110_v18  ;;  %v4128_v44 = vadd.f32 %v438_v35, %v4080_v14 }
  0xf4   :  { %v367_v15 = vpop.f32.mrf.mxu0  ;;  %v440_v6 = vpop.f32.mrf.mxu1 }
  0xf5   :  { %5399 = vst [vmem:[#allocation8_spill] sm:$0xff] %v4125_v8  ;;  %5400 = vst [vmem:[#allocation9_spill] sm:$0xff] %v4128_v44  ;;  %v4130_v9 = vadd.f32 %v367_v15, %v114_v22  ;;  %v4133_v11 = vadd.f32 %v440_v6, %v4091_v19 }
  0xf6   :  { %v369_v1 = vpop.f32.mrf.mxu0  ;;  %v442_v25 = vpop.f32.mrf.mxu1 }
  0xf7   :  { %5401 = vst [vmem:[#allocation10_spill] sm:$0xff] %v4130_v9  ;;  %5402 = vst [vmem:[#allocation11_spill] sm:$0xff] %v4133_v11  ;;  %v4135_v7 = vadd.f32 %v369_v1, %v110_v18  ;;  %v4138_v26 = vadd.f32 %v442_v25, %v4080_v14 }
  0xf8   :  { %v371_v30 = vpop.f32.mrf.mxu0  ;;  %v444_v10 = vpop.f32.mrf.mxu1 }
  0xf9   :  { %5403 = vst [vmem:[#allocation12_spill] sm:$0xff] %v4135_v7  ;;  %5404 = vst [vmem:[#allocation13_spill] sm:$0xff] %v4138_v26  ;;  %v4140_v8 = vadd.f32 %v371_v30, %v114_v22  ;;  %v4143_v35 = vadd.f32 %v444_v10, %v4091_v19 }
  0xfa   :  { %v375_v44 = vpop.f32.mrf.mxu0  ;;  %v448_v15 = vpop.f32.mrf.mxu1 }
  0xfb   :  { %5405 = vst [vmem:[#allocation14_spill] sm:$0xff] %v4140_v8  ;;  %5406 = vst [vmem:[#allocation15_spill] sm:$0xff] %v4143_v35  ;;  %v4145_v9 = vadd.f32 %v375_v44, %v110_v18  ;;  %v4148_v6 = vadd.f32 %v448_v15, %v4080_v14 }
  0xfc   :  { %v377_v11 = vpop.f32.mrf.mxu0  ;;  %v450_v1 = vpop.f32.mrf.mxu1 }
  0xfd   :  { %5407 = vst [vmem:[#allocation16_spill] sm:$0xff] %v4145_v9  ;;  %5408 = vst [vmem:[#allocation17_spill] sm:$0xff] %v4148_v6  ;;  %v4150_v7 = vadd.f32 %v377_v11, %v114_v22  ;;  %v4153_v25 = vadd.f32 %v450_v1, %v4091_v19  ;;  %v346_v9 = vadd.f32 %v4074_v12, %v110_v18 }
  0xfe   :  { %v379_v26 = vpop.f32.mrf.mxu0  ;;  %v452_v30 = vpop.f32.mrf.mxu1  ;;  %v348_v1 = vadd.f32 %v4083_v16, %v114_v22 }
  0xff   :  { %5409 = vst [vmem:[#allocation18_spill] sm:$0xff] %v4150_v7  ;;  %5410 = vst [vmem:[#allocation19_spill] sm:$0xff] %v4153_v25  ;;  %v4155_v8 = vadd.f32 %v379_v26, %v110_v18  ;;  %v4158_v10 = vadd.f32 %v452_v30, %v4080_v14  ;;  %v419_v30 = vadd.f32 %v4076_v13, %v4080_v14 }
 0x100   :  { %v381_v35 = vpop.f32.mrf.mxu0  ;;  %v454_v44 = vpop.f32.mrf.mxu1 }
 0x101   :  { %5411 = vst [vmem:[#allocation20_spill] sm:$0xff] %v4155_v8  ;;  %5412 = vst [vmem:[#allocation21_spill] sm:$0xff] %v4158_v10  ;;  %v4161_v15 = vadd.f32 %v381_v35, %v114_v22  ;;  %v4164_v6 = vadd.f32 %v454_v44, %v4091_v19  ;;  %v421_v44 = vadd.f32 %v4085_v17, %v4091_v19 }
 0x102   :  { %v687_v11 = vpop.f32.mrf.mxu0  ;;  %v728_v7 = vpop.f32.mrf.mxu1 }
 0x103   :  { %5413 = vst [vmem:[#allocation22_spill] sm:$0xff] %v4161_v15  ;;  %5414 = vst [vmem:[#allocation23_spill] sm:$0xff] %v4164_v6  ;;  %v735_v25 = vadd.f32 %v687_v11, %v346_v9  ;;  %v737_v12 = vadd.f32 %v728_v7, %v419_v30 }
 0x104   :  { %v689_v29 = vpop.f32.mrf.mxu0  ;;  %v730_v26 = vpop.f32.mrf.mxu1 }
 0x105   :  { %3441 = vtanh.f32 %v735_v25  ;;  %v736_v10 = vadd.f32 %v689_v29, %v348_v1  ;;  %v738_v6 = vadd.f32 %v730_v26, %v421_v44 }
 0x106   :  { %v691_v8 = vpop.f32.mrf.mxu0  ;;  %v732_v21 = vpop.f32.mrf.mxu1 }
 0x107   :  { %3443 = vtanh.f32 %v736_v10 }
 0x108   :  { %v692_v18 = vpop.f32.mrf.mxu0  ;;  %v733_v35 = vpop.f32.mrf.mxu1  ;;  %3445 = vtanh.f32 %v737_v12 }
 0x109   :  { %3447 = vtanh.f32 %v738_v6  ;;  %v5415_v6 = vmov 0  }
 0x112   :  { %v3442_v16 = vpop.eup %3441 }
 0x113   :  { %v743_v9 = vmul.f32 0.5, %v3442_v16 }
 0x114   :  { %v3444_v22 = vpop.eup %3443 }
 0x115   :  { %v744_v11 = vadd.f32 0.5, %v743_v9  ;;  %v745_v15 = vmul.f32 0.5, %v3444_v22  ;;  %v3446_v14 = vpop.eup %3445 }
 0x116   :  { %v3448_v7 = vpop.eup %3447 }
 0x117   :  { %v746_v13 = vadd.f32 0.5, %v745_v15  ;;  %v750_v8 = vmul.f32 %v3446_v14, %v744_v11  ;;  %v747_v25 = vmul.f32 0.5, %v3448_v7 }
 0x119   :  { %v749_v29 = vmul.f32 0.0, %v746_v13  ;;  %v748_v10 = vadd.f32 0.5, %v747_v25 }
 0x11b   :  { %v4171_v21 = vadd.f32 %v750_v8, %v749_v29 }
 0x11d   :  { %3449 = vtanh.f32 %v4171_v21 }
 0x12a   :  { %v3450_v1 = vpop.eup %3449 }
 0x12b   :  { %v4174_v17 = vmul.f32 %v3450_v1, %v748_v10 }
 0x12d   :  { %v759_v19 = vpack.c.bf16 %v4174_v17, %v4174_v17 }
 0x12f   :  { %793 = vmatmul.mubr.bf16.vlgmr.msra.gmra.mxu0 %v759_v19  ;;  %834 = vmatmul.mubr.bf16.vlgmr.msra.gmra.mxu1 %v759_v19 }
 0x130   :  { %868 = vmatpush1.bf16.msra.mxu0 %v3832_v36  ;;  %909 = vmatpush1.bf16.msra.mxu1 %v3837_v37 }
 0x131   :  { %869 = vmatprep.subr.bf16.mxu0 %v3844_v38  ;;  %910 = vmatprep.subr.bf16.mxu1 %v3849_v39 }
 0x132   :  { %899 = vmatprep.mubr.bf16.mxu0 %v5415_v6  ;;  %940 = vmatprep.mubr.bf16.mxu1 %v5415_v6 }
 0x134   :  { %870 = vmatpush1.bf16.msra.mxu0 %v3854_v40  ;;  %911 = vmatpush1.bf16.msra.mxu1 %v3861_v41 }
 0x135   :  { %871 = vmatprep.subr.bf16.mxu0 %v3868_v42  ;;  %912 = vmatprep.subr.bf16.mxu1 %v3873_v43 }
 0x138   :  { %872 = vmatpush1.bf16.msra.mxu0 %v3883_v45  ;;  %913 = vmatpush1.bf16.msra.mxu1 %v3888_v46 }
 0x139   :  { %873 = vmatprep.subr.bf16.mxu0 %v3895_v47  ;;  %914 = vmatprep.subr.bf16.mxu1 %v3902_v48 }
 0x13c   :  { %874 = vmatpush1.bf16.msra.mxu0 %v3907_v49  ;;  %915 = vmatpush1.bf16.msra.mxu1 %v3912_v50 }
 0x13d   :  { %875 = vmatprep.subr.bf16.mxu0 %v3919_v51  ;;  %916 = vmatprep.subr.bf16.mxu1 %v3926_v52 }
 0x140   :  { %876 = vmatpush1.bf16.msra.mxu0 %v3938_v54  ;;  %917 = vmatpush1.bf16.msra.mxu1 %v3943_v55 }
 0x141   :  { %877 = vmatprep.subr.bf16.mxu0 %v3950_v56  ;;  %918 = vmatprep.subr.bf16.mxu1 %v3955_v57 }
 0x144   :  { %878 = vmatpush1.bf16.msra.mxu0 %v3962_v58  ;;  %919 = vmatpush1.bf16.msra.mxu1 %v3967_v59 }
 0x145   :  { %879 = vmatprep.subr.bf16.mxu0 %v3974_v60  ;;  %920 = vmatprep.subr.bf16.mxu1 %v3979_v61 }
 0x148   :  { %880 = vmatpush1.bf16.msra.mxu0 %v3991_v63  ;;  %921 = vmatpush1.bf16.msra.mxu1 %v3996_v0 }
 0x149   :  { %881 = vmatprep.subr.bf16.mxu0 %v4003_v2  ;;  %922 = vmatprep.subr.bf16.mxu1 %v4008_v3 }
 0x14c   :  { %882 = vmatpush1.bf16.msra.mxu0 %v4015_v4  ;;  %923 = vmatpush1.bf16.msra.mxu1 %v4020_v5 }
 0x14d   :  { %974 = vmatprep.subr.bf16.mxu0 %v3819_v33  ;;  %1015 = vmatprep.subr.bf16.mxu1 %v3824_v34 }
 0x1ef   :  { %v794_v15 = vpop.f32.mrf.mxu0  ;;  %v835_v26 = vpop.f32.mrf.mxu1 }
 0x1f0   :  { %v842_v30 = vadd.f32 %v794_v15, %v4095_v23  ;;  %v844_v35 = vadd.f32 %v835_v26, %v4098_v24 }
 0x1f1   :  { %v796_v12 = vpop.f32.mrf.mxu0  ;;  %v837_v18 = vpop.f32.mrf.mxu1 }
 0x1f2   :  { %3451 = vtanh.f32 %v842_v30  ;;  %v843_v44 = vadd.f32 %v796_v12, %v4100_v27  ;;  %v845_v13 = vadd.f32 %v837_v18, %v4103_v28 }
 0x1f3   :  { %v798_v16 = vpop.f32.mrf.mxu0  ;;  %v839_v9 = vpop.f32.mrf.mxu1 }
 0x1f4   :  { %3453 = vtanh.f32 %v843_v44 }
 0x1f5   :  { %v799_v22 = vpop.f32.mrf.mxu0  ;;  %v840_v11 = vpop.f32.mrf.mxu1  ;;  %3455 = vtanh.f32 %v844_v35 }
 0x1f6   :  { %3457 = vtanh.f32 %v845_v13 }
 0x1ff   :  { %v3452_v14 = vpop.eup %3451 }
 0x200   :  { %v850_v29 = vmul.f32 0.5, %v3452_v14 }
 0x201   :  { %v3454_v8 = vpop.eup %3453 }
 0x202   :  { %v851_v7 = vadd.f32 0.5, %v850_v29  ;;  %v852_v23 = vmul.f32 0.5, %v3454_v8  ;;  %v3456_v25 = vpop.eup %3455 }
 0x203   :  { %v3458_v19 = vpop.eup %3457 }
 0x204   :  { %v853_v10 = vadd.f32 0.5, %v852_v23  ;;  %v857_v1 = vmul.f32 %v3456_v25, %v851_v7  ;;  %v854_v15 = vmul.f32 0.5, %v3458_v19 }
 0x206   :  { %v856_v24 = vmul.f32 %v853_v10, %v4171_v21  ;;  %v855_v26 = vadd.f32 0.5, %v854_v15 }
 0x208   :  { %v4217_v27 = vadd.f32 %v857_v1, %v856_v24 }
 0x20a   :  { %3459 = vtanh.f32 %v4217_v27 }
 0x217   :  { %v3460_v30 = vpop.eup %3459 }
 0x218   :  { %v4220_v28 = vmul.f32 %v3460_v30, %v855_v26 }
 0x21a   :  { %v866_v12 = vpack.c.bf16 %v4220_v28, %v4220_v28 }
 0x21c   :  { %900 = vmatmul.mubr.bf16.vlgmr.msra.gmra.mxu0 %v866_v12  ;;  %941 = vmatmul.mubr.bf16.vlgmr.msra.gmra.mxu1 %v866_v12 }
 0x21d   :  { %975 = vmatpush1.bf16.msra.mxu0 %v3832_v36  ;;  %1016 = vmatpush1.bf16.msra.mxu1 %v3837_v37 }
 0x21e   :  { %976 = vmatprep.subr.bf16.mxu0 %v3844_v38  ;;  %1017 = vmatprep.subr.bf16.mxu1 %v3849_v39 }
 0x21f   :  { %1006 = vmatprep.mubr.bf16.mxu0 %v5415_v6  ;;  %1047 = vmatprep.mubr.bf16.mxu1 %v5415_v6 }
 0x221   :  { %977 = vmatpush1.bf16.msra.mxu0 %v3854_v40  ;;  %1018 = vmatpush1.bf16.msra.mxu1 %v3861_v41 }
 0x222   :  { %978 = vmatprep.subr.bf16.mxu0 %v3868_v42  ;;  %1019 = vmatprep.subr.bf16.mxu1 %v3873_v43 }
 0x225   :  { %979 = vmatpush1.bf16.msra.mxu0 %v3883_v45  ;;  %1020 = vmatpush1.bf16.msra.mxu1 %v3888_v46 }
 0x226   :  { %980 = vmatprep.subr.bf16.mxu0 %v3895_v47  ;;  %1021 = vmatprep.subr.bf16.mxu1 %v3902_v48 }
 0x229   :  { %981 = vmatpush1.bf16.msra.mxu0 %v3907_v49  ;;  %1022 = vmatpush1.bf16.msra.mxu1 %v3912_v50 }
 0x22a   :  { %982 = vmatprep.subr.bf16.mxu0 %v3919_v51  ;;  %1023 = vmatprep.subr.bf16.mxu1 %v3926_v52 }
 0x22d   :  { %983 = vmatpush1.bf16.msra.mxu0 %v3938_v54  ;;  %1024 = vmatpush1.bf16.msra.mxu1 %v3943_v55 }
 0x22e   :  { %984 = vmatprep.subr.bf16.mxu0 %v3950_v56  ;;  %1025 = vmatprep.subr.bf16.mxu1 %v3955_v57 }
 0x231   :  { %985 = vmatpush1.bf16.msra.mxu0 %v3962_v58  ;;  %1026 = vmatpush1.bf16.msra.mxu1 %v3967_v59 }
 0x232   :  { %986 = vmatprep.subr.bf16.mxu0 %v3974_v60  ;;  %1027 = vmatprep.subr.bf16.mxu1 %v3979_v61 }
 0x235   :  { %987 = vmatpush1.bf16.msra.mxu0 %v3991_v63  ;;  %1028 = vmatpush1.bf16.msra.mxu1 %v3996_v0 }
 0x236   :  { %988 = vmatprep.subr.bf16.mxu0 %v4003_v2  ;;  %1029 = vmatprep.subr.bf16.mxu1 %v4008_v3 }
 0x239   :  { %989 = vmatpush1.bf16.msra.mxu0 %v4015_v4  ;;  %1030 = vmatpush1.bf16.msra.mxu1 %v4020_v5 }
 0x23a   :  { %1081 = vmatprep.subr.bf16.mxu0 %v3819_v33  ;;  %1122 = vmatprep.subr.bf16.mxu1 %v3824_v34 }
 0x2dc   :  { %v901_v21 = vpop.f32.mrf.mxu0  ;;  %v942_v18 = vpop.f32.mrf.mxu1 }
 0x2dd   :  { %v949_v35 = vadd.f32 %v901_v21, %v4105_v31  ;;  %v951_v9 = vadd.f32 %v942_v18, %v4108_v32 }
 0x2de   :  { %v903_v44 = vpop.f32.mrf.mxu0  ;;  %v944_v16 = vpop.f32.mrf.mxu1 }
 0x2df   :  { %3461 = vtanh.f32 %v949_v35  ;;  %v950_v22 = vadd.f32 %v903_v44, %v4110_v53  ;;  %v952_v8 = vadd.f32 %v944_v16, %v4113_v62 }
 0x2e0   :  { %v905_v11 = vpop.f32.mrf.mxu0  ;;  %v946_v13 = vpop.f32.mrf.mxu1 }
 0x2e1   :  { %3463 = vtanh.f32 %v950_v22  ;;  %v5417_v11 = vld [vmem:[#allocation6_spill] sm:$0xff] }
 0x2e2   :  { %v906_v14 = vpop.f32.mrf.mxu0  ;;  %v947_v29 = vpop.f32.mrf.mxu1  ;;  %3465 = vtanh.f32 %v951_v9  ;;  %v5416_v9 = vld [vmem:[#allocation5_spill] sm:$0xff] }
 0x2e3   :  { %3467 = vtanh.f32 %v952_v8 }
 0x2ec   :  { %v3462_v7 = vpop.eup %3461 }
 0x2ed   :  { %v957_v23 = vmul.f32 0.5, %v3462_v7 }
 0x2ee   :  { %v3464_v25 = vpop.eup %3463 }
 0x2ef   :  { %v958_v10 = vadd.f32 0.5, %v957_v23  ;;  %v959_v31 = vmul.f32 0.5, %v3464_v25  ;;  %v3466_v1 = vpop.eup %3465  ;;  %v5418_v23 = vld [vmem:[#allocation7_spill] sm:$0xff] }
 0x2f0   :  { %v3468_v15 = vpop.eup %3467 }
 0x2f1   :  { %v960_v24 = vadd.f32 0.5, %v959_v31  ;;  %v964_v19 = vmul.f32 %v3466_v1, %v958_v10  ;;  %v961_v26 = vmul.f32 0.5, %v3468_v15 }
 0x2f3   :  { %v963_v32 = vmul.f32 %v960_v24, %v4217_v27  ;;  %v962_v30 = vadd.f32 0.5, %v961_v26 }
 0x2f5   :  { %v4263_v53 = vadd.f32 %v964_v19, %v963_v32 }
 0x2f7   :  { %3469 = vtanh.f32 %v4263_v53 }
 0x304   :  { %v3470_v12 = vpop.eup %3469 }
 0x305   :  { %v4266_v62 = vmul.f32 %v3470_v12, %v962_v30 }
 0x307   :  { %v973_v21 = vpack.c.bf16 %v4266_v62, %v4266_v62 }
 0x309   :  { %1007 = vmatmul.mubr.bf16.vlgmr.msra.gmra.mxu0 %v973_v21  ;;  %1048 = vmatmul.mubr.bf16.vlgmr.msra.gmra.mxu1 %v973_v21 }
 0x30a   :  { %1082 = vmatpush1.bf16.msra.mxu0 %v3832_v36  ;;  %1123 = vmatpush1.bf16.msra.mxu1 %v3837_v37 }
 0x30b   :  { %1083 = vmatprep.subr.bf16.mxu0 %v3844_v38  ;;  %1124 = vmatprep.subr.bf16.mxu1 %v3849_v39 }
 0x30c   :  { %1113 = vmatprep.mubr.bf16.mxu0 %v5415_v6  ;;  %1154 = vmatprep.mubr.bf16.mxu1 %v5415_v6 }
 0x30e   :  { %1084 = vmatpush1.bf16.msra.mxu0 %v3854_v40  ;;  %1125 = vmatpush1.bf16.msra.mxu1 %v3861_v41 }
 0x30f   :  { %1085 = vmatprep.subr.bf16.mxu0 %v3868_v42  ;;  %1126 = vmatprep.subr.bf16.mxu1 %v3873_v43 }
 0x312   :  { %1086 = vmatpush1.bf16.msra.mxu0 %v3883_v45  ;;  %1127 = vmatpush1.bf16.msra.mxu1 %v3888_v46 }
 0x313   :  { %1087 = vmatprep.subr.bf16.mxu0 %v3895_v47  ;;  %1128 = vmatprep.subr.bf16.mxu1 %v3902_v48 }
 0x316   :  { %1088 = vmatpush1.bf16.msra.mxu0 %v3907_v49  ;;  %1129 = vmatpush1.bf16.msra.mxu1 %v3912_v50 }
 0x317   :  { %1089 = vmatprep.subr.bf16.mxu0 %v3919_v51  ;;  %1130 = vmatprep.subr.bf16.mxu1 %v3926_v52 }
 0x31a   :  { %1090 = vmatpush1.bf16.msra.mxu0 %v3938_v54  ;;  %1131 = vmatpush1.bf16.msra.mxu1 %v3943_v55 }
 0x31b   :  { %1091 = vmatprep.subr.bf16.mxu0 %v3950_v56  ;;  %1132 = vmatprep.subr.bf16.mxu1 %v3955_v57 }
 0x31e   :  { %1092 = vmatpush1.bf16.msra.mxu0 %v3962_v58  ;;  %1133 = vmatpush1.bf16.msra.mxu1 %v3967_v59 }
 0x31f   :  { %1093 = vmatprep.subr.bf16.mxu0 %v3974_v60  ;;  %1134 = vmatprep.subr.bf16.mxu1 %v3979_v61 }
 0x322   :  { %1094 = vmatpush1.bf16.msra.mxu0 %v3991_v63  ;;  %1135 = vmatpush1.bf16.msra.mxu1 %v3996_v0 }
 0x323   :  { %1095 = vmatprep.subr.bf16.mxu0 %v4003_v2  ;;  %1136 = vmatprep.subr.bf16.mxu1 %v4008_v3 }
 0x326   :  { %1096 = vmatpush1.bf16.msra.mxu0 %v4015_v4  ;;  %1137 = vmatpush1.bf16.msra.mxu1 %v4020_v5 }
 0x327   :  { %1188 = vmatprep.subr.bf16.mxu0 %v3819_v33  ;;  %1229 = vmatprep.subr.bf16.mxu1 %v3824_v34 }
 0x3c9   :  { %v1008_v27 = vpop.f32.mrf.mxu0  ;;  %v1049_v18 = vpop.f32.mrf.mxu1 }
 0x3ca   :  { %v1056_v35 = vadd.f32 %v1008_v27, %v4115_v20  ;;  %v1058_v22 = vadd.f32 %v1049_v18, %v5416_v9 }
 0x3cb   :  { %v1010_v44 = vpop.f32.mrf.mxu0  ;;  %v1051_v16 = vpop.f32.mrf.mxu1 }
 0x3cc   :  { %3471 = vtanh.f32 %v1056_v35  ;;  %v1057_v13 = vadd.f32 %v1010_v44, %v5417_v11  ;;  %v1059_v25 = vadd.f32 %v1051_v16, %v5418_v23 }
 0x3cd   :  { %v1012_v14 = vpop.f32.mrf.mxu0  ;;  %v1053_v29 = vpop.f32.mrf.mxu1 }
 0x3ce   :  { %3473 = vtanh.f32 %v1057_v13 }
 0x3cf   :  { %v1013_v8 = vpop.f32.mrf.mxu0  ;;  %v1054_v7 = vpop.f32.mrf.mxu1  ;;  %3475 = vtanh.f32 %v1058_v22 }
 0x3d0   :  { %3477 = vtanh.f32 %v1059_v25 }
 0x3d9   :  { %v3472_v10 = vpop.eup %3471 }
 0x3da   :  { %v1064_v31 = vmul.f32 0.5, %v3472_v10 }
 0x3db   :  { %v3474_v1 = vpop.eup %3473 }
 0x3dc   :  { %v1065_v24 = vadd.f32 0.5, %v1064_v31  ;;  %v1066_v20 = vmul.f32 0.5, %v3474_v1  ;;  %v3476_v19 = vpop.eup %3475 }
 0x3dd   :  { %v3478_v12 = vpop.eup %3477 }
 0x3de   :  { %v1067_v32 = vadd.f32 0.5, %v1066_v20  ;;  %v1071_v15 = vmul.f32 %v3476_v19, %v1065_v24  ;;  %v1068_v21 = vmul.f32 0.5, %v3478_v12 }
 0x3e0   :  { %v1070_v26 = vmul.f32 %v1067_v32, %v4263_v53  ;;  %v1069_v27 = vadd.f32 0.5, %v1068_v21  ;;  %v5421_v53 = vld [vmem:[#allocation10_spill] sm:$0xff] }
 0x3e1   :  { %v4365_v21 = vld [vmem:[%s5379_s2 + $0xe0] ss:$16 sps:$4 sm:$0xff]  }
 0x3e2   :  { %v4309_v30 = vadd.f32 %v1071_v15, %v1070_v26 }
 0x3e4   :  { %3479 = vtanh.f32 %v4309_v30 }
 0x3f1   :  { %v3480_v18 = vpop.eup %3479 }
 0x3f2   :  { %v4312_v35 = vmul.f32 %v3480_v18, %v1069_v27  ;;  %v4377_v27 = vld [vmem:[%s5379_s2 + $0xc4] ss:$16 sps:$4 sm:$0xff]   ;;  %v4383_v18 = vld [vmem:[%s5379_s2 + $0xcc] ss:$16 sps:$4 sm:$0xff]  }
 0x3f4   :  { %v1080_v44 = vpack.c.bf16 %v4312_v35, %v4312_v35 }
 0x3f6   :  { %1114 = vmatmul.mubr.bf16.vlgmr.msra.gmra.mxu0 %v1080_v44  ;;  %1155 = vmatmul.mubr.bf16.vlgmr.msra.gmra.mxu1 %v1080_v44  ;;  %v4391_v44 = vld [vmem:[%s5379_s2 + $0xc0] ss:$16 sps:$4 sm:$0xff]  }
 0x3f7   :  { %1189 = vmatpush1.bf16.msra.mxu0 %v3832_v36  ;;  %1230 = vmatpush1.bf16.msra.mxu1 %v3837_v37 }
 0x3f8   :  { %1190 = vmatprep.subr.bf16.mxu0 %v3844_v38  ;;  %1231 = vmatprep.subr.bf16.mxu1 %v3849_v39  ;;  %v5419_v38 = vld [vmem:[#allocation8_spill] sm:$0xff] }
 0x3f9   :  { %1220 = vmatprep.mubr.bf16.mxu0 %v5415_v6  ;;  %1261 = vmatprep.mubr.bf16.mxu1 %v5415_v6 }
 0x3fb   :  { %1191 = vmatpush1.bf16.msra.mxu0 %v3854_v40  ;;  %1232 = vmatpush1.bf16.msra.mxu1 %v3861_v41 }
 0x3fc   :  { %1192 = vmatprep.subr.bf16.mxu0 %v3868_v42  ;;  %1233 = vmatprep.subr.bf16.mxu1 %v3873_v43  ;;  %v5420_v42 = vld [vmem:[#allocation9_spill] sm:$0xff] }
 0x3ff   :  { %1193 = vmatpush1.bf16.msra.mxu0 %v3883_v45  ;;  %1234 = vmatpush1.bf16.msra.mxu1 %v3888_v46 }
 0x400   :  { %1194 = vmatprep.subr.bf16.mxu0 %v3895_v47  ;;  %1235 = vmatprep.subr.bf16.mxu1 %v3902_v48 }
 0x403   :  { %1195 = vmatpush1.bf16.msra.mxu0 %v3907_v49  ;;  %1236 = vmatpush1.bf16.msra.mxu1 %v3912_v50 }
 0x404   :  { %1196 = vmatprep.subr.bf16.mxu0 %v3919_v51  ;;  %1237 = vmatprep.subr.bf16.mxu1 %v3926_v52 }
 0x407   :  { %1197 = vmatpush1.bf16.msra.mxu0 %v3938_v54  ;;  %1238 = vmatpush1.bf16.msra.mxu1 %v3943_v55 }
 0x408   :  { %1198 = vmatprep.subr.bf16.mxu0 %v3950_v56  ;;  %1239 = vmatprep.subr.bf16.mxu1 %v3955_v57 }
 0x40b   :  { %1199 = vmatpush1.bf16.msra.mxu0 %v3962_v58  ;;  %1240 = vmatpush1.bf16.msra.mxu1 %v3967_v59 }
 0x40c   :  { %1200 = vmatprep.subr.bf16.mxu0 %v3974_v60  ;;  %1241 = vmatprep.subr.bf16.mxu1 %v3979_v61 }
 0x40f   :  { %1201 = vmatpush1.bf16.msra.mxu0 %v3991_v63  ;;  %1242 = vmatpush1.bf16.msra.mxu1 %v3996_v0 }
 0x410   :  { %1202 = vmatprep.subr.bf16.mxu0 %v4003_v2  ;;  %1243 = vmatprep.subr.bf16.mxu1 %v4008_v3 }
 0x413   :  { %1203 = vmatpush1.bf16.msra.mxu0 %v4015_v4  ;;  %1244 = vmatpush1.bf16.msra.mxu1 %v4020_v5 }
 0x414   :  { %1295 = vmatprep.subr.bf16.mxu0 %v3819_v33  ;;  %1336 = vmatprep.subr.bf16.mxu1 %v3824_v34  ;;  %v5422_v33 = vld [vmem:[#allocation11_spill] sm:$0xff] }
 0x4b6   :  { %v1115_v36 = vpop.f32.mrf.mxu0  ;;  %v1156_v37 = vpop.f32.mrf.mxu1 }
 0x4b7   :  { %v1163_v39 = vadd.f32 %v1115_v36, %v5419_v38  ;;  %v1165_v43 = vadd.f32 %v1156_v37, %v5420_v42  ;;  %v4397_v36 = vld [vmem:[%s5379_s2 + $0xc8] ss:$16 sps:$4 sm:$0xff]   ;;  %v4403_v37 = vld [vmem:[%s5379_s2 + $0xa4] ss:$16 sps:$4 sm:$0xff]   ;;  %v4409_v38 = vld [vmem:[%s5379_s2 + $0xac] ss:$16 sps:$4 sm:$0xff]  }
 0x4b8   :  { %v1117_v40 = vpop.f32.mrf.mxu0  ;;  %v1158_v41 = vpop.f32.mrf.mxu1 }
 0x4b9   :  { %3481 = vtanh.f32 %v1163_v39  ;;  %v1164_v16 = vadd.f32 %v1117_v40, %v5421_v53  ;;  %v1166_v14 = vadd.f32 %v1158_v41, %v5422_v33 }
 0x4ba   :  { %v1119_v9 = vpop.f32.mrf.mxu0  ;;  %v1160_v22 = vpop.f32.mrf.mxu1 }
 0x4bb   :  { %3483 = vtanh.f32 %v1164_v16 }
 0x4bc   :  { %v1120_v11 = vpop.f32.mrf.mxu0  ;;  %v1161_v13 = vpop.f32.mrf.mxu1  ;;  %3485 = vtanh.f32 %v1165_v43 }
 0x4bd   :  { %3487 = vtanh.f32 %v1166_v14  ;;  %v3611_v14 = vld [vmem:[%s5379_s2 + $0xa0] ss:$16 sps:$4 sm:$0xff]  }
 0x4c6   :  { %v3482_v34 = vpop.eup %3481 }
 0x4c7   :  { %v1171_v29 = vmul.f32 0.5, %v3482_v34  ;;  %v3612_v34 = vld [vmem:[%s5379_s2 + $0xa8] ss:$16 sps:$4 sm:$0xff]  }
 0x4c8   :  { %v3484_v8 = vpop.eup %3483 }
 0x4c9   :  { %v1172_v7 = vadd.f32 0.5, %v1171_v29  ;;  %v1173_v23 = vmul.f32 0.5, %v3484_v8  ;;  %v3486_v25 = vpop.eup %3485  ;;  %v3613_v29 = vld [vmem:[%s5379_s2 + $0x84] ss:$16 sps:$4 sm:$0xff]   ;;  %v3614_v8 = vld [vmem:[%s5379_s2 + $0x8c] ss:$16 sps:$4 sm:$0xff]  }
 0x4ca   :  { %v3488_v20 = vpop.eup %3487 }
 0x4cb   :  { %v1174_v10 = vadd.f32 0.5, %v1173_v23  ;;  %v1178_v31 = vmul.f32 %v3486_v25, %v1172_v7  ;;  %v1175_v19 = vmul.f32 0.5, %v3488_v20  ;;  %v3615_v7 = vld [vmem:[%s5379_s2 + $0x80] ss:$16 sps:$4 sm:$0xff]   ;;  %v3616_v23 = vld [vmem:[%s5379_s2 + $0x88] ss:$16 sps:$4 sm:$0xff]  }
 0x4cc   :  { %v3617_v25 = vld [vmem:[%s5379_s2 + $0x64] ss:$16 sps:$4 sm:$0xff]   ;;  %v3622_v20 = vld [vmem:[%s5379_s2 + $0x4c] ss:$16 sps:$4 sm:$0xff]  }
 0x4cd   :  { %v1177_v1 = vmul.f32 %v1174_v10, %v4309_v30  ;;  %v1176_v32 = vadd.f32 0.5, %v1175_v19  ;;  %v4371_v30 = vld [vmem:[%s5379_s2 + $0xe8] ss:$16 sps:$4 sm:$0xff]   ;;  %v3618_v10 = vld [vmem:[%s5379_s2 + $0x6c] ss:$16 sps:$4 sm:$0xff]  }
 0x4ce   :  { %v3623_v19 = vld [vmem:[%s5379_s2 + $0x40] ss:$16 sps:$4 sm:$0xff]  }
 0x4cf   :  { %v4355_v24 = vadd.f32 %v1178_v31, %v1177_v1  ;;  %v3619_v31 = vld [vmem:[%s5379_s2 + $0x60] ss:$16 sps:$4 sm:$0xff]   ;;  %v3620_v1 = vld [vmem:[%s5379_s2 + $0x68] ss:$16 sps:$4 sm:$0xff]  }
 0x4d1   :  { %3489 = vtanh.f32 %v4355_v24 }
 0x4de   :  { %v3490_v15 = vpop.eup %3489 }
 0x4df   :  { %v4358_v26 = vmul.f32 %v3490_v15, %v1176_v32  ;;  %v3624_v32 = vld [vmem:[%s5379_s2 + $0x48] ss:$16 sps:$4 sm:$0xff]   ;;  %v3625_v15 = vld [vmem:[%s5379_s2 + $0x24] ss:$16 sps:$4 sm:$0xff]  }
 0x4e1   :  { %v1187_v12 = vpack.c.bf16 %v4358_v26, %v4358_v26 }
 0x4e3   :  { %1221 = vmatmul.mubr.bf16.vlgmr.msra.gmra.mxu0 %v1187_v12  ;;  %1262 = vmatmul.mubr.bf16.vlgmr.msra.gmra.mxu1 %v1187_v12  ;;  %v3626_v12 = vld [vmem:[%s5379_s2 + $0x2c] ss:$16 sps:$4 sm:$0xff]  }
 0x4e4   :  { %1296 = vmatpush1.bf16.msra.mxu0 %v4365_v21  ;;  %1337 = vmatpush1.bf16.msra.mxu1 %v4371_v30 }
 0x4e5   :  { %1297 = vmatprep.subr.bf16.mxu0 %v4377_v27  ;;  %1338 = vmatprep.subr.bf16.mxu1 %v4383_v18 }
 0x4e6   :  { %1327 = vmatprep.mubr.bf16.mxu0 %v5415_v6  ;;  %1368 = vmatprep.mubr.bf16.mxu1 %v5415_v6 }
 0x4e8   :  { %1298 = vmatpush1.bf16.msra.mxu0 %v4391_v44  ;;  %1339 = vmatpush1.bf16.msra.mxu1 %v4397_v36 }
 0x4e9   :  { %1299 = vmatprep.subr.bf16.mxu0 %v4403_v37  ;;  %1340 = vmatprep.subr.bf16.mxu1 %v4409_v38 }
 0x4ec   :  { %1300 = vmatpush1.bf16.msra.mxu0 %v3883_v45  ;;  %1341 = vmatpush1.bf16.msra.mxu1 %v3888_v46  ;;  %v3609_v45 = vld [vmem:[%s5379_s2 + $0xe4] ss:$16 sps:$4 sm:$0xff]   ;;  %v3610_v46 = vld [vmem:[%s5379_s2 + $0xec] ss:$16 sps:$4 sm:$0xff]  }
 0x4ed   :  { %1301 = vmatprep.subr.bf16.mxu0 %v3895_v47  ;;  %1342 = vmatprep.subr.bf16.mxu1 %v3902_v48 }
 0x4f0   :  { %1302 = vmatpush1.bf16.msra.mxu0 %v3907_v49  ;;  %1343 = vmatpush1.bf16.msra.mxu1 %v3912_v50  ;;  %v5423_v49 = vld [vmem:[#allocation12_spill] sm:$0xff] }
 0x4f1   :  { %1303 = vmatprep.subr.bf16.mxu0 %v3919_v51  ;;  %1344 = vmatprep.subr.bf16.mxu1 %v3926_v52 }
 0x4f4   :  { %1304 = vmatpush1.bf16.msra.mxu0 %v3938_v54  ;;  %1345 = vmatpush1.bf16.msra.mxu1 %v3943_v55  ;;  %v5424_v54 = vld [vmem:[#allocation13_spill] sm:$0xff] }
 0x4f5   :  { %1305 = vmatprep.subr.bf16.mxu0 %v3950_v56  ;;  %1346 = vmatprep.subr.bf16.mxu1 %v3955_v57  ;;  %v5425_v56 = vld [vmem:[#allocation14_spill] sm:$0xff] }
 0x4f8   :  { %1306 = vmatpush1.bf16.msra.mxu0 %v3962_v58  ;;  %1347 = vmatpush1.bf16.msra.mxu1 %v3967_v59 }
 0x4f9   :  { %1307 = vmatprep.subr.bf16.mxu0 %v3974_v60  ;;  %1348 = vmatprep.subr.bf16.mxu1 %v3979_v61 }
 0x4fc   :  { %1308 = vmatpush1.bf16.msra.mxu0 %v3991_v63  ;;  %1349 = vmatpush1.bf16.msra.mxu1 %v3996_v0  ;;  %v5426_v63 = vld [vmem:[#allocation15_spill] sm:$0xff] }
 0x4fd   :  { %1309 = vmatprep.subr.bf16.mxu0 %v4003_v2  ;;  %1350 = vmatprep.subr.bf16.mxu1 %v4008_v3 }
 0x500   :  { %1310 = vmatpush1.bf16.msra.mxu0 %v4015_v4  ;;  %1351 = vmatpush1.bf16.msra.mxu1 %v4020_v5 }
 0x501   :  { %1402 = vmatprep.subr.bf16.mxu0 %v3609_v45  ;;  %1443 = vmatprep.subr.bf16.mxu1 %v3610_v46 }
 0x5a3   :  { %v1222_v47 = vpop.f32.mrf.mxu0  ;;  %v1263_v48 = vpop.f32.mrf.mxu1 }
 0x5a4   :  { %v1270_v50 = vadd.f32 %v1222_v47, %v5423_v49  ;;  %v1272_v55 = vadd.f32 %v1263_v48, %v5424_v54  ;;  %v5427_v47 = vld [vmem:[#allocation16_spill] sm:$0xff]  ;;  %v5429_v54 = vld [vmem:[#allocation18_spill] sm:$0xff] }
 0x5a5   :  { %v1224_v51 = vpop.f32.mrf.mxu0  ;;  %v1265_v52 = vpop.f32.mrf.mxu1 }
 0x5a6   :  { %3491 = vtanh.f32 %v1270_v50  ;;  %v1271_v57 = vadd.f32 %v1224_v51, %v5425_v56  ;;  %v1273_v0 = vadd.f32 %v1265_v52, %v5426_v63  ;;  %v5428_v51 = vld [vmem:[#allocation17_spill] sm:$0xff] }
 0x5a7   :  { %v1226_v58 = vpop.f32.mrf.mxu0  ;;  %v1267_v59 = vpop.f32.mrf.mxu1 }
 0x5a8   :  { %3493 = vtanh.f32 %v1271_v57 }
 0x5a9   :  { %v1227_v60 = vpop.f32.mrf.mxu0  ;;  %v1268_v61 = vpop.f32.mrf.mxu1  ;;  %3495 = vtanh.f32 %v1272_v55 }
 0x5aa   :  { %3497 = vtanh.f32 %v1273_v0  ;;  %v5430_v60 = vld [vmem:[#allocation19_spill] sm:$0xff] }
 0x5b3   :  { %v3492_v2 = vpop.eup %3491 }
 0x5b4   :  { %v1278_v3 = vmul.f32 0.5, %v3492_v2 }
 0x5b5   :  { %v3494_v4 = vpop.eup %3493 }
 0x5b6   :  { %v1279_v5 = vadd.f32 0.5, %v1278_v3  ;;  %v1280_v39 = vmul.f32 0.5, %v3494_v4  ;;  %v3496_v40 = vpop.eup %3495 }
 0x5b7   :  { %v3498_v16 = vpop.eup %3497 }
 0x5b8   :  { %v1281_v41 = vadd.f32 0.5, %v1280_v39  ;;  %v1285_v42 = vmul.f32 %v3496_v40, %v1279_v5  ;;  %v1282_v9 = vmul.f32 0.5, %v3498_v16 }
 0x5ba   :  { %v1284_v43 = vmul.f32 %v1281_v41, %v4355_v24  ;;  %v1283_v22 = vadd.f32 0.5, %v1282_v9  ;;  %v3621_v24 = vld [vmem:[%s5379_s2 + $0x44] ss:$16 sps:$4 sm:$0xff]  }
 0x5bc   :  { %v4445_v53 = vadd.f32 %v1285_v42, %v1284_v43 }
 0x5be   :  { %3499 = vtanh.f32 %v4445_v53 }
 0x5cb   :  { %v3500_v11 = vpop.eup %3499 }
 0x5cc   :  { %v4448_v13 = vmul.f32 %v3500_v11, %v1283_v22 }
 0x5ce   :  { %v1294_v33 = vpack.c.bf16 %v4448_v13, %v4448_v13 }
 0x5d0   :  { %1328 = vmatmul.mubr.bf16.vlgmr.msra.gmra.mxu0 %v1294_v33  ;;  %1369 = vmatmul.mubr.bf16.vlgmr.msra.gmra.mxu1 %v1294_v33  ;;  %v3337_v33 = vld [vmem:[%s5381_s4 + $0xe0] ss:$16 sps:$4 sm:$0xff]  }
 0x5d1   :  { %1403 = vmatpush1.bf16.msra.mxu0 %v4365_v21  ;;  %1444 = vmatpush1.bf16.msra.mxu1 %v4371_v30  ;;  %v3627_v21 = vld [vmem:[%s5379_s2 + $0x20] ss:$16 sps:$4 sm:$0xff]   ;;  %v3628_v30 = vld [vmem:[%s5379_s2 + $0x28] ss:$16 sps:$4 sm:$0xff]  }
 0x5d2   :  { %1404 = vmatprep.subr.bf16.mxu0 %v4377_v27  ;;  %1445 = vmatprep.subr.bf16.mxu1 %v4383_v18  ;;  %v3629_v27 = vld [vmem:[%s5379_s2 + $0x4] ss:$16 sps:$4 sm:$0xff]   ;;  %v3630_v18 = vld [vmem:[%s5379_s2 + $0xc] ss:$16 sps:$4 sm:$0xff]  }
 0x5d3   :  { %1434 = vmatprep.mubr.bf16.mxu0 %v5415_v6  ;;  %1475 = vmatprep.mubr.bf16.mxu1 %v5415_v6 }
 0x5d5   :  { %1405 = vmatpush1.bf16.msra.mxu0 %v4391_v44  ;;  %1446 = vmatpush1.bf16.msra.mxu1 %v4397_v36  ;;  %v3631_v44 = vld [vmem:[%s5379_s2] ss:$16 sps:$4 sm:$0xff]   ;;  %v3632_v36 = vld [vmem:[%s5379_s2 + $0x8] ss:$16 sps:$4 sm:$0xff]  }
 0x5d6   :  { %1406 = vmatprep.subr.bf16.mxu0 %v4403_v37  ;;  %1447 = vmatprep.subr.bf16.mxu1 %v4409_v38  ;;  %v3339_v37 = vld [vmem:[%s5381_s4 + $0xe4] ss:$16 sps:$4 sm:$0xff]   ;;  %v3342_v38 = vld [vmem:[%s5381_s4 + $0xec] ss:$16 sps:$4 sm:$0xff]  }
 0x5d9   :  { %1407 = vmatpush1.bf16.msra.mxu0 %v3611_v14  ;;  %1448 = vmatpush1.bf16.msra.mxu1 %v3612_v34  ;;  %v3340_v14 = vld [vmem:[%s5381_s4 + $0xe8] ss:$16 sps:$4 sm:$0xff]   ;;  %v3345_v34 = vld [vmem:[%s5381_s4 + $0xc4] ss:$16 sps:$4 sm:$0xff]  }
 0x5da   :  { %1408 = vmatprep.subr.bf16.mxu0 %v3613_v29  ;;  %1449 = vmatprep.subr.bf16.mxu1 %v3614_v8  ;;  %v3348_v29 = vld [vmem:[%s5381_s4 + $0xcc] ss:$16 sps:$4 sm:$0xff]   ;;  %v3343_v8 = vld [vmem:[%s5381_s4 + $0xc0] ss:$16 sps:$4 sm:$0xff]  }
 0x5dd   :  { %1409 = vmatpush1.bf16.msra.mxu0 %v3615_v7  ;;  %1450 = vmatpush1.bf16.msra.mxu1 %v3616_v23  ;;  %v3346_v7 = vld [vmem:[%s5381_s4 + $0xc8] ss:$16 sps:$4 sm:$0xff]   ;;  %v3351_v23 = vld [vmem:[%s5381_s4 + $0xa4] ss:$16 sps:$4 sm:$0xff]  }
 0x5de   :  { %1410 = vmatprep.subr.bf16.mxu0 %v3617_v25  ;;  %1451 = vmatprep.subr.bf16.mxu1 %v3618_v10  ;;  %v3354_v25 = vld [vmem:[%s5381_s4 + $0xac] ss:$16 sps:$4 sm:$0xff]   ;;  %v3349_v10 = vld [vmem:[%s5381_s4 + $0xa0] ss:$16 sps:$4 sm:$0xff]  }
 0x5e1   :  { %1411 = vmatpush1.bf16.msra.mxu0 %v3619_v31  ;;  %1452 = vmatpush1.bf16.msra.mxu1 %v3620_v1  ;;  %v3352_v31 = vld [vmem:[%s5381_s4 + $0xa8] ss:$16 sps:$4 sm:$0xff]   ;;  %v3357_v1 = vld [vmem:[%s5381_s4 + $0x84] ss:$16 sps:$4 sm:$0xff]  }
 0x5e2   :  { %1412 = vmatprep.subr.bf16.mxu0 %v3621_v24  ;;  %1453 = vmatprep.subr.bf16.mxu1 %v3622_v20  ;;  %v3360_v24 = vld [vmem:[%s5381_s4 + $0x8c] ss:$16 sps:$4 sm:$0xff]   ;;  %v3355_v20 = vld [vmem:[%s5381_s4 + $0x80] ss:$16 sps:$4 sm:$0xff]  }
 0x5e5   :  { %1413 = vmatpush1.bf16.msra.mxu0 %v3623_v19  ;;  %1454 = vmatpush1.bf16.msra.mxu1 %v3624_v32  ;;  %v3358_v19 = vld [vmem:[%s5381_s4 + $0x88] ss:$16 sps:$4 sm:$0xff]   ;;  %v3363_v32 = vld [vmem:[%s5381_s4 + $0x64] ss:$16 sps:$4 sm:$0xff]  }
 0x5e6   :  { %1414 = vmatprep.subr.bf16.mxu0 %v3625_v15  ;;  %1455 = vmatprep.subr.bf16.mxu1 %v3626_v12  ;;  %v3366_v15 = vld [vmem:[%s5381_s4 + $0x6c] ss:$16 sps:$4 sm:$0xff]   ;;  %v3361_v12 = vld [vmem:[%s5381_s4 + $0x60] ss:$16 sps:$4 sm:$0xff]  }
 0x5e9   :  { %1415 = vmatpush1.bf16.msra.mxu0 %v3627_v21  ;;  %1456 = vmatpush1.bf16.msra.mxu1 %v3628_v30  ;;  %v3364_v21 = vld [vmem:[%s5381_s4 + $0x68] ss:$16 sps:$4 sm:$0xff]   ;;  %v3369_v30 = vld [vmem:[%s5381_s4 + $0x44] ss:$16 sps:$4 sm:$0xff]  }
 0x5ea   :  { %1416 = vmatprep.subr.bf16.mxu0 %v3629_v27  ;;  %1457 = vmatprep.subr.bf16.mxu1 %v3630_v18  ;;  %v3372_v27 = vld [vmem:[%s5381_s4 + $0x4c] ss:$16 sps:$4 sm:$0xff]   ;;  %v3367_v18 = vld [vmem:[%s5381_s4 + $0x40] ss:$16 sps:$4 sm:$0xff]  }
 0x5ed   :  { %1417 = vmatpush1.bf16.msra.mxu0 %v3631_v44  ;;  %1458 = vmatpush1.bf16.msra.mxu1 %v3632_v36  ;;  %v3370_v44 = vld [vmem:[%s5381_s4 + $0x48] ss:$16 sps:$4 sm:$0xff]   ;;  %v3375_v36 = vld [vmem:[%s5381_s4 + $0x24] ss:$16 sps:$4 sm:$0xff]  }
 0x5ee   :  { %1762 = vmatprep.subr.bf16.mxu0 %v3339_v37  ;;  %1835 = vmatprep.subr.bf16.mxu1 %v3342_v38  ;;  %v3378_v37 = vld [vmem:[%s5381_s4 + $0x2c] ss:$16 sps:$4 sm:$0xff]   ;;  %v3373_v38 = vld [vmem:[%s5381_s4 + $0x20] ss:$16 sps:$4 sm:$0xff]  }
 0x690   :  { %v1329_v45 = vpop.f32.mrf.mxu0  ;;  %v1370_v46 = vpop.f32.mrf.mxu1 }
 0x691   :  { %v1377_v48 = vadd.f32 %v1329_v45, %v5427_v47  ;;  %v1379_v52 = vadd.f32 %v1370_v46, %v5428_v51  ;;  %v3376_v45 = vld [vmem:[%s5381_s4 + $0x28] ss:$16 sps:$4 sm:$0xff]   ;;  %v3381_v46 = vld [vmem:[%s5381_s4 + $0x4] ss:$16 sps:$4 sm:$0xff]   ;;  %v3384_v47 = vld [vmem:[%s5381_s4 + $0xc] ss:$16 sps:$4 sm:$0xff]   ;;  %v1578_v51 = vpack.c.bf16 %v4312_v35, %v4266_v62 }
 0x692   :  { %v1331_v49 = vpop.f32.mrf.mxu0  ;;  %v1372_v50 = vpop.f32.mrf.mxu1  ;;  %v4664_v62 = vld [vmem:[%s5382_s5 + $0xe0] ss:$16 sps:$4 sm:$0xff]   ;;  %v4669_v35 = vld [vmem:[%s5382_s5 + $0xe8] ss:$16 sps:$4 sm:$0xff]  }
 0x693   :  { %3501 = vtanh.f32 %v1377_v48  ;;  %v1378_v55 = vadd.f32 %v1331_v49, %v5429_v54  ;;  %v1380_v61 = vadd.f32 %v1372_v50, %v5430_v60  ;;  %v3379_v48 = vld [vmem:[%s5381_s4] ss:$16 sps:$4 sm:$0xff]   ;;  %v3382_v49 = vld [vmem:[%s5381_s4 + $0x8] ss:$16 sps:$4 sm:$0xff]   ;;  %v1577_v50 = vpack.c.bf16 %v4220_v28, %v4174_v17  ;;  %v4653_v17 = vld [vmem:[%s5382_s5 + $0xe4] ss:$16 sps:$4 sm:$0xff]  }
 0x694   :  { %v1333_v56 = vpop.f32.mrf.mxu0  ;;  %v1374_v57 = vpop.f32.mrf.mxu1  ;;  %v4658_v28 = vld [vmem:[%s5382_s5 + $0xec] ss:$16 sps:$4 sm:$0xff]   ;;  %v4687_v54 = vld [vmem:[%s5382_s5 + $0xc0] ss:$16 sps:$4 sm:$0xff]   ;;  %v4725_v60 = vld [vmem:[%s5382_s5 + $0x84] ss:$16 sps:$4 sm:$0xff]  }
 0x695   :  { %3503 = vtanh.f32 %v1378_v55  ;;  %v4692_v55 = vld [vmem:[%s5382_s5 + $0xc8] ss:$16 sps:$4 sm:$0xff]   ;;  %v4699_v56 = vld [vmem:[%s5382_s5 + $0xa4] ss:$16 sps:$4 sm:$0xff]   ;;  %v4704_v57 = vld [vmem:[%s5382_s5 + $0xac] ss:$16 sps:$4 sm:$0xff]  }
 0x696   :  { %v1334_v58 = vpop.f32.mrf.mxu0  ;;  %v1375_v59 = vpop.f32.mrf.mxu1  ;;  %3505 = vtanh.f32 %v1379_v52  ;;  %v1579_v52 = vpack.c.bf16 %v4448_v13, %v4358_v26  ;;  %v4677_v26 = vld [vmem:[%s5382_s5 + $0xc4] ss:$16 sps:$4 sm:$0xff]   ;;  %v4682_v13 = vld [vmem:[%s5382_s5 + $0xcc] ss:$16 sps:$4 sm:$0xff]  }
 0x697   :  { %3507 = vtanh.f32 %v1380_v61  ;;  %v4711_v58 = vld [vmem:[%s5382_s5 + $0xa0] ss:$16 sps:$4 sm:$0xff]   ;;  %v4716_v59 = vld [vmem:[%s5382_s5 + $0xa8] ss:$16 sps:$4 sm:$0xff]   ;;  %v4730_v61 = vld [vmem:[%s5382_s5 + $0x8c] ss:$16 sps:$4 sm:$0xff]  }
 0x6a0   :  { %v3502_v63 = vpop.eup %3501 }
 0x6a1   :  { %v1385_v0 = vmul.f32 0.5, %v3502_v63  ;;  %v4735_v63 = vld [vmem:[%s5382_s5 + $0x80] ss:$16 sps:$4 sm:$0xff]  }
 0x6a2   :  { %v3504_v2 = vpop.eup %3503 }
 0x6a3   :  { %v1386_v3 = vadd.f32 0.5, %v1385_v0  ;;  %v1387_v4 = vmul.f32 0.5, %v3504_v2  ;;  %v3506_v5 = vpop.eup %3505  ;;  %v4740_v0 = vld [vmem:[%s5382_s5 + $0x88] ss:$16 sps:$4 sm:$0xff]   ;;  %v4749_v2 = vld [vmem:[%s5382_s5 + $0x64] ss:$16 sps:$4 sm:$0xff]  }
 0x6a4   :  { %v3508_v43 = vpop.eup %3507 }
 0x6a5   :  { %v1388_v39 = vadd.f32 0.5, %v1387_v4  ;;  %v1392_v40 = vmul.f32 %v3506_v5, %v1386_v3  ;;  %v1389_v16 = vmul.f32 0.5, %v3508_v43  ;;  %v4754_v3 = vld [vmem:[%s5382_s5 + $0x6c] ss:$16 sps:$4 sm:$0xff]   ;;  %v4759_v4 = vld [vmem:[%s5382_s5 + $0x60] ss:$16 sps:$4 sm:$0xff]  }
 0x6a6   :  { %v4764_v5 = vld [vmem:[%s5382_s5 + $0x68] ss:$16 sps:$4 sm:$0xff]  }
 0x6a7   :  { %v1391_v41 = vmul.f32 %v1388_v39, %v4445_v53  ;;  %v1390_v9 = vadd.f32 0.5, %v1389_v16  ;;  %v4773_v39 = vld [vmem:[%s5382_s5 + $0x44] ss:$16 sps:$4 sm:$0xff]   ;;  %v4788_v43 = vld [vmem:[%s5382_s5 + $0x48] ss:$16 sps:$4 sm:$0xff]  }
 0x6a8   :  { %v4797_v16 = vld [vmem:[%s5382_s5 + $0x24] ss:$16 sps:$4 sm:$0xff]  }
 0x6a9   :  { %v4539_v42 = vadd.f32 %v1392_v40, %v1391_v41  ;;  %v4778_v40 = vld [vmem:[%s5382_s5 + $0x4c] ss:$16 sps:$4 sm:$0xff]   ;;  %v4783_v41 = vld [vmem:[%s5382_s5 + $0x40] ss:$16 sps:$4 sm:$0xff]  }
 0x6ab   :  { %3509 = vtanh.f32 %v4539_v42 }
 0x6b8   :  { %v3510_v22 = vpop.eup %3509 }
 0x6b9   :  { %v4542_v11 = vmul.f32 %v3510_v22, %v1390_v9  ;;  %v4802_v9 = vld [vmem:[%s5382_s5 + $0x2c] ss:$16 sps:$4 sm:$0xff]   ;;  %v4807_v22 = vld [vmem:[%s5382_s5 + $0x20] ss:$16 sps:$4 sm:$0xff]  }
 0x6bb   :  { %v1401_v53 = vpack.c.bf16 %v4542_v11, %v4542_v11 }
 0x6bd   :  { %1435 = vmatmul.mubr.bf16.vlgmr.msra.gmra.mxu0 %v1401_v53  ;;  %1476 = vmatmul.mubr.bf16.vlgmr.msra.gmra.mxu1 %v1401_v53  ;;  %v4826_v53 = vld [vmem:[%s5382_s5 + $0xc] ss:$16 sps:$4 sm:$0xff]  }
 0x6be   :  { %1763 = vmatpush1.bf16.msra.mxu0 %v3337_v33  ;;  %1836 = vmatpush1.bf16.msra.mxu1 %v3340_v14  ;;  %v4812_v33 = vld [vmem:[%s5382_s5 + $0x28] ss:$16 sps:$4 sm:$0xff]   ;;  %v4821_v14 = vld [vmem:[%s5382_s5 + $0x4] ss:$16 sps:$4 sm:$0xff]  }
 0x6bf   :  { %1764 = vmatprep.subr.bf16.mxu0 %v3345_v34  ;;  %1837 = vmatprep.subr.bf16.mxu1 %v3348_v29  ;;  %v4831_v34 = vld [vmem:[%s5382_s5] ss:$16 sps:$4 sm:$0xff]   ;;  %v4836_v29 = vld [vmem:[%s5382_s5 + $0x8] ss:$16 sps:$4 sm:$0xff]  }
 0x6c0   :  { %1794 = vmatprep.mubr.bf16.mxu0 %v5415_v6  ;;  %1867 = vmatprep.mubr.bf16.mxu1 %v5415_v6 }
 0x6c2   :  { %1765 = vmatpush1.bf16.msra.mxu0 %v3343_v8  ;;  %1838 = vmatpush1.bf16.msra.mxu1 %v3346_v7 }
 0x6c3   :  { %1766 = vmatprep.subr.bf16.mxu0 %v3351_v23  ;;  %1839 = vmatprep.subr.bf16.mxu1 %v3354_v25  ;;  %v5431_v23 = vld [vmem:[#allocation20_spill] sm:$0xff] }
 0x6c6   :  { %1767 = vmatpush1.bf16.msra.mxu0 %v3349_v10  ;;  %1840 = vmatpush1.bf16.msra.mxu1 %v3352_v31 }
 0x6c7   :  { %1768 = vmatprep.subr.bf16.mxu0 %v3357_v1  ;;  %1841 = vmatprep.subr.bf16.mxu1 %v3360_v24  ;;  %v5432_v1 = vld [vmem:[#allocation21_spill] sm:$0xff] }
 0x6ca   :  { %1769 = vmatpush1.bf16.msra.mxu0 %v3355_v20  ;;  %1842 = vmatpush1.bf16.msra.mxu1 %v3358_v19  ;;  %v5433_v20 = vld [vmem:[#allocation22_spill] sm:$0xff] }
 0x6cb   :  { %1770 = vmatprep.subr.bf16.mxu0 %v3363_v32  ;;  %1843 = vmatprep.subr.bf16.mxu1 %v3366_v15 }
 0x6ce   :  { %1771 = vmatpush1.bf16.msra.mxu0 %v3361_v12  ;;  %1844 = vmatpush1.bf16.msra.mxu1 %v3364_v21 }
 0x6cf   :  { %1772 = vmatprep.subr.bf16.mxu0 %v3369_v30  ;;  %1845 = vmatprep.subr.bf16.mxu1 %v3372_v27  ;;  %v5434_v30 = vld [vmem:[#allocation23_spill] sm:$0xff] }
 0x6d2   :  { %1773 = vmatpush1.bf16.msra.mxu0 %v3367_v18  ;;  %1846 = vmatpush1.bf16.msra.mxu1 %v3370_v44 }
 0x6d3   :  { %1774 = vmatprep.subr.bf16.mxu0 %v3375_v36  ;;  %1847 = vmatprep.subr.bf16.mxu1 %v3378_v37 }
 0x6d6   :  { %1775 = vmatpush1.bf16.msra.mxu0 %v3373_v38  ;;  %1848 = vmatpush1.bf16.msra.mxu1 %v3376_v45 }
 0x6d7   :  { %1776 = vmatprep.subr.bf16.mxu0 %v3381_v46  ;;  %1849 = vmatprep.subr.bf16.mxu1 %v3384_v47 }
 0x6da   :  { %1777 = vmatpush1.bf16.msra.mxu0 %v3379_v48  ;;  %1850 = vmatpush1.bf16.msra.mxu1 %v3382_v49 }
 0x6db   :  { %2104 = vmatprep.subr.bf16.mxu0 %v4653_v17  ;;  %2145 = vmatprep.subr.bf16.mxu1 %v4658_v28 }
 0x6dd   :  { %1795 = vmatmul.mubr.bf16.vlgmr.msra.gmra.mxu0 %v1577_v50  ;;  %1868 = vmatmul.mubr.bf16.vlgmr.msra.gmra.mxu1 %v1577_v50 }
 0x6de   :  { %1804 = vmatprep.mubr.bf16.mxu0 %v5415_v6  ;;  %1877 = vmatprep.mubr.bf16.mxu1 %v5415_v6 }
 0x6df   :  { %2105 = vmatpush1.bf16.msra.mxu0 %v4664_v62  ;;  %2146 = vmatpush1.bf16.msra.mxu1 %v4669_v35 }
 0x6e0   :  { %2106 = vmatprep.subr.bf16.mxu0 %v4677_v26  ;;  %2147 = vmatprep.subr.bf16.mxu1 %v4682_v13 }
 0x6e3   :  { %2107 = vmatpush1.bf16.msra.mxu0 %v4687_v54  ;;  %2148 = vmatpush1.bf16.msra.mxu1 %v4692_v55 }
 0x6e4   :  { %2108 = vmatprep.subr.bf16.mxu0 %v4699_v56  ;;  %2149 = vmatprep.subr.bf16.mxu1 %v4704_v57 }
 0x6e5   :  { %1805 = vmatmul.mubr.bf16.gmra.mxu0 %v1578_v51  ;;  %1878 = vmatmul.mubr.bf16.gmra.mxu1 %v1578_v51 }
 0x6e6   :  { %1814 = vmatprep.mubr.bf16.mxu0 %v5415_v6  ;;  %1887 = vmatprep.mubr.bf16.mxu1 %v5415_v6 }
 0x6e7   :  { %2109 = vmatpush1.bf16.msra.mxu0 %v4711_v58  ;;  %2150 = vmatpush1.bf16.msra.mxu1 %v4716_v59 }
 0x6e8   :  { %2110 = vmatprep.subr.bf16.mxu0 %v4725_v60  ;;  %2151 = vmatprep.subr.bf16.mxu1 %v4730_v61 }
 0x6eb   :  { %2111 = vmatpush1.bf16.msra.mxu0 %v4735_v63  ;;  %2152 = vmatpush1.bf16.msra.mxu1 %v4740_v0 }
 0x6ec   :  { %2112 = vmatprep.subr.bf16.mxu0 %v4749_v2  ;;  %2153 = vmatprep.subr.bf16.mxu1 %v4754_v3 }
 0x6ed   :  { %1815 = vmatmul.mubr.bf16.gmra.mxu0 %v1579_v52  ;;  %1888 = vmatmul.mubr.bf16.gmra.mxu1 %v1579_v52 }
 0x6ee   :  { %1824 = vmatprep.mubr.bf16.mxu0 %v5415_v6  ;;  %1897 = vmatprep.mubr.bf16.mxu1 %v5415_v6 }
 0x6ef   :  { %2113 = vmatpush1.bf16.msra.mxu0 %v4759_v4  ;;  %2154 = vmatpush1.bf16.msra.mxu1 %v4764_v5 }
 0x6f0   :  { %2114 = vmatprep.subr.bf16.mxu0 %v4773_v39  ;;  %2155 = vmatprep.subr.bf16.mxu1 %v4778_v40 }
 0x6f3   :  { %2115 = vmatpush1.bf16.msra.mxu0 %v4783_v41  ;;  %2156 = vmatpush1.bf16.msra.mxu1 %v4788_v43 }
 0x6f4   :  { %2116 = vmatprep.subr.bf16.mxu0 %v4797_v16  ;;  %2157 = vmatprep.subr.bf16.mxu1 %v4802_v9 }
 0x6f7   :  { %2117 = vmatpush1.bf16.msra.mxu0 %v4807_v22  ;;  %2158 = vmatpush1.bf16.msra.mxu1 %v4812_v33 }
 0x6f8   :  { %2118 = vmatprep.subr.bf16.mxu0 %v4821_v14  ;;  %2159 = vmatprep.subr.bf16.mxu1 %v4826_v53 }
 0x6fb   :  { %2119 = vmatpush1.bf16.msra.mxu0 %v4831_v34  ;;  %2160 = vmatpush1.bf16.msra.mxu1 %v4836_v29 }
 0x6fc   :  { %2210 = vmatprep.subr.bf16.mxu0 %v4653_v17  ;;  %2251 = vmatprep.subr.bf16.mxu1 %v4658_v28 }
 0x77d   :  { %v1436_v8 = vpop.f32.mrf.mxu0  ;;  %v1477_v7 = vpop.f32.mrf.mxu1 }
 0x77e   :  { %v1484_v25 = vadd.f32 %v1436_v8, %v5431_v23  ;;  %v1486_v24 = vadd.f32 %v1477_v7, %v5432_v1 }
 0x77f   :  { %v1438_v10 = vpop.f32.mrf.mxu0  ;;  %v1479_v31 = vpop.f32.mrf.mxu1 }
 0x780   :  { %3511 = vtanh.f32 %v1484_v25  ;;  %v1485_v19 = vadd.f32 %v1438_v10, %v5433_v20  ;;  %v1487_v27 = vadd.f32 %v1479_v31, %v5434_v30 }
 0x781   :  { %v1440_v32 = vpop.f32.mrf.mxu0  ;;  %v1481_v15 = vpop.f32.mrf.mxu1 }
 0x782   :  { %3513 = vtanh.f32 %v1485_v19 }
 0x783   :  { %v1441_v12 = vpop.f32.mrf.mxu0  ;;  %v1482_v21 = vpop.f32.mrf.mxu1  ;;  %3515 = vtanh.f32 %v1486_v24 }
 0x784   :  { %3517 = vtanh.f32 %v1487_v27 }
 0x78d   :  { %v3512_v18 = vpop.eup %3511 }
 0x78e   :  { %v1492_v44 = vmul.f32 0.5, %v3512_v18 }
 0x78f   :  { %v3514_v36 = vpop.eup %3513 }
 0x790   :  { %v1493_v37 = vadd.f32 0.5, %v1492_v44  ;;  %v1494_v38 = vmul.f32 0.5, %v3514_v36  ;;  %v3516_v45 = vpop.eup %3515 }
 0x791   :  { %v3518_v50 = vpop.eup %3517 }
 0x792   :  { %v1495_v46 = vadd.f32 0.5, %v1494_v38  ;;  %v1499_v47 = vmul.f32 %v3516_v45, %v1493_v37  ;;  %v1496_v51 = vmul.f32 0.5, %v3518_v50 }
 0x794   :  { %v1498_v48 = vmul.f32 %v1495_v46, %v4539_v42  ;;  %v1497_v52 = vadd.f32 0.5, %v1496_v51 }
 0x796   :  { %v1500_v49 = vadd.f32 %v1499_v47, %v1498_v48 }
 0x798   :  { %3519 = vtanh.f32 %v1500_v49  ;;  %v1568_v49 = vld [vmem:[%s5383_s6] sm:$0xf] }
 0x79d   :  { %v1796_v42 = vpop.f32.mrf.mxu0 }
 0x79f   :  { %v1798_v25 = vpop.f32.mrf.mxu0 }
 0x7a1   :  { %v4888_v31 = vpop.f32.mrf.mxu0 }
 0x7a3   :  { %v4892_v24 = vpop.f32.mrf.mxu0 }
 0x7a5   :  { %v3520_v8 = vpop.eup %3519  ;;  %v4896_v19 = vpop.f32.mrf.mxu0 }
 0x7a6   :  { %v1502_v7 = vmul.f32 %v3520_v8, %v1497_v52 }
 0x7a7   :  { %v4900_v15 = vpop.f32.mrf.mxu0 }
 0x7a8   :  { %v1580_v23 = vpack.c.bf16 %v1502_v7, %v4542_v11  ;;  %v1869_v11 = vpop.f32.mrf.mxu1  ;;  %5436 = vst [vmem:[#allocation6_spill] sm:$0xff] %v4900_v15  ;;  %v5454_v7 = vld [vmem:[#allocation4_spill] sm:$0xff] }
 0x7a9   :  { %v4904_v21 = vpop.f32.mrf.mxu0 }
 0x7aa   :  { %1825 = vmatmul.mubr.bf16.gmra.mxu0 %v1580_v23  ;;  %1898 = vmatmul.mubr.bf16.gmra.mxu1 %v1580_v23  ;;  %v1871_v10 = vpop.f32.mrf.mxu1  ;;  %5438 = vst [vmem:[#allocation8_spill] sm:$0xff] %v4904_v21  ;;  %v5455_v23 = vsub.s32 0, %v5454_v7 }
 0x7ab   :  { %2136 = vmatprep.mubr.bf16.mxu0 %v5415_v6  ;;  %2177 = vmatprep.mubr.bf16.mxu1 %v5415_v6  ;;  %v4908_v27 = vpop.f32.mrf.mxu0 }
 0x7ac   :  { %v4890_v1 = vpop.f32.mrf.mxu1  ;;  %5440 = vst [vmem:[#allocation10_spill] sm:$0xff] %v4908_v27 }
 0x7ad   :  { %v4912_v44 = vpop.f32.mrf.mxu0 }
 0x7ae   :  { %v4894_v20 = vpop.f32.mrf.mxu1  ;;  %5442 = vst [vmem:[#allocation12_spill] sm:$0xff] %v4912_v44 }
 0x7af   :  { %v4916_v37 = vpop.f32.mrf.mxu0 }
 0x7b0   :  { %v4898_v32 = vpop.f32.mrf.mxu1  ;;  %5444 = vst [vmem:[#allocation14_spill] sm:$0xff] %v4916_v37 }
 0x7b1   :  { %5435 = vst [vmem:[#allocation5_spill] sm:$0xff] %v4898_v32  ;;  %v4920_v45 = vpop.f32.mrf.mxu0 }
 0x7b2   :  { %2137 = vmatmul.mubr.bf16.vlgmr.msra.gmra.mxu0 %v5415_v6  ;;  %2178 = vmatmul.mubr.bf16.vlgmr.msra.gmra.mxu1 %v5415_v6  ;;  %v4902_v12 = vpop.f32.mrf.mxu1  ;;  %5446 = vst [vmem:[#allocation16_spill] sm:$0xff] %v4920_v45  ;;  %v4941_v45 = vrot.slane %v1568_v49, %v5455_v23 }
 0x7b3   :  { %2211 = vmatpush1.bf16.msra.mxu0 %v4664_v62  ;;  %2252 = vmatpush1.bf16.msra.mxu1 %v4669_v35  ;;  %5437 = vst [vmem:[#allocation7_spill] sm:$0xff] %v4902_v12  ;;  %v4924_v47 = vpop.f32.mrf.mxu0 }
 0x7b4   :  { %2212 = vmatprep.subr.bf16.mxu0 %v4677_v26  ;;  %2253 = vmatprep.subr.bf16.mxu1 %v4682_v13  ;;  %v4906_v30 = vpop.f32.mrf.mxu1  ;;  %5448 = vst [vmem:[#allocation18_spill] sm:$0xff] %v4924_v47 }
 0x7b5   :  { %2242 = vmatprep.mubr.bf16.mxu0 %v5415_v6  ;;  %2283 = vmatprep.mubr.bf16.mxu1 %v5415_v6  ;;  %5439 = vst [vmem:[#allocation9_spill] sm:$0xff] %v4906_v30 }
 0x7b6   :  { %v4910_v18 = vpop.f32.mrf.mxu1 }
 0x7b7   :  { %2213 = vmatpush1.bf16.msra.mxu0 %v4687_v54  ;;  %2254 = vmatpush1.bf16.msra.mxu1 %v4692_v55  ;;  %5441 = vst [vmem:[#allocation11_spill] sm:$0xff] %v4910_v18 }
 0x7b8   :  { %2214 = vmatprep.subr.bf16.mxu0 %v4699_v56  ;;  %2255 = vmatprep.subr.bf16.mxu1 %v4704_v57  ;;  %v4914_v36 = vpop.f32.mrf.mxu1 }
 0x7b9   :  { %5443 = vst [vmem:[#allocation13_spill] sm:$0xff] %v4914_v36 }
 0x7ba   :  { %v4918_v38 = vpop.f32.mrf.mxu1 }
 0x7bb   :  { %2215 = vmatpush1.bf16.msra.mxu0 %v4711_v58  ;;  %2256 = vmatpush1.bf16.msra.mxu1 %v4716_v59  ;;  %5445 = vst [vmem:[#allocation15_spill] sm:$0xff] %v4918_v38 }
 0x7bc   :  { %2216 = vmatprep.subr.bf16.mxu0 %v4725_v60  ;;  %2257 = vmatprep.subr.bf16.mxu1 %v4730_v61  ;;  %v4922_v46 = vpop.f32.mrf.mxu1 }
 0x7bd   :  { %5447 = vst [vmem:[#allocation17_spill] sm:$0xff] %v4922_v46 }
 0x7be   :  { %v4926_v48 = vpop.f32.mrf.mxu1 }
 0x7bf   :  { %2217 = vmatpush1.bf16.msra.mxu0 %v4735_v63  ;;  %2258 = vmatpush1.bf16.msra.mxu1 %v4740_v0  ;;  %5449 = vst [vmem:[#allocation19_spill] sm:$0xff] %v4926_v48  ;;  %v5458_v48 = vsub.s32 1, %v5454_v7 }
 0x7c0   :  { %2218 = vmatprep.subr.bf16.mxu0 %v4749_v2  ;;  %2259 = vmatprep.subr.bf16.mxu1 %v4754_v3 }
 0x7c1   :  { %v4949_v38 = vrot.slane %v1568_v49, %v5458_v48 }
 0x7c3   :  { %2219 = vmatpush1.bf16.msra.mxu0 %v4759_v4  ;;  %2260 = vmatpush1.bf16.msra.mxu1 %v4764_v5 }
 0x7c4   :  { %2220 = vmatprep.subr.bf16.mxu0 %v4773_v39  ;;  %2261 = vmatprep.subr.bf16.mxu1 %v4778_v40 }
 0x7c7   :  { %2221 = vmatpush1.bf16.msra.mxu0 %v4783_v41  ;;  %2262 = vmatpush1.bf16.msra.mxu1 %v4788_v43 }
 0x7c8   :  { %2222 = vmatprep.subr.bf16.mxu0 %v4797_v16  ;;  %2263 = vmatprep.subr.bf16.mxu1 %v4802_v9 }
 0x7cb   :  { %2223 = vmatpush1.bf16.msra.mxu0 %v4807_v22  ;;  %2264 = vmatpush1.bf16.msra.mxu1 %v4812_v33 }
 0x7cc   :  { %2224 = vmatprep.subr.bf16.mxu0 %v4821_v14  ;;  %2265 = vmatprep.subr.bf16.mxu1 %v4826_v53 }
 0x7cf   :  { %2225 = vmatpush1.bf16.msra.mxu0 %v4831_v34  ;;  %2266 = vmatpush1.bf16.msra.mxu1 %v4836_v29 }
 0x7d0   :  { %2316 = vmatprep.subr.bf16.mxu0 %v4653_v17  ;;  %2357 = vmatprep.subr.bf16.mxu1 %v4658_v28 }
 0x86a   :  { %v4931_v50 = vpop.f32.mrf.mxu0  ;;  %v4933_v51 = vpop.f32.mrf.mxu1 }
 0x86b   :  { %5450 = vst [vmem:[#allocation20_spill] sm:$0xff] %v4931_v50  ;;  %5451 = vst [vmem:[#allocation21_spill] sm:$0xff] %v4933_v51 }
 0x86c   :  { %v4935_v52 = vpop.f32.mrf.mxu0  ;;  %v4937_v8 = vpop.f32.mrf.mxu1 }
 0x86d   :  { %5452 = vst [vmem:[#allocation22_spill] sm:$0xff] %v4935_v52  ;;  %5453 = vst [vmem:[#allocation23_spill] sm:$0xff] %v4937_v8  ;;  %v1797_v52 = vadd.f32 %v1796_v42, %v4941_v45  ;;  %v5461_v8 = vsub.s32 2, %v5454_v7 }
 0x86e   :  { %v4943_v46 = vpop.f32.mrf.mxu0  ;;  %v4945_v47 = vpop.f32.mrf.mxu1 }
 0x86f   :  { %5456 = vst [vmem:[#allocation4_spill] sm:$0xff] %v4943_v46  ;;  %5457 = vst [vmem:[#allocation24_spill] sm:$0xff] %v4945_v47  ;;  %v4958_v51 = vrot.slane %v1568_v49, %v5461_v8  ;;  %v1799_v46 = vadd.f32 %v1798_v25, %v4949_v38  ;;  %v5462_v8 = vsub.s32 3, %v5454_v7 }
 0x870   :  { %v4951_v37 = vpop.f32.mrf.mxu0  ;;  %v4953_v50 = vpop.f32.mrf.mxu1 }
 0x871   :  { %5459 = vst [vmem:[#allocation25_spill] sm:$0xff] %v4951_v37  ;;  %5460 = vst [vmem:[#allocation26_spill] sm:$0xff] %v4953_v50  ;;  %v1870_v48 = vadd.f32 %v1869_v11, %v4958_v51  ;;  %v4964_v12 = vrot.slane %v1568_v49, %v5462_v8 }
 0x872   :  { %v2138_v23 = vpop.f32.mrf.mxu0  ;;  %v2179_v36 = vpop.f32.mrf.mxu1 }
 0x873   :  { %v2186_v44 = vadd.f32 %v2138_v23, %v1797_v52  ;;  %v2188_v50 = vadd.f32 %v2179_v36, %v1870_v48  ;;  %v1872_v25 = vadd.f32 %v1871_v10, %v4964_v12  ;;  %v1874_v48 = vadd.f32 %v4890_v1, %v4958_v51 }
 0x874   :  { %v2140_v47 = vpop.f32.mrf.mxu0  ;;  %v2181_v18 = vpop.f32.mrf.mxu1 }
 0x875   :  { %3521 = vtanh.f32 %v2186_v44  ;;  %v2187_v27 = vadd.f32 %v2140_v47, %v1799_v46  ;;  %v2189_v52 = vadd.f32 %v2181_v18, %v1872_v25 }
 0x876   :  { %v2142_v37 = vpop.f32.mrf.mxu0  ;;  %v2183_v30 = vpop.f32.mrf.mxu1 }
 0x877   :  { %3523 = vtanh.f32 %v2187_v27 }
 0x878   :  { %v2143_v42 = vpop.f32.mrf.mxu0  ;;  %v2184_v21 = vpop.f32.mrf.mxu1  ;;  %3525 = vtanh.f32 %v2188_v50 }
 0x879   :  { %3527 = vtanh.f32 %v2189_v52  ;;  %v1803_v42 = vadd.f32 %v4892_v24, %v4949_v38 }
 0x882   :  { %v3522_v23 = vpop.eup %3521 }
 0x883   :  { %v2194_v15 = vmul.f32 0.5, %v3522_v23 }
 0x884   :  { %v3524_v32 = vpop.eup %3523 }
 0x885   :  { %v2195_v11 = vadd.f32 0.5, %v2194_v15  ;;  %v2196_v44 = vmul.f32 0.5, %v3524_v32  ;;  %v3526_v30 = vpop.eup %3525  ;;  %v1801_v32 = vadd.f32 %v4888_v31, %v4941_v45  ;;  %v1876_v31 = vadd.f32 %v4894_v20, %v4964_v12 }
 0x886   :  { %v3528_v21 = vpop.eup %3527 }
 0x887   :  { %v2197_v37 = vadd.f32 0.5, %v2196_v44  ;;  %v2201_v27 = vmul.f32 %v3526_v30, %v2195_v11  ;;  %v2198_v47 = vmul.f32 0.5, %v3528_v21 }
 0x889   :  { %v2200_v36 = vmul.f32 0.0, %v2197_v37  ;;  %v2199_v49 = vadd.f32 0.5, %v2198_v47 }
 0x88b   :  { %v4967_v46 = vadd.f32 %v2201_v27, %v2200_v36 }
 0x88d   :  { %3529 = vtanh.f32 %v4967_v46 }
 0x89a   :  { %v3530_v50 = vpop.eup %3529 }
 0x89b   :  { %v2204_v10 = vmul.f32 %v3530_v50, %v2199_v49 }
 0x89d   :  { %v2209_v18 = vpack.c.bf16 %v2204_v10, %v2204_v10 }
 0x89f   :  { %2243 = vmatmul.mubr.bf16.vlgmr.msra.gmra.mxu0 %v2209_v18  ;;  %2284 = vmatmul.mubr.bf16.vlgmr.msra.gmra.mxu1 %v2209_v18 }
 0x8a0   :  { %2317 = vmatpush1.bf16.msra.mxu0 %v4664_v62  ;;  %2358 = vmatpush1.bf16.msra.mxu1 %v4669_v35 }
 0x8a1   :  { %2318 = vmatprep.subr.bf16.mxu0 %v4677_v26  ;;  %2359 = vmatprep.subr.bf16.mxu1 %v4682_v13 }
 0x8a2   :  { %2348 = vmatprep.mubr.bf16.mxu0 %v5415_v6  ;;  %2389 = vmatprep.mubr.bf16.mxu1 %v5415_v6 }
 0x8a4   :  { %2319 = vmatpush1.bf16.msra.mxu0 %v4687_v54  ;;  %2360 = vmatpush1.bf16.msra.mxu1 %v4692_v55 }
 0x8a5   :  { %2320 = vmatprep.subr.bf16.mxu0 %v4699_v56  ;;  %2361 = vmatprep.subr.bf16.mxu1 %v4704_v57 }
 0x8a8   :  { %2321 = vmatpush1.bf16.msra.mxu0 %v4711_v58  ;;  %2362 = vmatpush1.bf16.msra.mxu1 %v4716_v59 }
 0x8a9   :  { %2322 = vmatprep.subr.bf16.mxu0 %v4725_v60  ;;  %2363 = vmatprep.subr.bf16.mxu1 %v4730_v61 }
 0x8ac   :  { %2323 = vmatpush1.bf16.msra.mxu0 %v4735_v63  ;;  %2364 = vmatpush1.bf16.msra.mxu1 %v4740_v0 }
 0x8ad   :  { %2324 = vmatprep.subr.bf16.mxu0 %v4749_v2  ;;  %2365 = vmatprep.subr.bf16.mxu1 %v4754_v3 }
 0x8b0   :  { %2325 = vmatpush1.bf16.msra.mxu0 %v4759_v4  ;;  %2366 = vmatpush1.bf16.msra.mxu1 %v4764_v5 }
 0x8b1   :  { %2326 = vmatprep.subr.bf16.mxu0 %v4773_v39  ;;  %2367 = vmatprep.subr.bf16.mxu1 %v4778_v40 }
 0x8b4   :  { %2327 = vmatpush1.bf16.msra.mxu0 %v4783_v41  ;;  %2368 = vmatpush1.bf16.msra.mxu1 %v4788_v43 }
 0x8b5   :  { %2328 = vmatprep.subr.bf16.mxu0 %v4797_v16  ;;  %2369 = vmatprep.subr.bf16.mxu1 %v4802_v9 }
 0x8b8   :  { %2329 = vmatpush1.bf16.msra.mxu0 %v4807_v22  ;;  %2370 = vmatpush1.bf16.msra.mxu1 %v4812_v33 }
 0x8b9   :  { %2330 = vmatprep.subr.bf16.mxu0 %v4821_v14  ;;  %2371 = vmatprep.subr.bf16.mxu1 %v4826_v53 }
 0x8bc   :  { %2331 = vmatpush1.bf16.msra.mxu0 %v4831_v34  ;;  %2372 = vmatpush1.bf16.msra.mxu1 %v4836_v29 }
 0x8bd   :  { %2422 = vmatprep.subr.bf16.mxu0 %v4653_v17  ;;  %2463 = vmatprep.subr.bf16.mxu1 %v4658_v28 }
 0x95f   :  { %v2244_v15 = vpop.f32.mrf.mxu0  ;;  %v2285_v7 = vpop.f32.mrf.mxu1 }
 0x960   :  { %v2292_v8 = vadd.f32 %v2244_v15, %v1801_v32  ;;  %v2294_v23 = vadd.f32 %v2285_v7, %v1874_v48 }
 0x961   :  { %v2246_v25 = vpop.f32.mrf.mxu0  ;;  %v2287_v52 = vpop.f32.mrf.mxu1 }
 0x962   :  { %3531 = vtanh.f32 %v2292_v8  ;;  %v2293_v11 = vadd.f32 %v2246_v25, %v1803_v42  ;;  %v2295_v27 = vadd.f32 %v2287_v52, %v1876_v31 }
 0x963   :  { %v2248_v44 = vpop.f32.mrf.mxu0  ;;  %v2289_v37 = vpop.f32.mrf.mxu1 }
 0x964   :  { %3533 = vtanh.f32 %v2293_v11  ;;  %v5463_v11 = vld [vmem:[#allocation5_spill] sm:$0xff]  ;;  %v5464_v37 = vld [vmem:[#allocation6_spill] sm:$0xff] }
 0x965   :  { %v2249_v30 = vpop.f32.mrf.mxu0  ;;  %v2290_v36 = vpop.f32.mrf.mxu1  ;;  %3535 = vtanh.f32 %v2294_v23  ;;  %v1880_v44 = vadd.f32 %v5463_v11, %v4958_v51 }
 0x966   :  { %3537 = vtanh.f32 %v2295_v27  ;;  %v1809_v30 = vadd.f32 %v5464_v37, %v4949_v38 }
 0x96f   :  { %v3532_v1 = vpop.eup %3531 }
 0x970   :  { %v2300_v21 = vmul.f32 0.5, %v3532_v1 }
 0x971   :  { %v3534_v47 = vpop.eup %3533 }
 0x972   :  { %v2301_v24 = vadd.f32 0.5, %v2300_v21  ;;  %v2302_v49 = vmul.f32 0.5, %v3534_v47  ;;  %v3536_v50 = vpop.eup %3535 }
 0x973   :  { %v3538_v7 = vpop.eup %3537 }
 0x974   :  { %v2303_v10 = vadd.f32 0.5, %v2302_v49  ;;  %v2307_v18 = vmul.f32 %v3536_v50, %v2301_v24  ;;  %v2304_v48 = vmul.f32 0.5, %v3538_v7 }
 0x976   :  { %v2306_v32 = vmul.f32 %v2303_v10, %v4967_v46  ;;  %v2305_v42 = vadd.f32 0.5, %v2304_v48  ;;  %v1807_v46 = vadd.f32 %v4896_v19, %v4941_v45  ;;  %v5465_v19 = vld [vmem:[#allocation7_spill] sm:$0xff] }
 0x977   :  { %v1882_v10 = vadd.f32 %v5465_v19, %v4964_v12 }
 0x978   :  { %v5013_v15 = vadd.f32 %v2307_v18, %v2306_v32 }
 0x97a   :  { %3539 = vtanh.f32 %v5013_v15 }
 0x987   :  { %v3540_v20 = vpop.eup %3539 }
 0x988   :  { %v2310_v8 = vmul.f32 %v3540_v20, %v2305_v42 }
 0x98a   :  { %v2315_v25 = vpack.c.bf16 %v2310_v8, %v2310_v8 }
 0x98c   :  { %2349 = vmatmul.mubr.bf16.vlgmr.msra.gmra.mxu0 %v2315_v25  ;;  %2390 = vmatmul.mubr.bf16.vlgmr.msra.gmra.mxu1 %v2315_v25 }
 0x98d   :  { %2423 = vmatpush1.bf16.msra.mxu0 %v4664_v62  ;;  %2464 = vmatpush1.bf16.msra.mxu1 %v4669_v35 }
 0x98e   :  { %2424 = vmatprep.subr.bf16.mxu0 %v4677_v26  ;;  %2465 = vmatprep.subr.bf16.mxu1 %v4682_v13 }
 0x98f   :  { %2454 = vmatprep.mubr.bf16.mxu0 %v5415_v6  ;;  %2495 = vmatprep.mubr.bf16.mxu1 %v5415_v6 }
 0x991   :  { %2425 = vmatpush1.bf16.msra.mxu0 %v4687_v54  ;;  %2466 = vmatpush1.bf16.msra.mxu1 %v4692_v55 }
 0x992   :  { %2426 = vmatprep.subr.bf16.mxu0 %v4699_v56  ;;  %2467 = vmatprep.subr.bf16.mxu1 %v4704_v57 }
 0x995   :  { %2427 = vmatpush1.bf16.msra.mxu0 %v4711_v58  ;;  %2468 = vmatpush1.bf16.msra.mxu1 %v4716_v59 }
 0x996   :  { %2428 = vmatprep.subr.bf16.mxu0 %v4725_v60  ;;  %2469 = vmatprep.subr.bf16.mxu1 %v4730_v61 }
 0x999   :  { %2429 = vmatpush1.bf16.msra.mxu0 %v4735_v63  ;;  %2470 = vmatpush1.bf16.msra.mxu1 %v4740_v0 }
 0x99a   :  { %2430 = vmatprep.subr.bf16.mxu0 %v4749_v2  ;;  %2471 = vmatprep.subr.bf16.mxu1 %v4754_v3 }
 0x99d   :  { %2431 = vmatpush1.bf16.msra.mxu0 %v4759_v4  ;;  %2472 = vmatpush1.bf16.msra.mxu1 %v4764_v5 }
 0x99e   :  { %2432 = vmatprep.subr.bf16.mxu0 %v4773_v39  ;;  %2473 = vmatprep.subr.bf16.mxu1 %v4778_v40 }
 0x9a1   :  { %2433 = vmatpush1.bf16.msra.mxu0 %v4783_v41  ;;  %2474 = vmatpush1.bf16.msra.mxu1 %v4788_v43 }
 0x9a2   :  { %2434 = vmatprep.subr.bf16.mxu0 %v4797_v16  ;;  %2475 = vmatprep.subr.bf16.mxu1 %v4802_v9 }
 0x9a5   :  { %2435 = vmatpush1.bf16.msra.mxu0 %v4807_v22  ;;  %2476 = vmatpush1.bf16.msra.mxu1 %v4812_v33 }
 0x9a6   :  { %2436 = vmatprep.subr.bf16.mxu0 %v4821_v14  ;;  %2477 = vmatprep.subr.bf16.mxu1 %v4826_v53 }
 0x9a9   :  { %2437 = vmatpush1.bf16.msra.mxu0 %v4831_v34  ;;  %2478 = vmatpush1.bf16.msra.mxu1 %v4836_v29 }
 0x9aa   :  { %2528 = vmatprep.subr.bf16.mxu0 %v4653_v17  ;;  %2569 = vmatprep.subr.bf16.mxu1 %v4658_v28 }
 0xa4c   :  { %v2350_v52 = vpop.f32.mrf.mxu0  ;;  %v2391_v23 = vpop.f32.mrf.mxu1 }
 0xa4d   :  { %v2398_v36 = vadd.f32 %v2350_v52, %v1807_v46  ;;  %v2400_v1 = vadd.f32 %v2391_v23, %v1880_v44 }
 0xa4e   :  { %v2352_v31 = vpop.f32.mrf.mxu0  ;;  %v2393_v27 = vpop.f32.mrf.mxu1 }
 0xa4f   :  { %3541 = vtanh.f32 %v2398_v36  ;;  %v2399_v21 = vadd.f32 %v2352_v31, %v1809_v30  ;;  %v2401_v18 = vadd.f32 %v2393_v27, %v1882_v10 }
 0xa50   :  { %v2354_v47 = vpop.f32.mrf.mxu0  ;;  %v2395_v24 = vpop.f32.mrf.mxu1 }
 0xa51   :  { %3543 = vtanh.f32 %v2399_v21  ;;  %v5467_v47 = vld [vmem:[#allocation9_spill] sm:$0xff] }
 0xa52   :  { %v2355_v49 = vpop.f32.mrf.mxu0  ;;  %v2396_v50 = vpop.f32.mrf.mxu1  ;;  %3545 = vtanh.f32 %v2400_v1  ;;  %v1884_v24 = vadd.f32 %v5467_v47, %v4958_v51 }
 0xa53   :  { %3547 = vtanh.f32 %v2401_v18  ;;  %v5468_v49 = vld [vmem:[#allocation10_spill] sm:$0xff] }
 0xa54   :  { %v1813_v50 = vadd.f32 %v5468_v49, %v4949_v38 }
 0xa5c   :  { %v3542_v32 = vpop.eup %3541 }
 0xa5d   :  { %v2406_v7 = vmul.f32 0.5, %v3542_v32 }
 0xa5e   :  { %v3544_v48 = vpop.eup %3543 }
 0xa5f   :  { %v2407_v42 = vadd.f32 0.5, %v2406_v7  ;;  %v2408_v20 = vmul.f32 0.5, %v3544_v48  ;;  %v3546_v8 = vpop.eup %3545 }
 0xa60   :  { %v3548_v11 = vpop.eup %3547 }
 0xa61   :  { %v2409_v25 = vadd.f32 0.5, %v2408_v20  ;;  %v2413_v46 = vmul.f32 %v3546_v8, %v2407_v42  ;;  %v2410_v44 = vmul.f32 0.5, %v3548_v11 }
 0xa63   :  { %v2412_v52 = vmul.f32 %v2409_v25, %v5013_v15  ;;  %v2411_v37 = vadd.f32 0.5, %v2410_v44  ;;  %v5466_v15 = vld [vmem:[#allocation8_spill] sm:$0xff]  ;;  %v5469_v25 = vld [vmem:[#allocation11_spill] sm:$0xff] }
 0xa64   :  { %v1811_v27 = vadd.f32 %v5466_v15, %v4941_v45 }
 0xa65   :  { %v5059_v23 = vadd.f32 %v2413_v46, %v2412_v52  ;;  %v1886_v46 = vadd.f32 %v5469_v25, %v4964_v12 }
 0xa67   :  { %3549 = vtanh.f32 %v5059_v23 }
 0xa74   :  { %v3550_v30 = vpop.eup %3549 }
 0xa75   :  { %v2416_v36 = vmul.f32 %v3550_v30, %v2411_v37 }
 0xa77   :  { %v2421_v31 = vpack.c.bf16 %v2416_v36, %v2416_v36 }
 0xa79   :  { %2455 = vmatmul.mubr.bf16.vlgmr.msra.gmra.mxu0 %v2421_v31  ;;  %2496 = vmatmul.mubr.bf16.vlgmr.msra.gmra.mxu1 %v2421_v31 }
 0xa7a   :  { %2529 = vmatpush1.bf16.msra.mxu0 %v4664_v62  ;;  %2570 = vmatpush1.bf16.msra.mxu1 %v4669_v35 }
 0xa7b   :  { %2530 = vmatprep.subr.bf16.mxu0 %v4677_v26  ;;  %2571 = vmatprep.subr.bf16.mxu1 %v4682_v13 }
 0xa7c   :  { %2560 = vmatprep.mubr.bf16.mxu0 %v5415_v6  ;;  %2601 = vmatprep.mubr.bf16.mxu1 %v5415_v6 }
 0xa7e   :  { %2531 = vmatpush1.bf16.msra.mxu0 %v4687_v54  ;;  %2572 = vmatpush1.bf16.msra.mxu1 %v4692_v55 }
 0xa7f   :  { %2532 = vmatprep.subr.bf16.mxu0 %v4699_v56  ;;  %2573 = vmatprep.subr.bf16.mxu1 %v4704_v57 }
 0xa82   :  { %2533 = vmatpush1.bf16.msra.mxu0 %v4711_v58  ;;  %2574 = vmatpush1.bf16.msra.mxu1 %v4716_v59 }
 0xa83   :  { %2534 = vmatprep.subr.bf16.mxu0 %v4725_v60  ;;  %2575 = vmatprep.subr.bf16.mxu1 %v4730_v61 }
 0xa86   :  { %2535 = vmatpush1.bf16.msra.mxu0 %v4735_v63  ;;  %2576 = vmatpush1.bf16.msra.mxu1 %v4740_v0 }
 0xa87   :  { %2536 = vmatprep.subr.bf16.mxu0 %v4749_v2  ;;  %2577 = vmatprep.subr.bf16.mxu1 %v4754_v3 }
 0xa8a   :  { %2537 = vmatpush1.bf16.msra.mxu0 %v4759_v4  ;;  %2578 = vmatpush1.bf16.msra.mxu1 %v4764_v5 }
 0xa8b   :  { %2538 = vmatprep.subr.bf16.mxu0 %v4773_v39  ;;  %2579 = vmatprep.subr.bf16.mxu1 %v4778_v40 }
 0xa8e   :  { %2539 = vmatpush1.bf16.msra.mxu0 %v4783_v41  ;;  %2580 = vmatpush1.bf16.msra.mxu1 %v4788_v43 }
 0xa8f   :  { %2540 = vmatprep.subr.bf16.mxu0 %v4797_v16  ;;  %2581 = vmatprep.subr.bf16.mxu1 %v4802_v9 }
 0xa92   :  { %2541 = vmatpush1.bf16.msra.mxu0 %v4807_v22  ;;  %2582 = vmatpush1.bf16.msra.mxu1 %v4812_v33 }
 0xa93   :  { %2542 = vmatprep.subr.bf16.mxu0 %v4821_v14  ;;  %2583 = vmatprep.subr.bf16.mxu1 %v4826_v53 }
 0xa96   :  { %2543 = vmatpush1.bf16.msra.mxu0 %v4831_v34  ;;  %2584 = vmatpush1.bf16.msra.mxu1 %v4836_v29 }
 0xa97   :  { %2634 = vmatprep.subr.bf16.mxu0 %v4653_v17  ;;  %2675 = vmatprep.subr.bf16.mxu1 %v4658_v28 }
 0xb39   :  { %v2456_v1 = vpop.f32.mrf.mxu0  ;;  %v2497_v21 = vpop.f32.mrf.mxu1 }
 0xb3a   :  { %v2504_v19 = vadd.f32 %v2456_v1, %v1811_v27  ;;  %v2506_v32 = vadd.f32 %v2497_v21, %v1884_v24 }
 0xb3b   :  { %v2458_v10 = vpop.f32.mrf.mxu0  ;;  %v2499_v18 = vpop.f32.mrf.mxu1 }
 0xb3c   :  { %3551 = vtanh.f32 %v2504_v19  ;;  %v2505_v7 = vadd.f32 %v2458_v10, %v1813_v50  ;;  %v2507_v52 = vadd.f32 %v2499_v18, %v1886_v46 }
 0xb3d   :  { %v2460_v48 = vpop.f32.mrf.mxu0  ;;  %v2501_v42 = vpop.f32.mrf.mxu1 }
 0xb3e   :  { %3553 = vtanh.f32 %v2505_v7  ;;  %v5473_v42 = vld [vmem:[#allocation15_spill] sm:$0xff] }
 0xb3f   :  { %v2461_v20 = vpop.f32.mrf.mxu0  ;;  %v2502_v8 = vpop.f32.mrf.mxu1  ;;  %3555 = vtanh.f32 %v2506_v32 }
 0xb40   :  { %3557 = vtanh.f32 %v2507_v52  ;;  %v1892_v20 = vadd.f32 %v5473_v42, %v4964_v12 }
 0xb49   :  { %v3552_v11 = vpop.eup %3551 }
 0xb4a   :  { %v2512_v44 = vmul.f32 0.5, %v3552_v11 }
 0xb4b   :  { %v3554_v37 = vpop.eup %3553 }
 0xb4c   :  { %v2513_v30 = vadd.f32 0.5, %v2512_v44  ;;  %v2514_v36 = vmul.f32 0.5, %v3554_v37  ;;  %v3556_v31 = vpop.eup %3555 }
 0xb4d   :  { %v3558_v47 = vpop.eup %3557 }
 0xb4e   :  { %v2515_v15 = vadd.f32 0.5, %v2514_v36  ;;  %v2519_v27 = vmul.f32 %v3556_v31, %v2513_v30  ;;  %v2516_v24 = vmul.f32 0.5, %v3558_v47 }
 0xb50   :  { %v2518_v1 = vmul.f32 %v2515_v15, %v5059_v23  ;;  %v2517_v49 = vadd.f32 0.5, %v2516_v24 }
 0xb52   :  { %v5105_v21 = vadd.f32 %v2519_v27, %v2518_v1 }
 0xb54   :  { %3559 = vtanh.f32 %v5105_v21 }
 0xb61   :  { %v3560_v50 = vpop.eup %3559 }
 0xb62   :  { %v2522_v19 = vmul.f32 %v3560_v50, %v2517_v49 }
 0xb64   :  { %v2527_v10 = vpack.c.bf16 %v2522_v19, %v2522_v19  ;;  %v5157_v19 = vld [vmem:[%s5382_s5 + $0xe0] ss:$16 sps:$4 sm:$0xff]  }
 0xb66   :  { %2561 = vmatmul.mubr.bf16.vlgmr.msra.gmra.mxu0 %v2527_v10  ;;  %2602 = vmatmul.mubr.bf16.vlgmr.msra.gmra.mxu1 %v2527_v10  ;;  %v5169_v10 = vld [vmem:[%s5382_s5 + $0xc4] ss:$16 sps:$4 sm:$0xff]  }
 0xb67   :  { %2635 = vmatpush1.bf16.msra.mxu0 %v4664_v62  ;;  %2676 = vmatpush1.bf16.msra.mxu1 %v4669_v35  ;;  %v5470_v62 = vld [vmem:[#allocation12_spill] sm:$0xff] }
 0xb68   :  { %2636 = vmatprep.subr.bf16.mxu0 %v4677_v26  ;;  %2677 = vmatprep.subr.bf16.mxu1 %v4682_v13  ;;  %v1817_v35 = vadd.f32 %v5470_v62, %v4941_v45  ;;  %v5175_v62 = vld [vmem:[%s5382_s5 + $0xcc] ss:$16 sps:$4 sm:$0xff]  }
 0xb69   :  { %2666 = vmatprep.mubr.bf16.mxu0 %v5415_v6  ;;  %2707 = vmatprep.mubr.bf16.mxu1 %v5415_v6 }
 0xb6b   :  { %2637 = vmatpush1.bf16.msra.mxu0 %v4687_v54  ;;  %2678 = vmatpush1.bf16.msra.mxu1 %v4692_v55  ;;  %v5471_v54 = vld [vmem:[#allocation13_spill] sm:$0xff] }
 0xb6c   :  { %2638 = vmatprep.subr.bf16.mxu0 %v4699_v56  ;;  %2679 = vmatprep.subr.bf16.mxu1 %v4704_v57  ;;  %v1890_v55 = vadd.f32 %v5471_v54, %v4958_v51  ;;  %v5472_v56 = vld [vmem:[#allocation14_spill] sm:$0xff]  ;;  %v5201_v54 = vld [vmem:[%s5382_s5 + $0xac] ss:$16 sps:$4 sm:$0xff]  }
 0xb6d   :  { %v1819_v57 = vadd.f32 %v5472_v56, %v4949_v38  ;;  %v5213_v56 = vld [vmem:[%s5382_s5 + $0xa8] ss:$16 sps:$4 sm:$0xff]  }
 0xb6f   :  { %2639 = vmatpush1.bf16.msra.mxu0 %v4711_v58  ;;  %2680 = vmatpush1.bf16.msra.mxu1 %v4716_v59 }
 0xb70   :  { %2640 = vmatprep.subr.bf16.mxu0 %v4725_v60  ;;  %2681 = vmatprep.subr.bf16.mxu1 %v4730_v61 }
 0xb73   :  { %2641 = vmatpush1.bf16.msra.mxu0 %v4735_v63  ;;  %2682 = vmatpush1.bf16.msra.mxu1 %v4740_v0 }
 0xb74   :  { %2642 = vmatprep.subr.bf16.mxu0 %v4749_v2  ;;  %2683 = vmatprep.subr.bf16.mxu1 %v4754_v3 }
 0xb77   :  { %2643 = vmatpush1.bf16.msra.mxu0 %v4759_v4  ;;  %2684 = vmatpush1.bf16.msra.mxu1 %v4764_v5 }
 0xb78   :  { %2644 = vmatprep.subr.bf16.mxu0 %v4773_v39  ;;  %2685 = vmatprep.subr.bf16.mxu1 %v4778_v40 }
 0xb7b   :  { %2645 = vmatpush1.bf16.msra.mxu0 %v4783_v41  ;;  %2686 = vmatpush1.bf16.msra.mxu1 %v4788_v43 }
 0xb7c   :  { %2646 = vmatprep.subr.bf16.mxu0 %v4797_v16  ;;  %2687 = vmatprep.subr.bf16.mxu1 %v4802_v9 }
 0xb7f   :  { %2647 = vmatpush1.bf16.msra.mxu0 %v4807_v22  ;;  %2688 = vmatpush1.bf16.msra.mxu1 %v4812_v33 }
 0xb80   :  { %2648 = vmatprep.subr.bf16.mxu0 %v4821_v14  ;;  %2689 = vmatprep.subr.bf16.mxu1 %v4826_v53 }
 0xb83   :  { %2649 = vmatpush1.bf16.msra.mxu0 %v4831_v34  ;;  %2690 = vmatpush1.bf16.msra.mxu1 %v4836_v29 }
 0xb84   :  { %2740 = vmatprep.subr.bf16.mxu0 %v4653_v17  ;;  %2781 = vmatprep.subr.bf16.mxu1 %v4658_v28 }
 0xc26   :  { %v2562_v26 = vpop.f32.mrf.mxu0  ;;  %v2603_v13 = vpop.f32.mrf.mxu1 }
 0xc27   :  { %v2610_v58 = vadd.f32 %v2562_v26, %v1817_v35  ;;  %v2612_v18 = vadd.f32 %v2603_v13, %v1890_v55  ;;  %v5183_v35 = vld [vmem:[%s5382_s5 + $0xc0] ss:$16 sps:$4 sm:$0xff]   ;;  %v5189_v26 = vld [vmem:[%s5382_s5 + $0xc8] ss:$16 sps:$4 sm:$0xff]   ;;  %v5195_v13 = vld [vmem:[%s5382_s5 + $0xa4] ss:$16 sps:$4 sm:$0xff]  }
 0xc28   :  { %v2564_v59 = vpop.f32.mrf.mxu0  ;;  %v2605_v23 = vpop.f32.mrf.mxu1  ;;  %v5207_v55 = vld [vmem:[%s5382_s5 + $0xa0] ss:$16 sps:$4 sm:$0xff]  }
 0xc29   :  { %3561 = vtanh.f32 %v2610_v58  ;;  %v2611_v32 = vadd.f32 %v2564_v59, %v1819_v57  ;;  %v2613_v8 = vadd.f32 %v2605_v23, %v1892_v20 }
 0xc2a   :  { %v2566_v17 = vpop.f32.mrf.mxu0  ;;  %v2607_v7 = vpop.f32.mrf.mxu1 }
 0xc2b   :  { %3563 = vtanh.f32 %v2611_v32 }
 0xc2c   :  { %v2567_v28 = vpop.f32.mrf.mxu0  ;;  %v2608_v48 = vpop.f32.mrf.mxu1  ;;  %3565 = vtanh.f32 %v2612_v18 }
 0xc2d   :  { %3567 = vtanh.f32 %v2613_v8 }
 0xc36   :  { %v3562_v25 = vpop.eup %3561 }
 0xc37   :  { %v2618_v46 = vmul.f32 0.5, %v3562_v25 }
 0xc38   :  { %v3564_v52 = vpop.eup %3563 }
 0xc39   :  { %v2619_v11 = vadd.f32 0.5, %v2618_v46  ;;  %v2620_v44 = vmul.f32 0.5, %v3564_v52  ;;  %v3566_v37 = vpop.eup %3565 }
 0xc3a   :  { %v3568_v27 = vpop.eup %3567 }
 0xc3b   :  { %v2621_v30 = vadd.f32 0.5, %v2620_v44  ;;  %v2625_v36 = vmul.f32 %v3566_v37, %v2619_v11  ;;  %v2622_v1 = vmul.f32 0.5, %v3568_v27  ;;  %v3645_v37 = vld [vmem:[%s5382_s5 + $0x84] ss:$16 sps:$4 sm:$0xff]   ;;  %v3651_v27 = vld [vmem:[%s5382_s5 + $0x60] ss:$16 sps:$4 sm:$0xff]  }
 0xc3d   :  { %v2624_v31 = vmul.f32 %v2621_v30, %v5105_v21  ;;  %v2623_v47 = vadd.f32 0.5, %v2622_v1  ;;  %v5163_v21 = vld [vmem:[%s5382_s5 + $0xe8] ss:$16 sps:$4 sm:$0xff]   ;;  %v3647_v30 = vld [vmem:[%s5382_s5 + $0x80] ss:$16 sps:$4 sm:$0xff]  }
 0xc3e   :  { %v3652_v1 = vld [vmem:[%s5382_s5 + $0x68] ss:$16 sps:$4 sm:$0xff]  }
 0xc3f   :  { %v5151_v15 = vadd.f32 %v2625_v36, %v2624_v31  ;;  %v3648_v36 = vld [vmem:[%s5382_s5 + $0x88] ss:$16 sps:$4 sm:$0xff]   ;;  %v3649_v31 = vld [vmem:[%s5382_s5 + $0x64] ss:$16 sps:$4 sm:$0xff]  }
 0xc41   :  { %3569 = vtanh.f32 %v5151_v15 }
 0xc4e   :  { %v3570_v24 = vpop.eup %3569 }
 0xc4f   :  { %v2628_v49 = vmul.f32 %v3570_v24, %v2623_v47  ;;  %v3653_v47 = vld [vmem:[%s5382_s5 + $0x44] ss:$16 sps:$4 sm:$0xff]   ;;  %v3654_v24 = vld [vmem:[%s5382_s5 + $0x4c] ss:$16 sps:$4 sm:$0xff]  }
 0xc51   :  { %v2633_v50 = vpack.c.bf16 %v2628_v49, %v2628_v49  ;;  %v3655_v49 = vld [vmem:[%s5382_s5 + $0x40] ss:$16 sps:$4 sm:$0xff]  }
 0xc53   :  { %2667 = vmatmul.mubr.bf16.vlgmr.msra.gmra.mxu0 %v2633_v50  ;;  %2708 = vmatmul.mubr.bf16.vlgmr.msra.gmra.mxu1 %v2633_v50  ;;  %v3656_v50 = vld [vmem:[%s5382_s5 + $0x48] ss:$16 sps:$4 sm:$0xff]  }
 0xc54   :  { %2741 = vmatpush1.bf16.msra.mxu0 %v5157_v19  ;;  %2782 = vmatpush1.bf16.msra.mxu1 %v5163_v21 }
 0xc55   :  { %2742 = vmatprep.subr.bf16.mxu0 %v5169_v10  ;;  %2783 = vmatprep.subr.bf16.mxu1 %v5175_v62 }
 0xc56   :  { %2772 = vmatprep.mubr.bf16.mxu0 %v5415_v6  ;;  %2813 = vmatprep.mubr.bf16.mxu1 %v5415_v6 }
 0xc58   :  { %2743 = vmatpush1.bf16.msra.mxu0 %v5183_v35  ;;  %2784 = vmatpush1.bf16.msra.mxu1 %v5189_v26 }
 0xc59   :  { %2744 = vmatprep.subr.bf16.mxu0 %v5195_v13  ;;  %2785 = vmatprep.subr.bf16.mxu1 %v5201_v54 }
 0xc5c   :  { %2745 = vmatpush1.bf16.msra.mxu0 %v5207_v55  ;;  %2786 = vmatpush1.bf16.msra.mxu1 %v5213_v56 }
 0xc5d   :  { %2746 = vmatprep.subr.bf16.mxu0 %v4725_v60  ;;  %2787 = vmatprep.subr.bf16.mxu1 %v4730_v61  ;;  %v3643_v60 = vld [vmem:[%s5382_s5 + $0xe4] ss:$16 sps:$4 sm:$0xff]   ;;  %v3644_v61 = vld [vmem:[%s5382_s5 + $0xec] ss:$16 sps:$4 sm:$0xff]  }
 0xc60   :  { %2747 = vmatpush1.bf16.msra.mxu0 %v4735_v63  ;;  %2788 = vmatpush1.bf16.msra.mxu1 %v4740_v0  ;;  %v5474_v63 = vld [vmem:[#allocation16_spill] sm:$0xff] }
 0xc61   :  { %2748 = vmatprep.subr.bf16.mxu0 %v4749_v2  ;;  %2789 = vmatprep.subr.bf16.mxu1 %v4754_v3  ;;  %v1821_v0 = vadd.f32 %v5474_v63, %v4941_v45  ;;  %v5479_v63 = vld [vmem:[#allocation21_spill] sm:$0xff] }
 0xc64   :  { %2749 = vmatpush1.bf16.msra.mxu0 %v4759_v4  ;;  %2790 = vmatpush1.bf16.msra.mxu1 %v4764_v5  ;;  %v5475_v4 = vld [vmem:[#allocation17_spill] sm:$0xff] }
 0xc65   :  { %2750 = vmatprep.subr.bf16.mxu0 %v4773_v39  ;;  %2791 = vmatprep.subr.bf16.mxu1 %v4778_v40  ;;  %v1894_v5 = vadd.f32 %v5475_v4, %v4958_v51  ;;  %v5476_v39 = vld [vmem:[#allocation18_spill] sm:$0xff] }
 0xc66   :  { %v1823_v40 = vadd.f32 %v5476_v39, %v4949_v38 }
 0xc68   :  { %2751 = vmatpush1.bf16.msra.mxu0 %v4783_v41  ;;  %2792 = vmatpush1.bf16.msra.mxu1 %v4788_v43 }
 0xc69   :  { %2752 = vmatprep.subr.bf16.mxu0 %v4797_v16  ;;  %2793 = vmatprep.subr.bf16.mxu1 %v4802_v9 }
 0xc6c   :  { %2753 = vmatpush1.bf16.msra.mxu0 %v4807_v22  ;;  %2794 = vmatpush1.bf16.msra.mxu1 %v4812_v33 }
 0xc6d   :  { %2754 = vmatprep.subr.bf16.mxu0 %v4821_v14  ;;  %2795 = vmatprep.subr.bf16.mxu1 %v4826_v53 }
 0xc70   :  { %2755 = vmatpush1.bf16.msra.mxu0 %v4831_v34  ;;  %2796 = vmatpush1.bf16.msra.mxu1 %v4836_v29  ;;  %v5477_v29 = vld [vmem:[#allocation19_spill] sm:$0xff] }
 0xc71   :  { %2846 = vmatprep.subr.bf16.mxu0 %v3643_v60  ;;  %2887 = vmatprep.subr.bf16.mxu1 %v3644_v61  ;;  %v1896_v57 = vadd.f32 %v5477_v29, %v4964_v12 }
 0xd13   :  { %v2668_v2 = vpop.f32.mrf.mxu0  ;;  %v2709_v3 = vpop.f32.mrf.mxu1 }
 0xd14   :  { %v2716_v41 = vadd.f32 %v2668_v2, %v1821_v0  ;;  %v2718_v9 = vadd.f32 %v2709_v3, %v1894_v5  ;;  %v1900_v0 = vadd.f32 %v5479_v63, %v4958_v51  ;;  %v5480_v2 = vld [vmem:[#allocation22_spill] sm:$0xff] }
 0xd15   :  { %v2670_v43 = vpop.f32.mrf.mxu0  ;;  %v2711_v16 = vpop.f32.mrf.mxu1  ;;  %v1829_v3 = vadd.f32 %v5480_v2, %v4949_v38 }
 0xd16   :  { %3571 = vtanh.f32 %v2716_v41  ;;  %v2717_v22 = vadd.f32 %v2670_v43, %v1823_v40  ;;  %v2719_v58 = vadd.f32 %v2711_v16, %v1896_v57 }
 0xd17   :  { %v2672_v33 = vpop.f32.mrf.mxu0  ;;  %v2713_v14 = vpop.f32.mrf.mxu1 }
 0xd18   :  { %3573 = vtanh.f32 %v2717_v22  ;;  %v5481_v33 = vld [vmem:[#allocation23_spill] sm:$0xff] }
 0xd19   :  { %v2673_v53 = vpop.f32.mrf.mxu0  ;;  %v2714_v34 = vpop.f32.mrf.mxu1  ;;  %3575 = vtanh.f32 %v2718_v9  ;;  %v1902_v14 = vadd.f32 %v5481_v33, %v4964_v12  ;;  %v3196_v33 = vld [vmem:[%s5385_s8] ss:$0 sm:$0xff] }
 0xd1a   :  { %3577 = vtanh.f32 %v2719_v58 }
 0xd23   :  { %v3572_v59 = vpop.eup %3571 }
 0xd24   :  { %v2724_v23 = vmul.f32 0.5, %v3572_v59 }
 0xd25   :  { %v3574_v18 = vpop.eup %3573 }
 0xd26   :  { %v2725_v32 = vadd.f32 0.5, %v2724_v23  ;;  %v2726_v17 = vmul.f32 0.5, %v3574_v18  ;;  %v3576_v7 = vpop.eup %3575 }
 0xd27   :  { %v3578_v8 = vpop.eup %3577 }
 0xd28   :  { %v2727_v28 = vadd.f32 0.5, %v2726_v17  ;;  %v2731_v48 = vmul.f32 %v3576_v7, %v2725_v32  ;;  %v2728_v25 = vmul.f32 0.5, %v3578_v8 }
 0xd2a   :  { %v2730_v42 = vmul.f32 %v2727_v28, %v5151_v15  ;;  %v2729_v46 = vadd.f32 0.5, %v2728_v25  ;;  %v3650_v15 = vld [vmem:[%s5382_s5 + $0x6c] ss:$16 sps:$4 sm:$0xff]  }
 0xd2c   :  { %v5251_v20 = vadd.f32 %v2731_v48, %v2730_v42 }
 0xd2e   :  { %3579 = vtanh.f32 %v5251_v20 }
 0xd3b   :  { %v3580_v52 = vpop.eup %3579 }
 0xd3c   :  { %v2734_v11 = vmul.f32 %v3580_v52, %v2729_v46  ;;  %v3433_v52 = vld [vmem:[%s5384_s7 + $0x38] sm:$0xff]  }
 0xd3e   :  { %v2739_v44 = vpack.c.bf16 %v2734_v11, %v2734_v11  ;;  %v3666_v11 = vmov 0.0  }
 0xd40   :  { %2773 = vmatmul.mubr.bf16.vlgmr.msra.gmra.mxu0 %v2739_v44  ;;  %2814 = vmatmul.mubr.bf16.vlgmr.msra.gmra.mxu1 %v2739_v44  ;;  %v3435_v44 = vld [vmem:[%s5384_s7 + $0x28] sm:$0xff]  }
 0xd41   :  { %2847 = vmatpush1.bf16.msra.mxu0 %v5157_v19  ;;  %2888 = vmatpush1.bf16.msra.mxu1 %v5163_v21  ;;  %v3657_v19 = vld [vmem:[%s5382_s5 + $0x24] ss:$16 sps:$4 sm:$0xff]   ;;  %v3658_v21 = vld [vmem:[%s5382_s5 + $0x2c] ss:$16 sps:$4 sm:$0xff]  }
 0xd42   :  { %2848 = vmatprep.subr.bf16.mxu0 %v5169_v10  ;;  %2889 = vmatprep.subr.bf16.mxu1 %v5175_v62  ;;  %v3659_v10 = vld [vmem:[%s5382_s5 + $0x20] ss:$16 sps:$4 sm:$0xff]   ;;  %v3660_v62 = vld [vmem:[%s5382_s5 + $0x28] ss:$16 sps:$4 sm:$0xff]  }
 0xd43   :  { %2878 = vmatprep.mubr.bf16.mxu0 %v5415_v6  ;;  %2919 = vmatprep.mubr.bf16.mxu1 %v5415_v6  ;;  %v3646_v6 = vld [vmem:[%s5382_s5 + $0x8c] ss:$16 sps:$4 sm:$0xff]  }
 0xd45   :  { %2849 = vmatpush1.bf16.msra.mxu0 %v5183_v35  ;;  %2890 = vmatpush1.bf16.msra.mxu1 %v5189_v26  ;;  %v3661_v35 = vld [vmem:[%s5382_s5 + $0x4] ss:$16 sps:$4 sm:$0xff]   ;;  %v3662_v26 = vld [vmem:[%s5382_s5 + $0xc] ss:$16 sps:$4 sm:$0xff]  }
 0xd46   :  { %2850 = vmatprep.subr.bf16.mxu0 %v5195_v13  ;;  %2891 = vmatprep.subr.bf16.mxu1 %v5201_v54  ;;  %v3663_v13 = vld [vmem:[%s5382_s5] ss:$16 sps:$4 sm:$0xff]   ;;  %v3664_v54 = vld [vmem:[%s5382_s5 + $0x8] ss:$16 sps:$4 sm:$0xff]  }
 0xd49   :  { %2851 = vmatpush1.bf16.msra.mxu0 %v5207_v55  ;;  %2892 = vmatpush1.bf16.msra.mxu1 %v5213_v56  ;;  %v5478_v55 = vld [vmem:[#allocation20_spill] sm:$0xff] }
 0xd4a   :  { %2852 = vmatprep.subr.bf16.mxu0 %v3645_v37  ;;  %2893 = vmatprep.subr.bf16.mxu1 %v3646_v6  ;;  %v1827_v56 = vadd.f32 %v5478_v55, %v4941_v45  ;;  %v3436_v37 = vld [vmem:[%s5384_s7 + $0x20] sm:$0xff]   ;;  %v3437_v6 = vld [vmem:[%s5384_s7 + $0x18] sm:$0xff]  }
 0xd4d   :  { %2853 = vmatpush1.bf16.msra.mxu0 %v3647_v30  ;;  %2894 = vmatpush1.bf16.msra.mxu1 %v3648_v36  ;;  %v3438_v30 = vld [vmem:[%s5384_s7 + $0x10] sm:$0xff]   ;;  %v3439_v36 = vld [vmem:[%s5384_s7 + $0x8] sm:$0xff]  }
 0xd4e   :  { %2854 = vmatprep.subr.bf16.mxu0 %v3649_v31  ;;  %2895 = vmatprep.subr.bf16.mxu1 %v3650_v15  ;;  %v3440_v31 = vld [vmem:[%s5384_s7] sm:$0xff]  }
 0xd4f   :  { %v5482_v15 = vld [vmem:[#allocation4_spill] sm:$0xff] }
 0xd51   :  { %2855 = vmatpush1.bf16.msra.mxu0 %v3651_v27  ;;  %2896 = vmatpush1.bf16.msra.mxu1 %v3652_v1  ;;  %v1831_v27 = vadd.f32 %v5482_v15, %v4941_v45  ;;  %v5485_v45 = vld [vmem:[#allocation26_spill] sm:$0xff] }
 0xd52   :  { %2856 = vmatprep.subr.bf16.mxu0 %v3653_v47  ;;  %2897 = vmatprep.subr.bf16.mxu1 %v3654_v24  ;;  %v5483_v24 = vld [vmem:[#allocation24_spill] sm:$0xff] }
 0xd55   :  { %2857 = vmatpush1.bf16.msra.mxu0 %v3655_v49  ;;  %2898 = vmatpush1.bf16.msra.mxu1 %v3656_v50  ;;  %v1904_v49 = vadd.f32 %v5483_v24, %v4958_v51  ;;  %v5484_v50 = vld [vmem:[#allocation25_spill] sm:$0xff] }
 0xd56   :  { %2858 = vmatprep.subr.bf16.mxu0 %v3657_v19  ;;  %2899 = vmatprep.subr.bf16.mxu1 %v3658_v21  ;;  %v1833_v19 = vadd.f32 %v5484_v50, %v4949_v38 }
 0xd59   :  { %2859 = vmatpush1.bf16.msra.mxu0 %v3659_v10  ;;  %2900 = vmatpush1.bf16.msra.mxu1 %v3660_v62 }
 0xd5a   :  { %2860 = vmatprep.subr.bf16.mxu0 %v3661_v35  ;;  %2901 = vmatprep.subr.bf16.mxu1 %v3662_v26 }
 0xd5d   :  { %2861 = vmatpush1.bf16.msra.mxu0 %v3663_v13  ;;  %2902 = vmatpush1.bf16.msra.mxu1 %v3664_v54 }
 0xd5e   :  { %3214 = vmatprep.subr.bf16.mxu0 %v3666_v11 }
 0xe00   :  { %v2774_v60 = vpop.f32.mrf.mxu0  ;;  %v2815_v61 = vpop.f32.mrf.mxu1 }
 0xe01   :  { %v2822_v4 = vadd.f32 %v2774_v60, %v1827_v56  ;;  %v2824_v40 = vadd.f32 %v2815_v61, %v1900_v0  ;;  %v1906_v60 = vadd.f32 %v5485_v45, %v4964_v12 }
 0xe02   :  { %v2776_v5 = vpop.f32.mrf.mxu0  ;;  %v2817_v39 = vpop.f32.mrf.mxu1 }
 0xe03   :  { %3581 = vtanh.f32 %v2822_v4  ;;  %v2823_v41 = vadd.f32 %v2776_v5, %v1829_v3  ;;  %v2825_v53 = vadd.f32 %v2817_v39, %v1902_v14 }
 0xe04   :  { %v2778_v43 = vpop.f32.mrf.mxu0  ;;  %v2819_v16 = vpop.f32.mrf.mxu1 }
 0xe05   :  { %3583 = vtanh.f32 %v2823_v41 }
 0xe06   :  { %v2779_v9 = vpop.f32.mrf.mxu0  ;;  %v2820_v22 = vpop.f32.mrf.mxu1  ;;  %3585 = vtanh.f32 %v2824_v40 }
 0xe07   :  { %3587 = vtanh.f32 %v2825_v53 }
 0xe10   :  { %v3582_v34 = vpop.eup %3581 }
 0xe11   :  { %v2830_v29 = vmul.f32 0.5, %v3582_v34 }
 0xe12   :  { %v3584_v57 = vpop.eup %3583 }
 0xe13   :  { %v2831_v58 = vadd.f32 0.5, %v2830_v29  ;;  %v2832_v59 = vmul.f32 0.5, %v3584_v57  ;;  %v3586_v23 = vpop.eup %3585 }
 0xe14   :  { %v3588_v28 = vpop.eup %3587 }
 0xe15   :  { %v2833_v18 = vadd.f32 0.5, %v2832_v59  ;;  %v2837_v32 = vmul.f32 %v3586_v23, %v2831_v58  ;;  %v2834_v48 = vmul.f32 0.5, %v3588_v28 }
 0xe17   :  { %v2836_v17 = vmul.f32 %v2833_v18, %v5251_v20  ;;  %v2835_v42 = vadd.f32 0.5, %v2834_v48  ;;  %v3434_v20 = vld [vmem:[%s5384_s7 + $0x30] sm:$0xff]  }
 0xe19   :  { %v5335_v7 = vadd.f32 %v2837_v32, %v2836_v17 }
 0xe1b   :  { %3589 = vtanh.f32 %v5335_v7 }
 0xe28   :  { %v3590_v8 = vpop.eup %3589 }
 0xe29   :  { %v2840_v25 = vmul.f32 %v3590_v8, %v2835_v42 }
 0xe2b   :  { %v2845_v46 = vpack.c.bf16 %v2840_v25, %v2840_v25 }
 0xe2d   :  { %2879 = vmatmul.mubr.bf16.vlgmr.msra.gmra.mxu0 %v2845_v46  ;;  %2920 = vmatmul.mubr.bf16.vlgmr.msra.gmra.mxu1 %v2845_v46 }
 0xe2e   :  { %3215 = vmatpush3.bf16.msra.mxu0 %v3433_v52  ;;  %3230 = vmatprep.mubr.msk.bf16.mxu0 %vm3667_vm0, %v3666_v11 }
 0xe2f   :  { %3216 = vmatprep.subr.bf16.mxu0 %v3666_v11 }
 0xe32   :  { %3217 = vmatpush3.bf16.msra.mxu0 %v3434_v20 }
 0xe33   :  { %3218 = vmatprep.subr.bf16.mxu0 %v3666_v11 }
 0xe36   :  { %3219 = vmatpush3.bf16.msra.mxu0 %v3435_v44 }
 0xe37   :  { %3220 = vmatprep.subr.bf16.mxu0 %v3666_v11 }
 0xe3a   :  { %3221 = vmatpush3.bf16.msra.mxu0 %v3436_v37 }
 0xe3b   :  { %3222 = vmatprep.subr.bf16.mxu0 %v3666_v11 }
 0xe3e   :  { %3223 = vmatpush3.bf16.msra.mxu0 %v3437_v6 }
 0xe3f   :  { %3224 = vmatprep.subr.bf16.mxu0 %v3666_v11 }
 0xe42   :  { %3225 = vmatpush3.bf16.msra.mxu0 %v3438_v30 }
 0xe43   :  { %3226 = vmatprep.subr.bf16.mxu0 %v3666_v11 }
 0xe46   :  { %3227 = vmatpush3.bf16.msra.mxu0 %v3439_v36 }
 0xe47   :  { %3228 = vmatprep.subr.bf16.mxu0 %v3666_v11 }
 0xe4a   :  { %3229 = vmatpush3.bf16.msra.mxu0 %v3440_v31 }
 0xeed   :  { %v2880_v1 = vpop.f32.mrf.mxu0  ;;  %v2921_v47 = vpop.f32.mrf.mxu1 }
 0xeee   :  { %v2928_v21 = vadd.f32 %v2880_v1, %v1831_v27  ;;  %v2930_v35 = vadd.f32 %v2921_v47, %v1904_v49 }
 0xeef   :  { %v2882_v10 = vpop.f32.mrf.mxu0  ;;  %v2923_v62 = vpop.f32.mrf.mxu1 }
 0xef0   :  { %3591 = vtanh.f32 %v2928_v21  ;;  %v2929_v26 = vadd.f32 %v2882_v10, %v1833_v19  ;;  %v2931_v61 = vadd.f32 %v2923_v62, %v1906_v60 }
 0xef1   :  { %v2884_v13 = vpop.f32.mrf.mxu0  ;;  %v2925_v54 = vpop.f32.mrf.mxu1 }
 0xef2   :  { %3593 = vtanh.f32 %v2929_v26 }
 0xef3   :  { %v2885_v55 = vpop.f32.mrf.mxu0  ;;  %v2926_v56 = vpop.f32.mrf.mxu1  ;;  %3595 = vtanh.f32 %v2930_v35 }
 0xef4   :  { %3597 = vtanh.f32 %v2931_v61 }
 0xefd   :  { %v3592_v51 = vpop.eup %3591 }
 0xefe   :  { %v2936_v63 = vmul.f32 0.5, %v3592_v51 }
 0xeff   :  { %v3594_v0 = vpop.eup %3593 }
 0xf00   :  { %v2937_v38 = vadd.f32 0.5, %v2936_v63  ;;  %v2938_v2 = vmul.f32 0.5, %v3594_v0  ;;  %v3596_v3 = vpop.eup %3595 }
 0xf01   :  { %v3598_v41 = vpop.eup %3597 }
 0xf02   :  { %v2939_v4 = vadd.f32 0.5, %v2938_v2  ;;  %v2943_v5 = vmul.f32 %v3596_v3, %v2937_v38  ;;  %v2940_v43 = vmul.f32 0.5, %v3598_v41 }
 0xf04   :  { %v2942_v39 = vmul.f32 %v2939_v4, %v5335_v7  ;;  %v2941_v16 = vadd.f32 0.5, %v2940_v43 }
 0xf06   :  { %v2944_v40 = vadd.f32 %v2943_v5, %v2942_v39 }
 0xf08   :  { %3599 = vtanh.f32 %v2944_v40 }
 0xf15   :  { %v3600_v9 = vpop.eup %3599 }
 0xf16   :  { %v2946_v22 = vmul.f32 %v3600_v9, %v2941_v16 }
 0xf18   :  { %v2947_v12 = vpack.c.bf16 %v2946_v22, %v2946_v22 }
 0xf1a   :  { %3231 = vmatmul.mubr.bf16.vlgmr.msra.gmra.mxu0 %v2947_v12 }
 0xfda   :  { %v3053_v14 = vpop.f32.mrf.mxu0 }
 0xfdb   :  { %v3054_v53 = vadd.f32 %v3196_v33, %v3053_v14 }
 0xfdc   :  { %v3232_v34 = vpop.f32.mrf.mxu0 }
 0xfdd   :  { %3059 = vst [vmem:[%s5386_s9] sm:$0xff] %v3054_v53 }
 0xfde   :  { %v3056_v29 = vpop.f32.mrf.mxu0 }
 0xfe0   :  { %v3233_v57 = vpop.f32.mrf.mxu0 }

</bundles_post_ra>
